<compile_context>
chip_gen: v5e
topology: v5e:2x2
jax: 0.10.0
libtpu: 0.0.40
codegen_flags: <defaults>
</compile_context>

<pallas_src>
import jax
import jax.numpy as jnp
from jax import lax
from jax.experimental import pallas as pl
from jax.experimental.pallas import tpu as pltpu


_VMEM_SPEC = pl.BlockSpec(memory_space=pltpu.MemorySpace.VMEM)


# ----------------------------------------------------------------------------
# Fused kernel: all LSTM layers (both directions) + FC head in one pallas_call
# ----------------------------------------------------------------------------

def _make_fused_kernel(n_layers, T, B, H):
    """Build the fused kernel for static (n_layers, T, B(padded), H)."""
    G = 4 * H  # gate width; columns ordered (i | f | o | g)

    def kernel(*refs):
        # ---- unpack refs: inputs..., output, scratch -------------------------
        it = 0
        x_ref = refs[it]; it += 1                     # [T*B, E]        bf16
        layers = []
        for _ in range(n_layers):
            layers.append(refs[it:it + 5]); it += 5   # per layer:
            # w_ih_f [Din,4H] bf16, w_ih_b [Din,4H] bf16,
            # w_hh_cat [H,8H] bf16, b_f [1,4H] f32, b_b [1,4H] f32
        fcw_ref = refs[it]; fcb_ref = refs[it + 1]; it += 2  # [2,H,OUTp], [1,OUTp]
        o_ref = refs[it]; it += 1                     # [B, OUTp]       f32
        xw_ref = refs[it]                             # [T, 2B, 4H]     f32 scratch
        actf_ref = refs[it + 1]                       # [T*B, H]        f32 scratch
        actb_ref = refs[it + 2]                       # [T*B, H]        f32 scratch

        # Row mask selecting the forward-direction rows of the stacked state.
        # Hoisted once: JAX does not CSE broadcast_in_dim.
        row_is_fwd = lax.broadcasted_iota(jnp.int32, (2 * B, G), 0) < B

        h_f_last = None
        h_b_last = None

        for l in range(n_layers):
            wihf_ref, wihb_ref, whhc_ref, bf_ref, bb_ref = layers[l]
            last_layer = (l == n_layers - 1)

            if l == 0:
                layer_in = x_ref[...]                              # [T*B, E]
            else:
                # Per-layer (not per-step) feature concat of the previous
                # layer's fwd/bwd activations; off the serial path.
                layer_in = jnp.concatenate(
                    [actf_ref[...], actb_ref[...]], axis=1).astype(jnp.bfloat16)

            # ---- bulk input projections for the whole sequence (off the
            # ---- serial path): one big MXU matmul per direction, bias folded.
            pf = (jnp.dot(layer_in, wihf_ref[...],
                          preferred_element_type=jnp.float32) + bf_ref[...])
            pb = (jnp.dot(layer_in, wihb_ref[...],
                          preferred_element_type=jnp.float32) + bb_ref[...])

            # Time-aligned stacked slab: block t = [fwd proj(t) ; bwd proj(T-1-t)]
            # so the recurrence reads one contiguous [2B, 4H] tile per step.
            for t in range(T):
                xw_ref[t, 0:B, :] = pf[t * B:(t + 1) * B]
                xw_ref[t, B:, :] = pb[(T - 1 - t) * B:(T - t) * B]

            # Loop-invariant recurrent weights (loaded once per layer).
            whh_cat = whhc_ref[...]                                # [H, 8H] bf16

            # Stacked fwd/bwd state: rows [0,B) = forward, [B,2B) = backward.
            h_st = jnp.zeros((2 * B, H), jnp.float32)
            c_st = jnp.zeros((2 * B, H), jnp.float32)

            # ---- serial recurrence, fully unrolled (T is small & static) ----
            for t in range(T):
                # One stacked recurrent matmul for both directions:
                # [2B, H] @ [H, 8H] -> [2B, 8H]; forward rows keep the first
                # half, backward rows the second half (hoisted row mask).
                g_all = jnp.dot(h_st.astype(jnp.bfloat16), whh_cat,
                                preferred_element_type=jnp.float32)
                g_rec = jnp.where(row_is_fwd, g_all[:, :G], g_all[:, G:])

                gates = g_rec + xw_ref[t]                          # [2B, 4H]

                # Gate columns are (i | f | o | g): sigmoid on the first 3H
                # columns only, tanh on the last H -> half the EUP work of
                # full-width sigmoid + tanh.
                sig = jax.nn.sigmoid(gates[:, :3 * H])
                i_g = sig[:, 0:H]
                f_g = sig[:, H:2 * H]
                o_g = sig[:, 2 * H:3 * H]
                g_g = jnp.tanh(gates[:, 3 * H:])

                c_st = f_g * c_st + i_g * g_g
                h_st = o_g * jnp.tanh(c_st)

                if not last_layer:
                    # Time-aligned activations for the next layer:
                    # fwd hidden at time t, bwd hidden at actual time T-1-t.
                    actf_ref[t * B:(t + 1) * B, :] = h_st[:B]
                    actb_ref[(T - 1 - t) * B:(T - t) * B, :] = h_st[B:]

            if last_layer:
                # Only the final hidden states are needed (matches PyTorch:
                # hidden[-2] = last-layer fwd final, hidden[-1] = bwd final).
                h_f_last = h_st[:B]
                h_b_last = h_st[B:]

        # ---- FC epilogue: concat(h_fwd, h_bwd) @ W_fc + b_fc as two
        # ---- half-matmuls (no sublane->lane shuffle); lane-dense output.
        logits = (
            jnp.dot(h_f_last.astype(jnp.bfloat16), fcw_ref[0],
                    preferred_element_type=jnp.float32)
            + jnp.dot(h_b_last.astype(jnp.bfloat16), fcw_ref[1],
                      preferred_element_type=jnp.float32)
            + fcb_ref[...])
        o_ref[...] = logits

    return kernel


# ----------------------------------------------------------------------------
# Full model forward
# ----------------------------------------------------------------------------

@jax.jit
def model_forward(x_ids, params):
    """x_ids: int32 [T, B] token indices. Returns float32 [B, output_dim]."""
    T, B = x_ids.shape
    lstm_layers = params["lstm_layers"]
    n_layers = len(lstm_layers)
    H = lstm_layers[0]["whh_cat"].shape[0]

    fc_w = params["fc_w"]                       # [2H, OUT] f32
    fc_b = params["fc_b"]                       # [OUT]     f32
    out_dim = fc_w.shape[1]

    # ---- padding: 2*B_pad multiple of 16 (bf16 sublane packing of the
    # ---- stacked state); FC output lanes padded to a multiple of 128.
    B_pad = ((B + 7) // 8) * 8
    out_pad = ((out_dim + 127) // 128) * 128

    if B_pad != B:
        x_ids = jnp.pad(x_ids, ((0, 0), (0, B_pad - B)))   # pad token id 0

    # Embedding lookup (glue; gather stays in plain JAX). Dropout = identity.
    x_flat = jnp.take(params["embedding"], x_ids.reshape(-1), axis=0)
    x_flat = x_flat.astype(jnp.bfloat16)                    # [T*B_pad, E]

    fc_w_p = jnp.pad(fc_w, ((0, 0), (0, out_pad - out_dim)))
    fc_w_p = fc_w_p.reshape(2, H, out_pad).astype(jnp.bfloat16)
    fc_b_p = jnp.pad(fc_b, (0, out_pad - out_dim)).reshape(1, out_pad)

    inputs = [x_flat]
    in_specs = [_VMEM_SPEC]
    for lp in lstm_layers:
        inputs += [lp["w_ih_f"], lp["w_ih_b"], lp["whh_cat"],
                   lp["b_f"], lp["b_b"]]
        in_specs += [_VMEM_SPEC] * 5
    inputs += [fc_w_p, fc_b_p]
    in_specs += [_VMEM_SPEC, _VMEM_SPEC]

    # Explicit scoped-VMEM budget (review): inputs + output + scratch, x2
    # headroom, clamped to [32 MiB, 64 MiB] (v7x physical = 64 MiB).
    est = sum(a.size * a.dtype.itemsize for a in inputs)
    est += B_pad * out_pad * 4
    est += 4 * (T * 2 * B_pad * 4 * H + 2 * T * B_pad * H)
    vmem_limit = int(min(max(2 * est + (4 << 20), 32 << 20), 64 << 20))

    kernel = _make_fused_kernel(n_layers, T, B_pad, H)
    logits = pl.pallas_call(
        kernel,
        out_shape=jax.ShapeDtypeStruct((B_pad, out_pad), jnp.float32),
        in_specs=in_specs,
        out_specs=_VMEM_SPEC,
        scratch_shapes=[
            pltpu.VMEM((T, 2 * B_pad, 4 * H), jnp.float32),  # stacked projections
            pltpu.VMEM((T * B_pad, H), jnp.float32),         # fwd activations
            pltpu.VMEM((T * B_pad, H), jnp.float32),         # bwd activations
        ],
        compiler_params=pltpu.CompilerParams(vmem_limit_bytes=vmem_limit),
    )(*inputs)
    return logits[:B, :out_dim]


# ----------------------------------------------------------------------------
# Deterministic parameter init (uniform(-k, k), k = 1/sqrt(hidden_dim),
# matching PyTorch LSTM/Linear default scale).  Matmul weights in bf16,
# biases / embedding / fc in f32.
# ----------------------------------------------------------------------------

def _reorder_gates_ifog(w):
    """Permute the last (4H) axis from PyTorch (i,f,g,o) to kernel (i,f,o,g)."""
    i, f, g, o = jnp.split(w, 4, axis=-1)
    return jnp.concatenate([i, f, o, g], axis=-1)


def init_params(key, vocab_size, embedding_dim, hidden_dim, output_dim,
                n_layers, bidirectional=True):
    assert bidirectional, "Model uses hidden_dim * 2 in the fc layer."
    H = hidden_dim
    k = 1.0 / float(H) ** 0.5

    keys = jax.random.split(key, 3 + n_layers * 2 * 3)
    it = iter(keys)

    def u(shape, kk):
        return jax.random.uniform(kk, shape, jnp.float32, -k, k)

    params = {
        "embedding": jax.random.normal(next(it), (vocab_size, embedding_dim),
                                       jnp.float32),
        "fc_w": u((2 * H, output_dim), next(it)),   # padded/cast in the wrapper
        "fc_b": u((output_dim,), next(it)),
        "lstm_layers": [],
    }
    for layer in range(n_layers):
        d_in = embedding_dim if layer == 0 else 2 * H
        # Weights are in PyTorch gate order (i,f,g,o) on the 4H axis, then
        # permuted to (i,f,o,g) so the kernel sigmoids only 3H columns.
        # NOTE: when importing real PyTorch weights: transpose [4H, D] ->
        # [D, 4H], sum b_ih + b_hh, and apply the same gate permutation to
        # w_ih, w_hh (both directions) and both biases.
        w_ih_f = _reorder_gates_ifog(u((d_in, 4 * H), next(it)))
        w_hh_f = _reorder_gates_ifog(u((H, 4 * H), next(it)))
        b_f = _reorder_gates_ifog(u((1, 4 * H), next(it)))
        w_ih_b = _reorder_gates_ifog(u((d_in, 4 * H), next(it)))
        w_hh_b = _reorder_gates_ifog(u((H, 4 * H), next(it)))
        b_b = _reorder_gates_ifog(u((1, 4 * H), next(it)))
        params["lstm_layers"].append({
            "w_ih_f": w_ih_f.astype(jnp.bfloat16),
            "w_ih_b": w_ih_b.astype(jnp.bfloat16),
            # fwd/bwd recurrent weights concatenated on the gate axis so the
            # kernel does one [2B, H] @ [H, 8H] matmul per timestep.
            "whh_cat": jnp.concatenate([w_hh_f, w_hh_b],
                                       axis=1).astype(jnp.bfloat16),
            "b_f": b_f,
            "b_b": b_b,
        })
    return params


# ----------------------------------------------------------------------------
# Main
# ----------------------------------------------------------------------------

if __name__ == "__main__":
    # Small, forward-consistent shapes.
    VOCAB = 30
    EMB = 32
    HIDDEN = 32
    OUT = 4
    N_LAYERS = 2
    SEQ = 8
    BATCH = 2

    root = jax.random.PRNGKey(0)
    k_params, k_data = jax.random.split(root)

    params = init_params(k_params, VOCAB, EMB, HIDDEN, OUT, N_LAYERS,
                         bidirectional=True)

    # Token ids, time-major [T, B] like PyTorch nn.LSTM default layout.
    x_ids = jax.random.randint(k_data, (SEQ, BATCH), 0, VOCAB, dtype=jnp.int32)

    logits = model_forward(x_ids, params)
    logits = jax.block_until_ready(logits)

    assert logits.shape == (BATCH, OUT), logits.shape
    assert logits.dtype == jnp.float32
    assert bool(jnp.all(jnp.isfinite(logits)))

    print("KERNEL_OK")
</pallas_src>

<mosaic_0001>
module attributes {stable_mosaic.version = 11 : i64} {
  func.func @kernel(%arg0: memref<64x32xbf16, #tpu.memory_space<vmem>>, %arg1: memref<32x128xbf16, #tpu.memory_space<vmem>>, %arg2: memref<32x128xbf16, #tpu.memory_space<vmem>>, %arg3: memref<32x256xbf16, #tpu.memory_space<vmem>>, %arg4: memref<1x128xf32, #tpu.memory_space<vmem>>, %arg5: memref<1x128xf32, #tpu.memory_space<vmem>>, %arg6: memref<64x128xbf16, #tpu.memory_space<vmem>>, %arg7: memref<64x128xbf16, #tpu.memory_space<vmem>>, %arg8: memref<32x256xbf16, #tpu.memory_space<vmem>>, %arg9: memref<1x128xf32, #tpu.memory_space<vmem>>, %arg10: memref<1x128xf32, #tpu.memory_space<vmem>>, %arg11: memref<2x32x128xbf16, #tpu.memory_space<vmem>>, %arg12: memref<1x128xf32, #tpu.memory_space<vmem>>, %arg13: memref<8x128xf32, #tpu.memory_space<vmem>>, %arg14: memref<8x16x128xf32, #tpu.memory_space<vmem>>, %arg15: memref<64x32xf32, #tpu.memory_space<vmem>>, %arg16: memref<64x32xf32, #tpu.memory_space<vmem>>) attributes {dimension_semantics = [], scalar_prefetch = 0 : i64, scratch_operands = 3 : i64, tpu.core_type = #tpu.core_type<tc>} {
    %0 = tpu.iota {dimensions = array<i32: 0>} : vector<16x128xi32>
    %c8_i32 = arith.constant 8 : i32
    %1 = vector.broadcast %c8_i32 : i32 to vector<16x128xi32>
    %2 = arith.cmpi slt, %0, %1 : vector<16x128xi32>
    %c0 = arith.constant 0 : index
    %c0_0 = arith.constant 0 : index
    %3 = vector.load %arg0[%c0, %c0_0] : memref<64x32xbf16, #tpu.memory_space<vmem>>, vector<64x32xbf16>
    %c0_1 = arith.constant 0 : index
    %c0_2 = arith.constant 0 : index
    %4 = vector.load %arg1[%c0_1, %c0_2] : memref<32x128xbf16, #tpu.memory_space<vmem>>, vector<32x128xbf16>
    %cst = arith.constant dense<0.000000e+00> : vector<64x128xf32>
    %5 = tpu.matmul %3, %4, %cst {dimension_numbers = #tpu.dot_dimension_numbers<[1], [0], [0], [1], [0, 0, 1, 1], [], []>} : vector<64x32xbf16>, vector<32x128xbf16>, vector<64x128xf32> -> vector<64x128xf32>
    %c0_3 = arith.constant 0 : index
    %c0_4 = arith.constant 0 : index
    %6 = vector.load %arg4[%c0_3, %c0_4] : memref<1x128xf32, #tpu.memory_space<vmem>>, vector<1x128xf32>
    %7 = vector.broadcast %6 : vector<1x128xf32> to vector<64x128xf32>
    %8 = arith.addf %5, %7 : vector<64x128xf32>
    %c0_5 = arith.constant 0 : index
    %c0_6 = arith.constant 0 : index
    %9 = vector.load %arg2[%c0_5, %c0_6] : memref<32x128xbf16, #tpu.memory_space<vmem>>, vector<32x128xbf16>
    %cst_7 = arith.constant dense<0.000000e+00> : vector<64x128xf32>
    %10 = tpu.matmul %3, %9, %cst_7 {dimension_numbers = #tpu.dot_dimension_numbers<[1], [0], [0], [1], [0, 0, 1, 1], [], []>} : vector<64x32xbf16>, vector<32x128xbf16>, vector<64x128xf32> -> vector<64x128xf32>
    %c0_8 = arith.constant 0 : index
    %c0_9 = arith.constant 0 : index
    %11 = vector.load %arg5[%c0_8, %c0_9] : memref<1x128xf32, #tpu.memory_space<vmem>>, vector<1x128xf32>
    %12 = vector.broadcast %11 : vector<1x128xf32> to vector<64x128xf32>
    %13 = arith.addf %10, %12 : vector<64x128xf32>
    %14 = vector.extract_strided_slice %8 {offsets = [0, 0], sizes = [8, 128], strides = [1, 1]} : vector<64x128xf32> to vector<8x128xf32>
    %c0_10 = arith.constant 0 : index
    %c0_11 = arith.constant 0 : index
    %c0_12 = arith.constant 0 : index
    %15 = vector.load %arg14[%c0_10, %c0_11, %c0_12] : memref<8x16x128xf32, #tpu.memory_space<vmem>>, vector<1x8x128xf32>
    %16 = vector.shape_cast %15 : vector<1x8x128xf32> to vector<8x128xf32>
    %17 = vector.shape_cast %14 : vector<8x128xf32> to vector<1x8x128xf32>
    tpu.vector_store %arg14[%c0_10, %c0_11, %c0_12], %17 {strides = array<i32>} : memref<8x16x128xf32, #tpu.memory_space<vmem>>, vector<1x8x128xf32>,
    %18 = vector.extract_strided_slice %13 {offsets = [56, 0], sizes = [8, 128], strides = [1, 1]} : vector<64x128xf32> to vector<8x128xf32>
    %c0_13 = arith.constant 0 : index
    %c8 = arith.constant 8 : index
    %c0_14 = arith.constant 0 : index
    %19 = vector.load %arg14[%c0_13, %c8, %c0_14] : memref<8x16x128xf32, #tpu.memory_space<vmem>>, vector<1x8x128xf32>
    %20 = vector.shape_cast %19 : vector<1x8x128xf32> to vector<8x128xf32>
    %21 = vector.shape_cast %18 : vector<8x128xf32> to vector<1x8x128xf32>
    tpu.vector_store %arg14[%c0_13, %c8, %c0_14], %21 {strides = array<i32>} : memref<8x16x128xf32, #tpu.memory_space<vmem>>, vector<1x8x128xf32>,
    %22 = vector.extract_strided_slice %8 {offsets = [8, 0], sizes = [8, 128], strides = [1, 1]} : vector<64x128xf32> to vector<8x128xf32>
    %c1 = arith.constant 1 : index
    %c0_15 = arith.constant 0 : index
    %c0_16 = arith.constant 0 : index
    %23 = vector.load %arg14[%c1, %c0_15, %c0_16] : memref<8x16x128xf32, #tpu.memory_space<vmem>>, vector<1x8x128xf32>
    %24 = vector.shape_cast %23 : vector<1x8x128xf32> to vector<8x128xf32>
    %25 = vector.shape_cast %22 : vector<8x128xf32> to vector<1x8x128xf32>
    tpu.vector_store %arg14[%c1, %c0_15, %c0_16], %25 {strides = array<i32>} : memref<8x16x128xf32, #tpu.memory_space<vmem>>, vector<1x8x128xf32>,
    %26 = vector.extract_strided_slice %13 {offsets = [48, 0], sizes = [8, 128], strides = [1, 1]} : vector<64x128xf32> to vector<8x128xf32>
    %c1_17 = arith.constant 1 : index
    %c8_18 = arith.constant 8 : index
    %c0_19 = arith.constant 0 : index
    %27 = vector.load %arg14[%c1_17, %c8_18, %c0_19] : memref<8x16x128xf32, #tpu.memory_space<vmem>>, vector<1x8x128xf32>
    %28 = vector.shape_cast %27 : vector<1x8x128xf32> to vector<8x128xf32>
    %29 = vector.shape_cast %26 : vector<8x128xf32> to vector<1x8x128xf32>
    tpu.vector_store %arg14[%c1_17, %c8_18, %c0_19], %29 {strides = array<i32>} : memref<8x16x128xf32, #tpu.memory_space<vmem>>, vector<1x8x128xf32>,
    %30 = vector.extract_strided_slice %8 {offsets = [16, 0], sizes = [8, 128], strides = [1, 1]} : vector<64x128xf32> to vector<8x128xf32>
    %c2 = arith.constant 2 : index
    %c0_20 = arith.constant 0 : index
    %c0_21 = arith.constant 0 : index
    %31 = vector.load %arg14[%c2, %c0_20, %c0_21] : memref<8x16x128xf32, #tpu.memory_space<vmem>>, vector<1x8x128xf32>
    %32 = vector.shape_cast %31 : vector<1x8x128xf32> to vector<8x128xf32>
    %33 = vector.shape_cast %30 : vector<8x128xf32> to vector<1x8x128xf32>
    tpu.vector_store %arg14[%c2, %c0_20, %c0_21], %33 {strides = array<i32>} : memref<8x16x128xf32, #tpu.memory_space<vmem>>, vector<1x8x128xf32>,
    %34 = vector.extract_strided_slice %13 {offsets = [40, 0], sizes = [8, 128], strides = [1, 1]} : vector<64x128xf32> to vector<8x128xf32>
    %c2_22 = arith.constant 2 : index
    %c8_23 = arith.constant 8 : index
    %c0_24 = arith.constant 0 : index
    %35 = vector.load %arg14[%c2_22, %c8_23, %c0_24] : memref<8x16x128xf32, #tpu.memory_space<vmem>>, vector<1x8x128xf32>
    %36 = vector.shape_cast %35 : vector<1x8x128xf32> to vector<8x128xf32>
    %37 = vector.shape_cast %34 : vector<8x128xf32> to vector<1x8x128xf32>
    tpu.vector_store %arg14[%c2_22, %c8_23, %c0_24], %37 {strides = array<i32>} : memref<8x16x128xf32, #tpu.memory_space<vmem>>, vector<1x8x128xf32>,
    %38 = vector.extract_strided_slice %8 {offsets = [24, 0], sizes = [8, 128], strides = [1, 1]} : vector<64x128xf32> to vector<8x128xf32>
    %c3 = arith.constant 3 : index
    %c0_25 = arith.constant 0 : index
    %c0_26 = arith.constant 0 : index
    %39 = vector.load %arg14[%c3, %c0_25, %c0_26] : memref<8x16x128xf32, #tpu.memory_space<vmem>>, vector<1x8x128xf32>
    %40 = vector.shape_cast %39 : vector<1x8x128xf32> to vector<8x128xf32>
    %41 = vector.shape_cast %38 : vector<8x128xf32> to vector<1x8x128xf32>
    tpu.vector_store %arg14[%c3, %c0_25, %c0_26], %41 {strides = array<i32>} : memref<8x16x128xf32, #tpu.memory_space<vmem>>, vector<1x8x128xf32>,
    %42 = vector.extract_strided_slice %13 {offsets = [32, 0], sizes = [8, 128], strides = [1, 1]} : vector<64x128xf32> to vector<8x128xf32>
    %c3_27 = arith.constant 3 : index
    %c8_28 = arith.constant 8 : index
    %c0_29 = arith.constant 0 : index
    %43 = vector.load %arg14[%c3_27, %c8_28, %c0_29] : memref<8x16x128xf32, #tpu.memory_space<vmem>>, vector<1x8x128xf32>
    %44 = vector.shape_cast %43 : vector<1x8x128xf32> to vector<8x128xf32>
    %45 = vector.shape_cast %42 : vector<8x128xf32> to vector<1x8x128xf32>
    tpu.vector_store %arg14[%c3_27, %c8_28, %c0_29], %45 {strides = array<i32>} : memref<8x16x128xf32, #tpu.memory_space<vmem>>, vector<1x8x128xf32>,
    %46 = vector.extract_strided_slice %8 {offsets = [32, 0], sizes = [8, 128], strides = [1, 1]} : vector<64x128xf32> to vector<8x128xf32>
    %c4 = arith.constant 4 : index
    %c0_30 = arith.constant 0 : index
    %c0_31 = arith.constant 0 : index
    %47 = vector.load %arg14[%c4, %c0_30, %c0_31] : memref<8x16x128xf32, #tpu.memory_space<vmem>>, vector<1x8x128xf32>
    %48 = vector.shape_cast %47 : vector<1x8x128xf32> to vector<8x128xf32>
    %49 = vector.shape_cast %46 : vector<8x128xf32> to vector<1x8x128xf32>
    tpu.vector_store %arg14[%c4, %c0_30, %c0_31], %49 {strides = array<i32>} : memref<8x16x128xf32, #tpu.memory_space<vmem>>, vector<1x8x128xf32>,
    %50 = vector.extract_strided_slice %13 {offsets = [24, 0], sizes = [8, 128], strides = [1, 1]} : vector<64x128xf32> to vector<8x128xf32>
    %c4_32 = arith.constant 4 : index
    %c8_33 = arith.constant 8 : index
    %c0_34 = arith.constant 0 : index
    %51 = vector.load %arg14[%c4_32, %c8_33, %c0_34] : memref<8x16x128xf32, #tpu.memory_space<vmem>>, vector<1x8x128xf32>
    %52 = vector.shape_cast %51 : vector<1x8x128xf32> to vector<8x128xf32>
    %53 = vector.shape_cast %50 : vector<8x128xf32> to vector<1x8x128xf32>
    tpu.vector_store %arg14[%c4_32, %c8_33, %c0_34], %53 {strides = array<i32>} : memref<8x16x128xf32, #tpu.memory_space<vmem>>, vector<1x8x128xf32>,
    %54 = vector.extract_strided_slice %8 {offsets = [40, 0], sizes = [8, 128], strides = [1, 1]} : vector<64x128xf32> to vector<8x128xf32>
    %c5 = arith.constant 5 : index
    %c0_35 = arith.constant 0 : index
    %c0_36 = arith.constant 0 : index
    %55 = vector.load %arg14[%c5, %c0_35, %c0_36] : memref<8x16x128xf32, #tpu.memory_space<vmem>>, vector<1x8x128xf32>
    %56 = vector.shape_cast %55 : vector<1x8x128xf32> to vector<8x128xf32>
    %57 = vector.shape_cast %54 : vector<8x128xf32> to vector<1x8x128xf32>
    tpu.vector_store %arg14[%c5, %c0_35, %c0_36], %57 {strides = array<i32>} : memref<8x16x128xf32, #tpu.memory_space<vmem>>, vector<1x8x128xf32>,
    %58 = vector.extract_strided_slice %13 {offsets = [16, 0], sizes = [8, 128], strides = [1, 1]} : vector<64x128xf32> to vector<8x128xf32>
    %c5_37 = arith.constant 5 : index
    %c8_38 = arith.constant 8 : index
    %c0_39 = arith.constant 0 : index
    %59 = vector.load %arg14[%c5_37, %c8_38, %c0_39] : memref<8x16x128xf32, #tpu.memory_space<vmem>>, vector<1x8x128xf32>
    %60 = vector.shape_cast %59 : vector<1x8x128xf32> to vector<8x128xf32>
    %61 = vector.shape_cast %58 : vector<8x128xf32> to vector<1x8x128xf32>
    tpu.vector_store %arg14[%c5_37, %c8_38, %c0_39], %61 {strides = array<i32>} : memref<8x16x128xf32, #tpu.memory_space<vmem>>, vector<1x8x128xf32>,
    %62 = vector.extract_strided_slice %8 {offsets = [48, 0], sizes = [8, 128], strides = [1, 1]} : vector<64x128xf32> to vector<8x128xf32>
    %c6 = arith.constant 6 : index
    %c0_40 = arith.constant 0 : index
    %c0_41 = arith.constant 0 : index
    %63 = vector.load %arg14[%c6, %c0_40, %c0_41] : memref<8x16x128xf32, #tpu.memory_space<vmem>>, vector<1x8x128xf32>
    %64 = vector.shape_cast %63 : vector<1x8x128xf32> to vector<8x128xf32>
    %65 = vector.shape_cast %62 : vector<8x128xf32> to vector<1x8x128xf32>
    tpu.vector_store %arg14[%c6, %c0_40, %c0_41], %65 {strides = array<i32>} : memref<8x16x128xf32, #tpu.memory_space<vmem>>, vector<1x8x128xf32>,
    %66 = vector.extract_strided_slice %13 {offsets = [8, 0], sizes = [8, 128], strides = [1, 1]} : vector<64x128xf32> to vector<8x128xf32>
    %c6_42 = arith.constant 6 : index
    %c8_43 = arith.constant 8 : index
    %c0_44 = arith.constant 0 : index
    %67 = vector.load %arg14[%c6_42, %c8_43, %c0_44] : memref<8x16x128xf32, #tpu.memory_space<vmem>>, vector<1x8x128xf32>
    %68 = vector.shape_cast %67 : vector<1x8x128xf32> to vector<8x128xf32>
    %69 = vector.shape_cast %66 : vector<8x128xf32> to vector<1x8x128xf32>
    tpu.vector_store %arg14[%c6_42, %c8_43, %c0_44], %69 {strides = array<i32>} : memref<8x16x128xf32, #tpu.memory_space<vmem>>, vector<1x8x128xf32>,
    %70 = vector.extract_strided_slice %8 {offsets = [56, 0], sizes = [8, 128], strides = [1, 1]} : vector<64x128xf32> to vector<8x128xf32>
    %c7 = arith.constant 7 : index
    %c0_45 = arith.constant 0 : index
    %c0_46 = arith.constant 0 : index
    %71 = vector.load %arg14[%c7, %c0_45, %c0_46] : memref<8x16x128xf32, #tpu.memory_space<vmem>>, vector<1x8x128xf32>
    %72 = vector.shape_cast %71 : vector<1x8x128xf32> to vector<8x128xf32>
    %73 = vector.shape_cast %70 : vector<8x128xf32> to vector<1x8x128xf32>
    tpu.vector_store %arg14[%c7, %c0_45, %c0_46], %73 {strides = array<i32>} : memref<8x16x128xf32, #tpu.memory_space<vmem>>, vector<1x8x128xf32>,
    %74 = vector.extract_strided_slice %13 {offsets = [0, 0], sizes = [8, 128], strides = [1, 1]} : vector<64x128xf32> to vector<8x128xf32>
    %c7_47 = arith.constant 7 : index
    %c8_48 = arith.constant 8 : index
    %c0_49 = arith.constant 0 : index
    %75 = vector.load %arg14[%c7_47, %c8_48, %c0_49] : memref<8x16x128xf32, #tpu.memory_space<vmem>>, vector<1x8x128xf32>
    %76 = vector.shape_cast %75 : vector<1x8x128xf32> to vector<8x128xf32>
    %77 = vector.shape_cast %74 : vector<8x128xf32> to vector<1x8x128xf32>
    tpu.vector_store %arg14[%c7_47, %c8_48, %c0_49], %77 {strides = array<i32>} : memref<8x16x128xf32, #tpu.memory_space<vmem>>, vector<1x8x128xf32>,
    %c0_50 = arith.constant 0 : index
    %c0_51 = arith.constant 0 : index
    %78 = vector.load %arg3[%c0_50, %c0_51] : memref<32x256xbf16, #tpu.memory_space<vmem>>, vector<32x256xbf16>
    %cst_52 = arith.constant 0.000000e+00 : f32
    %79 = vector.broadcast %cst_52 : f32 to vector<16x32xf32>
    %cst_53 = arith.constant 0.000000e+00 : f32
    %80 = vector.broadcast %cst_53 : f32 to vector<16x32xf32>
    %81 = arith.truncf %79 : vector<16x32xf32> to vector<16x32xbf16>
    %cst_54 = arith.constant dense<0.000000e+00> : vector<16x256xf32>
    %82 = tpu.matmul %81, %78, %cst_54 {dimension_numbers = #tpu.dot_dimension_numbers<[1], [0], [0], [1], [0, 0, 1, 1], [], []>} : vector<16x32xbf16>, vector<32x256xbf16>, vector<16x256xf32> -> vector<16x256xf32>
    %83 = vector.extract_strided_slice %82 {offsets = [0, 0], sizes = [16, 128], strides = [1, 1]} : vector<16x256xf32> to vector<16x128xf32>
    %84 = vector.extract_strided_slice %82 {offsets = [0, 128], sizes = [16, 128], strides = [1, 1]} : vector<16x256xf32> to vector<16x128xf32>
    %85 = arith.select %2, %83, %84 : vector<16x128xi1>, vector<16x128xf32>
    %c0_55 = arith.constant 0 : index
    %c0_56 = arith.constant 0 : index
    %c0_57 = arith.constant 0 : index
    %86 = vector.load %arg14[%c0_55, %c0_56, %c0_57] : memref<8x16x128xf32, #tpu.memory_space<vmem>>, vector<1x16x128xf32>
    %87 = vector.shape_cast %86 : vector<1x16x128xf32> to vector<16x128xf32>
    %88 = arith.addf %85, %87 : vector<16x128xf32>
    %89 = vector.extract_strided_slice %88 {offsets = [0, 0], sizes = [16, 96], strides = [1, 1]} : vector<16x128xf32> to vector<16x96xf32>
    %90 = arith.negf %89 : vector<16x96xf32>
    %91 = math.exp %90 : vector<16x96xf32>
    %cst_58 = arith.constant 1.000000e+00 : f32
    %92 = vector.broadcast %cst_58 : f32 to vector<16x96xf32>
    %93 = arith.addf %92, %91 : vector<16x96xf32>
    %94 = arith.divf %92, %93 : vector<16x96xf32>
    %95 = vector.extract_strided_slice %94 {offsets = [0, 0], sizes = [16, 32], strides = [1, 1]} : vector<16x96xf32> to vector<16x32xf32>
    %96 = vector.extract_strided_slice %94 {offsets = [0, 32], sizes = [16, 32], strides = [1, 1]} : vector<16x96xf32> to vector<16x32xf32>
    %97 = vector.extract_strided_slice %94 {offsets = [0, 64], sizes = [16, 32], strides = [1, 1]} : vector<16x96xf32> to vector<16x32xf32>
    %98 = vector.extract_strided_slice %88 {offsets = [0, 96], sizes = [16, 32], strides = [1, 1]} : vector<16x128xf32> to vector<16x32xf32>
    %99 = math.tanh %98 : vector<16x32xf32>
    %100 = arith.mulf %96, %80 : vector<16x32xf32>
    %101 = arith.mulf %95, %99 : vector<16x32xf32>
    %102 = arith.addf %100, %101 : vector<16x32xf32>
    %103 = math.tanh %102 : vector<16x32xf32>
    %104 = arith.mulf %97, %103 : vector<16x32xf32>
    %105 = vector.extract_strided_slice %104 {offsets = [0, 0], sizes = [8, 32], strides = [1, 1]} : vector<16x32xf32> to vector<8x32xf32>
    %c0_59 = arith.constant 0 : index
    %c0_60 = arith.constant 0 : index
    %106 = vector.load %arg15[%c0_59, %c0_60] : memref<64x32xf32, #tpu.memory_space<vmem>>, vector<8x32xf32>
    tpu.vector_store %arg15[%c0_59, %c0_60], %105 {strides = array<i32>} : memref<64x32xf32, #tpu.memory_space<vmem>>, vector<8x32xf32>,
    %107 = vector.extract_strided_slice %104 {offsets = [8, 0], sizes = [8, 32], strides = [1, 1]} : vector<16x32xf32> to vector<8x32xf32>
    %c56 = arith.constant 56 : index
    %c0_61 = arith.constant 0 : index
    %108 = vector.load %arg16[%c56, %c0_61] : memref<64x32xf32, #tpu.memory_space<vmem>>, vector<8x32xf32>
    tpu.vector_store %arg16[%c56, %c0_61], %107 {strides = array<i32>} : memref<64x32xf32, #tpu.memory_space<vmem>>, vector<8x32xf32>,
    %109 = arith.truncf %104 : vector<16x32xf32> to vector<16x32xbf16>
    %cst_62 = arith.constant dense<0.000000e+00> : vector<16x256xf32>
    %110 = tpu.matmul %109, %78, %cst_62 {dimension_numbers = #tpu.dot_dimension_numbers<[1], [0], [0], [1], [0, 0, 1, 1], [], []>} : vector<16x32xbf16>, vector<32x256xbf16>, vector<16x256xf32> -> vector<16x256xf32>
    %111 = vector.extract_strided_slice %110 {offsets = [0, 0], sizes = [16, 128], strides = [1, 1]} : vector<16x256xf32> to vector<16x128xf32>
    %112 = vector.extract_strided_slice %110 {offsets = [0, 128], sizes = [16, 128], strides = [1, 1]} : vector<16x256xf32> to vector<16x128xf32>
    %113 = arith.select %2, %111, %112 : vector<16x128xi1>, vector<16x128xf32>
    %c1_63 = arith.constant 1 : index
    %c0_64 = arith.constant 0 : index
    %c0_65 = arith.constant 0 : index
    %114 = vector.load %arg14[%c1_63, %c0_64, %c0_65] : memref<8x16x128xf32, #tpu.memory_space<vmem>>, vector<1x16x128xf32>
    %115 = vector.shape_cast %114 : vector<1x16x128xf32> to vector<16x128xf32>
    %116 = arith.addf %113, %115 : vector<16x128xf32>
    %117 = vector.extract_strided_slice %116 {offsets = [0, 0], sizes = [16, 96], strides = [1, 1]} : vector<16x128xf32> to vector<16x96xf32>
    %118 = arith.negf %117 : vector<16x96xf32>
    %119 = math.exp %118 : vector<16x96xf32>
    %cst_66 = arith.constant 1.000000e+00 : f32
    %120 = vector.broadcast %cst_66 : f32 to vector<16x96xf32>
    %121 = arith.addf %120, %119 : vector<16x96xf32>
    %122 = arith.divf %120, %121 : vector<16x96xf32>
    %123 = vector.extract_strided_slice %122 {offsets = [0, 0], sizes = [16, 32], strides = [1, 1]} : vector<16x96xf32> to vector<16x32xf32>
    %124 = vector.extract_strided_slice %122 {offsets = [0, 32], sizes = [16, 32], strides = [1, 1]} : vector<16x96xf32> to vector<16x32xf32>
    %125 = vector.extract_strided_slice %122 {offsets = [0, 64], sizes = [16, 32], strides = [1, 1]} : vector<16x96xf32> to vector<16x32xf32>
    %126 = vector.extract_strided_slice %116 {offsets = [0, 96], sizes = [16, 32], strides = [1, 1]} : vector<16x128xf32> to vector<16x32xf32>
    %127 = math.tanh %126 : vector<16x32xf32>
    %128 = arith.mulf %124, %102 : vector<16x32xf32>
    %129 = arith.mulf %123, %127 : vector<16x32xf32>
    %130 = arith.addf %128, %129 : vector<16x32xf32>
    %131 = math.tanh %130 : vector<16x32xf32>
    %132 = arith.mulf %125, %131 : vector<16x32xf32>
    %133 = vector.extract_strided_slice %132 {offsets = [0, 0], sizes = [8, 32], strides = [1, 1]} : vector<16x32xf32> to vector<8x32xf32>
    %c8_67 = arith.constant 8 : index
    %c0_68 = arith.constant 0 : index
    %134 = vector.load %arg15[%c8_67, %c0_68] : memref<64x32xf32, #tpu.memory_space<vmem>>, vector<8x32xf32>
    tpu.vector_store %arg15[%c8_67, %c0_68], %133 {strides = array<i32>} : memref<64x32xf32, #tpu.memory_space<vmem>>, vector<8x32xf32>,
    %135 = vector.extract_strided_slice %132 {offsets = [8, 0], sizes = [8, 32], strides = [1, 1]} : vector<16x32xf32> to vector<8x32xf32>
    %c48 = arith.constant 48 : index
    %c0_69 = arith.constant 0 : index
    %136 = vector.load %arg16[%c48, %c0_69] : memref<64x32xf32, #tpu.memory_space<vmem>>, vector<8x32xf32>
    tpu.vector_store %arg16[%c48, %c0_69], %135 {strides = array<i32>} : memref<64x32xf32, #tpu.memory_space<vmem>>, vector<8x32xf32>,
    %137 = arith.truncf %132 : vector<16x32xf32> to vector<16x32xbf16>
    %cst_70 = arith.constant dense<0.000000e+00> : vector<16x256xf32>
    %138 = tpu.matmul %137, %78, %cst_70 {dimension_numbers = #tpu.dot_dimension_numbers<[1], [0], [0], [1], [0, 0, 1, 1], [], []>} : vector<16x32xbf16>, vector<32x256xbf16>, vector<16x256xf32> -> vector<16x256xf32>
    %139 = vector.extract_strided_slice %138 {offsets = [0, 0], sizes = [16, 128], strides = [1, 1]} : vector<16x256xf32> to vector<16x128xf32>
    %140 = vector.extract_strided_slice %138 {offsets = [0, 128], sizes = [16, 128], strides = [1, 1]} : vector<16x256xf32> to vector<16x128xf32>
    %141 = arith.select %2, %139, %140 : vector<16x128xi1>, vector<16x128xf32>
    %c2_71 = arith.constant 2 : index
    %c0_72 = arith.constant 0 : index
    %c0_73 = arith.constant 0 : index
    %142 = vector.load %arg14[%c2_71, %c0_72, %c0_73] : memref<8x16x128xf32, #tpu.memory_space<vmem>>, vector<1x16x128xf32>
    %143 = vector.shape_cast %142 : vector<1x16x128xf32> to vector<16x128xf32>
    %144 = arith.addf %141, %143 : vector<16x128xf32>
    %145 = vector.extract_strided_slice %144 {offsets = [0, 0], sizes = [16, 96], strides = [1, 1]} : vector<16x128xf32> to vector<16x96xf32>
    %146 = arith.negf %145 : vector<16x96xf32>
    %147 = math.exp %146 : vector<16x96xf32>
    %cst_74 = arith.constant 1.000000e+00 : f32
    %148 = vector.broadcast %cst_74 : f32 to vector<16x96xf32>
    %149 = arith.addf %148, %147 : vector<16x96xf32>
    %150 = arith.divf %148, %149 : vector<16x96xf32>
    %151 = vector.extract_strided_slice %150 {offsets = [0, 0], sizes = [16, 32], strides = [1, 1]} : vector<16x96xf32> to vector<16x32xf32>
    %152 = vector.extract_strided_slice %150 {offsets = [0, 32], sizes = [16, 32], strides = [1, 1]} : vector<16x96xf32> to vector<16x32xf32>
    %153 = vector.extract_strided_slice %150 {offsets = [0, 64], sizes = [16, 32], strides = [1, 1]} : vector<16x96xf32> to vector<16x32xf32>
    %154 = vector.extract_strided_slice %144 {offsets = [0, 96], sizes = [16, 32], strides = [1, 1]} : vector<16x128xf32> to vector<16x32xf32>
    %155 = math.tanh %154 : vector<16x32xf32>
    %156 = arith.mulf %152, %130 : vector<16x32xf32>
    %157 = arith.mulf %151, %155 : vector<16x32xf32>
    %158 = arith.addf %156, %157 : vector<16x32xf32>
    %159 = math.tanh %158 : vector<16x32xf32>
    %160 = arith.mulf %153, %159 : vector<16x32xf32>
    %161 = vector.extract_strided_slice %160 {offsets = [0, 0], sizes = [8, 32], strides = [1, 1]} : vector<16x32xf32> to vector<8x32xf32>
    %c16 = arith.constant 16 : index
    %c0_75 = arith.constant 0 : index
    %162 = vector.load %arg15[%c16, %c0_75] : memref<64x32xf32, #tpu.memory_space<vmem>>, vector<8x32xf32>
    tpu.vector_store %arg15[%c16, %c0_75], %161 {strides = array<i32>} : memref<64x32xf32, #tpu.memory_space<vmem>>, vector<8x32xf32>,
    %163 = vector.extract_strided_slice %160 {offsets = [8, 0], sizes = [8, 32], strides = [1, 1]} : vector<16x32xf32> to vector<8x32xf32>
    %c40 = arith.constant 40 : index
    %c0_76 = arith.constant 0 : index
    %164 = vector.load %arg16[%c40, %c0_76] : memref<64x32xf32, #tpu.memory_space<vmem>>, vector<8x32xf32>
    tpu.vector_store %arg16[%c40, %c0_76], %163 {strides = array<i32>} : memref<64x32xf32, #tpu.memory_space<vmem>>, vector<8x32xf32>,
    %165 = arith.truncf %160 : vector<16x32xf32> to vector<16x32xbf16>
    %cst_77 = arith.constant dense<0.000000e+00> : vector<16x256xf32>
    %166 = tpu.matmul %165, %78, %cst_77 {dimension_numbers = #tpu.dot_dimension_numbers<[1], [0], [0], [1], [0, 0, 1, 1], [], []>} : vector<16x32xbf16>, vector<32x256xbf16>, vector<16x256xf32> -> vector<16x256xf32>
    %167 = vector.extract_strided_slice %166 {offsets = [0, 0], sizes = [16, 128], strides = [1, 1]} : vector<16x256xf32> to vector<16x128xf32>
    %168 = vector.extract_strided_slice %166 {offsets = [0, 128], sizes = [16, 128], strides = [1, 1]} : vector<16x256xf32> to vector<16x128xf32>
    %169 = arith.select %2, %167, %168 : vector<16x128xi1>, vector<16x128xf32>
    %c3_78 = arith.constant 3 : index
    %c0_79 = arith.constant 0 : index
    %c0_80 = arith.constant 0 : index
    %170 = vector.load %arg14[%c3_78, %c0_79, %c0_80] : memref<8x16x128xf32, #tpu.memory_space<vmem>>, vector<1x16x128xf32>
    %171 = vector.shape_cast %170 : vector<1x16x128xf32> to vector<16x128xf32>
    %172 = arith.addf %169, %171 : vector<16x128xf32>
    %173 = vector.extract_strided_slice %172 {offsets = [0, 0], sizes = [16, 96], strides = [1, 1]} : vector<16x128xf32> to vector<16x96xf32>
    %174 = arith.negf %173 : vector<16x96xf32>
    %175 = math.exp %174 : vector<16x96xf32>
    %cst_81 = arith.constant 1.000000e+00 : f32
    %176 = vector.broadcast %cst_81 : f32 to vector<16x96xf32>
    %177 = arith.addf %176, %175 : vector<16x96xf32>
    %178 = arith.divf %176, %177 : vector<16x96xf32>
    %179 = vector.extract_strided_slice %178 {offsets = [0, 0], sizes = [16, 32], strides = [1, 1]} : vector<16x96xf32> to vector<16x32xf32>
    %180 = vector.extract_strided_slice %178 {offsets = [0, 32], sizes = [16, 32], strides = [1, 1]} : vector<16x96xf32> to vector<16x32xf32>
    %181 = vector.extract_strided_slice %178 {offsets = [0, 64], sizes = [16, 32], strides = [1, 1]} : vector<16x96xf32> to vector<16x32xf32>
    %182 = vector.extract_strided_slice %172 {offsets = [0, 96], sizes = [16, 32], strides = [1, 1]} : vector<16x128xf32> to vector<16x32xf32>
    %183 = math.tanh %182 : vector<16x32xf32>
    %184 = arith.mulf %180, %158 : vector<16x32xf32>
    %185 = arith.mulf %179, %183 : vector<16x32xf32>
    %186 = arith.addf %184, %185 : vector<16x32xf32>
    %187 = math.tanh %186 : vector<16x32xf32>
    %188 = arith.mulf %181, %187 : vector<16x32xf32>
    %189 = vector.extract_strided_slice %188 {offsets = [0, 0], sizes = [8, 32], strides = [1, 1]} : vector<16x32xf32> to vector<8x32xf32>
    %c24 = arith.constant 24 : index
    %c0_82 = arith.constant 0 : index
    %190 = vector.load %arg15[%c24, %c0_82] : memref<64x32xf32, #tpu.memory_space<vmem>>, vector<8x32xf32>
    tpu.vector_store %arg15[%c24, %c0_82], %189 {strides = array<i32>} : memref<64x32xf32, #tpu.memory_space<vmem>>, vector<8x32xf32>,
    %191 = vector.extract_strided_slice %188 {offsets = [8, 0], sizes = [8, 32], strides = [1, 1]} : vector<16x32xf32> to vector<8x32xf32>
    %c32 = arith.constant 32 : index
    %c0_83 = arith.constant 0 : index
    %192 = vector.load %arg16[%c32, %c0_83] : memref<64x32xf32, #tpu.memory_space<vmem>>, vector<8x32xf32>
    tpu.vector_store %arg16[%c32, %c0_83], %191 {strides = array<i32>} : memref<64x32xf32, #tpu.memory_space<vmem>>, vector<8x32xf32>,
    %193 = arith.truncf %188 : vector<16x32xf32> to vector<16x32xbf16>
    %cst_84 = arith.constant dense<0.000000e+00> : vector<16x256xf32>
    %194 = tpu.matmul %193, %78, %cst_84 {dimension_numbers = #tpu.dot_dimension_numbers<[1], [0], [0], [1], [0, 0, 1, 1], [], []>} : vector<16x32xbf16>, vector<32x256xbf16>, vector<16x256xf32> -> vector<16x256xf32>
    %195 = vector.extract_strided_slice %194 {offsets = [0, 0], sizes = [16, 128], strides = [1, 1]} : vector<16x256xf32> to vector<16x128xf32>
    %196 = vector.extract_strided_slice %194 {offsets = [0, 128], sizes = [16, 128], strides = [1, 1]} : vector<16x256xf32> to vector<16x128xf32>
    %197 = arith.select %2, %195, %196 : vector<16x128xi1>, vector<16x128xf32>
    %c4_85 = arith.constant 4 : index
    %c0_86 = arith.constant 0 : index
    %c0_87 = arith.constant 0 : index
    %198 = vector.load %arg14[%c4_85, %c0_86, %c0_87] : memref<8x16x128xf32, #tpu.memory_space<vmem>>, vector<1x16x128xf32>
    %199 = vector.shape_cast %198 : vector<1x16x128xf32> to vector<16x128xf32>
    %200 = arith.addf %197, %199 : vector<16x128xf32>
    %201 = vector.extract_strided_slice %200 {offsets = [0, 0], sizes = [16, 96], strides = [1, 1]} : vector<16x128xf32> to vector<16x96xf32>
    %202 = arith.negf %201 : vector<16x96xf32>
    %203 = math.exp %202 : vector<16x96xf32>
    %cst_88 = arith.constant 1.000000e+00 : f32
    %204 = vector.broadcast %cst_88 : f32 to vector<16x96xf32>
    %205 = arith.addf %204, %203 : vector<16x96xf32>
    %206 = arith.divf %204, %205 : vector<16x96xf32>
    %207 = vector.extract_strided_slice %206 {offsets = [0, 0], sizes = [16, 32], strides = [1, 1]} : vector<16x96xf32> to vector<16x32xf32>
    %208 = vector.extract_strided_slice %206 {offsets = [0, 32], sizes = [16, 32], strides = [1, 1]} : vector<16x96xf32> to vector<16x32xf32>
    %209 = vector.extract_strided_slice %206 {offsets = [0, 64], sizes = [16, 32], strides = [1, 1]} : vector<16x96xf32> to vector<16x32xf32>
    %210 = vector.extract_strided_slice %200 {offsets = [0, 96], sizes = [16, 32], strides = [1, 1]} : vector<16x128xf32> to vector<16x32xf32>
    %211 = math.tanh %210 : vector<16x32xf32>
    %212 = arith.mulf %208, %186 : vector<16x32xf32>
    %213 = arith.mulf %207, %211 : vector<16x32xf32>
    %214 = arith.addf %212, %213 : vector<16x32xf32>
    %215 = math.tanh %214 : vector<16x32xf32>
    %216 = arith.mulf %209, %215 : vector<16x32xf32>
    %217 = vector.extract_strided_slice %216 {offsets = [0, 0], sizes = [8, 32], strides = [1, 1]} : vector<16x32xf32> to vector<8x32xf32>
    %c32_89 = arith.constant 32 : index
    %c0_90 = arith.constant 0 : index
    %218 = vector.load %arg15[%c32_89, %c0_90] : memref<64x32xf32, #tpu.memory_space<vmem>>, vector<8x32xf32>
    tpu.vector_store %arg15[%c32_89, %c0_90], %217 {strides = array<i32>} : memref<64x32xf32, #tpu.memory_space<vmem>>, vector<8x32xf32>,
    %219 = vector.extract_strided_slice %216 {offsets = [8, 0], sizes = [8, 32], strides = [1, 1]} : vector<16x32xf32> to vector<8x32xf32>
    %c24_91 = arith.constant 24 : index
    %c0_92 = arith.constant 0 : index
    %220 = vector.load %arg16[%c24_91, %c0_92] : memref<64x32xf32, #tpu.memory_space<vmem>>, vector<8x32xf32>
    tpu.vector_store %arg16[%c24_91, %c0_92], %219 {strides = array<i32>} : memref<64x32xf32, #tpu.memory_space<vmem>>, vector<8x32xf32>,
    %221 = arith.truncf %216 : vector<16x32xf32> to vector<16x32xbf16>
    %cst_93 = arith.constant dense<0.000000e+00> : vector<16x256xf32>
    %222 = tpu.matmul %221, %78, %cst_93 {dimension_numbers = #tpu.dot_dimension_numbers<[1], [0], [0], [1], [0, 0, 1, 1], [], []>} : vector<16x32xbf16>, vector<32x256xbf16>, vector<16x256xf32> -> vector<16x256xf32>
    %223 = vector.extract_strided_slice %222 {offsets = [0, 0], sizes = [16, 128], strides = [1, 1]} : vector<16x256xf32> to vector<16x128xf32>
    %224 = vector.extract_strided_slice %222 {offsets = [0, 128], sizes = [16, 128], strides = [1, 1]} : vector<16x256xf32> to vector<16x128xf32>
    %225 = arith.select %2, %223, %224 : vector<16x128xi1>, vector<16x128xf32>
    %c5_94 = arith.constant 5 : index
    %c0_95 = arith.constant 0 : index
    %c0_96 = arith.constant 0 : index
    %226 = vector.load %arg14[%c5_94, %c0_95, %c0_96] : memref<8x16x128xf32, #tpu.memory_space<vmem>>, vector<1x16x128xf32>
    %227 = vector.shape_cast %226 : vector<1x16x128xf32> to vector<16x128xf32>
    %228 = arith.addf %225, %227 : vector<16x128xf32>
    %229 = vector.extract_strided_slice %228 {offsets = [0, 0], sizes = [16, 96], strides = [1, 1]} : vector<16x128xf32> to vector<16x96xf32>
    %230 = arith.negf %229 : vector<16x96xf32>
    %231 = math.exp %230 : vector<16x96xf32>
    %cst_97 = arith.constant 1.000000e+00 : f32
    %232 = vector.broadcast %cst_97 : f32 to vector<16x96xf32>
    %233 = arith.addf %232, %231 : vector<16x96xf32>
    %234 = arith.divf %232, %233 : vector<16x96xf32>
    %235 = vector.extract_strided_slice %234 {offsets = [0, 0], sizes = [16, 32], strides = [1, 1]} : vector<16x96xf32> to vector<16x32xf32>
    %236 = vector.extract_strided_slice %234 {offsets = [0, 32], sizes = [16, 32], strides = [1, 1]} : vector<16x96xf32> to vector<16x32xf32>
    %237 = vector.extract_strided_slice %234 {offsets = [0, 64], sizes = [16, 32], strides = [1, 1]} : vector<16x96xf32> to vector<16x32xf32>
    %238 = vector.extract_strided_slice %228 {offsets = [0, 96], sizes = [16, 32], strides = [1, 1]} : vector<16x128xf32> to vector<16x32xf32>
    %239 = math.tanh %238 : vector<16x32xf32>
    %240 = arith.mulf %236, %214 : vector<16x32xf32>
    %241 = arith.mulf %235, %239 : vector<16x32xf32>
    %242 = arith.addf %240, %241 : vector<16x32xf32>
    %243 = math.tanh %242 : vector<16x32xf32>
    %244 = arith.mulf %237, %243 : vector<16x32xf32>
    %245 = vector.extract_strided_slice %244 {offsets = [0, 0], sizes = [8, 32], strides = [1, 1]} : vector<16x32xf32> to vector<8x32xf32>
    %c40_98 = arith.constant 40 : index
    %c0_99 = arith.constant 0 : index
    %246 = vector.load %arg15[%c40_98, %c0_99] : memref<64x32xf32, #tpu.memory_space<vmem>>, vector<8x32xf32>
    tpu.vector_store %arg15[%c40_98, %c0_99], %245 {strides = array<i32>} : memref<64x32xf32, #tpu.memory_space<vmem>>, vector<8x32xf32>,
    %247 = vector.extract_strided_slice %244 {offsets = [8, 0], sizes = [8, 32], strides = [1, 1]} : vector<16x32xf32> to vector<8x32xf32>
    %c16_100 = arith.constant 16 : index
    %c0_101 = arith.constant 0 : index
    %248 = vector.load %arg16[%c16_100, %c0_101] : memref<64x32xf32, #tpu.memory_space<vmem>>, vector<8x32xf32>
    tpu.vector_store %arg16[%c16_100, %c0_101], %247 {strides = array<i32>} : memref<64x32xf32, #tpu.memory_space<vmem>>, vector<8x32xf32>,
    %249 = arith.truncf %244 : vector<16x32xf32> to vector<16x32xbf16>
    %cst_102 = arith.constant dense<0.000000e+00> : vector<16x256xf32>
    %250 = tpu.matmul %249, %78, %cst_102 {dimension_numbers = #tpu.dot_dimension_numbers<[1], [0], [0], [1], [0, 0, 1, 1], [], []>} : vector<16x32xbf16>, vector<32x256xbf16>, vector<16x256xf32> -> vector<16x256xf32>
    %251 = vector.extract_strided_slice %250 {offsets = [0, 0], sizes = [16, 128], strides = [1, 1]} : vector<16x256xf32> to vector<16x128xf32>
    %252 = vector.extract_strided_slice %250 {offsets = [0, 128], sizes = [16, 128], strides = [1, 1]} : vector<16x256xf32> to vector<16x128xf32>
    %253 = arith.select %2, %251, %252 : vector<16x128xi1>, vector<16x128xf32>
    %c6_103 = arith.constant 6 : index
    %c0_104 = arith.constant 0 : index
    %c0_105 = arith.constant 0 : index
    %254 = vector.load %arg14[%c6_103, %c0_104, %c0_105] : memref<8x16x128xf32, #tpu.memory_space<vmem>>, vector<1x16x128xf32>
    %255 = vector.shape_cast %254 : vector<1x16x128xf32> to vector<16x128xf32>
    %256 = arith.addf %253, %255 : vector<16x128xf32>
    %257 = vector.extract_strided_slice %256 {offsets = [0, 0], sizes = [16, 96], strides = [1, 1]} : vector<16x128xf32> to vector<16x96xf32>
    %258 = arith.negf %257 : vector<16x96xf32>
    %259 = math.exp %258 : vector<16x96xf32>
    %cst_106 = arith.constant 1.000000e+00 : f32
    %260 = vector.broadcast %cst_106 : f32 to vector<16x96xf32>
    %261 = arith.addf %260, %259 : vector<16x96xf32>
    %262 = arith.divf %260, %261 : vector<16x96xf32>
    %263 = vector.extract_strided_slice %262 {offsets = [0, 0], sizes = [16, 32], strides = [1, 1]} : vector<16x96xf32> to vector<16x32xf32>
    %264 = vector.extract_strided_slice %262 {offsets = [0, 32], sizes = [16, 32], strides = [1, 1]} : vector<16x96xf32> to vector<16x32xf32>
    %265 = vector.extract_strided_slice %262 {offsets = [0, 64], sizes = [16, 32], strides = [1, 1]} : vector<16x96xf32> to vector<16x32xf32>
    %266 = vector.extract_strided_slice %256 {offsets = [0, 96], sizes = [16, 32], strides = [1, 1]} : vector<16x128xf32> to vector<16x32xf32>
    %267 = math.tanh %266 : vector<16x32xf32>
    %268 = arith.mulf %264, %242 : vector<16x32xf32>
    %269 = arith.mulf %263, %267 : vector<16x32xf32>
    %270 = arith.addf %268, %269 : vector<16x32xf32>
    %271 = math.tanh %270 : vector<16x32xf32>
    %272 = arith.mulf %265, %271 : vector<16x32xf32>
    %273 = vector.extract_strided_slice %272 {offsets = [0, 0], sizes = [8, 32], strides = [1, 1]} : vector<16x32xf32> to vector<8x32xf32>
    %c48_107 = arith.constant 48 : index
    %c0_108 = arith.constant 0 : index
    %274 = vector.load %arg15[%c48_107, %c0_108] : memref<64x32xf32, #tpu.memory_space<vmem>>, vector<8x32xf32>
    tpu.vector_store %arg15[%c48_107, %c0_108], %273 {strides = array<i32>} : memref<64x32xf32, #tpu.memory_space<vmem>>, vector<8x32xf32>,
    %275 = vector.extract_strided_slice %272 {offsets = [8, 0], sizes = [8, 32], strides = [1, 1]} : vector<16x32xf32> to vector<8x32xf32>
    %c8_109 = arith.constant 8 : index
    %c0_110 = arith.constant 0 : index
    %276 = vector.load %arg16[%c8_109, %c0_110] : memref<64x32xf32, #tpu.memory_space<vmem>>, vector<8x32xf32>
    tpu.vector_store %arg16[%c8_109, %c0_110], %275 {strides = array<i32>} : memref<64x32xf32, #tpu.memory_space<vmem>>, vector<8x32xf32>,
    %277 = arith.truncf %272 : vector<16x32xf32> to vector<16x32xbf16>
    %cst_111 = arith.constant dense<0.000000e+00> : vector<16x256xf32>
    %278 = tpu.matmul %277, %78, %cst_111 {dimension_numbers = #tpu.dot_dimension_numbers<[1], [0], [0], [1], [0, 0, 1, 1], [], []>} : vector<16x32xbf16>, vector<32x256xbf16>, vector<16x256xf32> -> vector<16x256xf32>
    %279 = vector.extract_strided_slice %278 {offsets = [0, 0], sizes = [16, 128], strides = [1, 1]} : vector<16x256xf32> to vector<16x128xf32>
    %280 = vector.extract_strided_slice %278 {offsets = [0, 128], sizes = [16, 128], strides = [1, 1]} : vector<16x256xf32> to vector<16x128xf32>
    %281 = arith.select %2, %279, %280 : vector<16x128xi1>, vector<16x128xf32>
    %c7_112 = arith.constant 7 : index
    %c0_113 = arith.constant 0 : index
    %c0_114 = arith.constant 0 : index
    %282 = vector.load %arg14[%c7_112, %c0_113, %c0_114] : memref<8x16x128xf32, #tpu.memory_space<vmem>>, vector<1x16x128xf32>
    %283 = vector.shape_cast %282 : vector<1x16x128xf32> to vector<16x128xf32>
    %284 = arith.addf %281, %283 : vector<16x128xf32>
    %285 = vector.extract_strided_slice %284 {offsets = [0, 0], sizes = [16, 96], strides = [1, 1]} : vector<16x128xf32> to vector<16x96xf32>
    %286 = arith.negf %285 : vector<16x96xf32>
    %287 = math.exp %286 : vector<16x96xf32>
    %cst_115 = arith.constant 1.000000e+00 : f32
    %288 = vector.broadcast %cst_115 : f32 to vector<16x96xf32>
    %289 = arith.addf %288, %287 : vector<16x96xf32>
    %290 = arith.divf %288, %289 : vector<16x96xf32>
    %291 = vector.extract_strided_slice %290 {offsets = [0, 0], sizes = [16, 32], strides = [1, 1]} : vector<16x96xf32> to vector<16x32xf32>
    %292 = vector.extract_strided_slice %290 {offsets = [0, 32], sizes = [16, 32], strides = [1, 1]} : vector<16x96xf32> to vector<16x32xf32>
    %293 = vector.extract_strided_slice %290 {offsets = [0, 64], sizes = [16, 32], strides = [1, 1]} : vector<16x96xf32> to vector<16x32xf32>
    %294 = vector.extract_strided_slice %284 {offsets = [0, 96], sizes = [16, 32], strides = [1, 1]} : vector<16x128xf32> to vector<16x32xf32>
    %295 = math.tanh %294 : vector<16x32xf32>
    %296 = arith.mulf %292, %270 : vector<16x32xf32>
    %297 = arith.mulf %291, %295 : vector<16x32xf32>
    %298 = arith.addf %296, %297 : vector<16x32xf32>
    %299 = math.tanh %298 : vector<16x32xf32>
    %300 = arith.mulf %293, %299 : vector<16x32xf32>
    %301 = vector.extract_strided_slice %300 {offsets = [0, 0], sizes = [8, 32], strides = [1, 1]} : vector<16x32xf32> to vector<8x32xf32>
    %c56_116 = arith.constant 56 : index
    %c0_117 = arith.constant 0 : index
    %302 = vector.load %arg15[%c56_116, %c0_117] : memref<64x32xf32, #tpu.memory_space<vmem>>, vector<8x32xf32>
    tpu.vector_store %arg15[%c56_116, %c0_117], %301 {strides = array<i32>} : memref<64x32xf32, #tpu.memory_space<vmem>>, vector<8x32xf32>,
    %303 = vector.extract_strided_slice %300 {offsets = [8, 0], sizes = [8, 32], strides = [1, 1]} : vector<16x32xf32> to vector<8x32xf32>
    %c0_118 = arith.constant 0 : index
    %c0_119 = arith.constant 0 : index
    %304 = vector.load %arg16[%c0_118, %c0_119] : memref<64x32xf32, #tpu.memory_space<vmem>>, vector<8x32xf32>
    tpu.vector_store %arg16[%c0_118, %c0_119], %303 {strides = array<i32>} : memref<64x32xf32, #tpu.memory_space<vmem>>, vector<8x32xf32>,
    %c0_120 = arith.constant 0 : index
    %c0_121 = arith.constant 0 : index
    %305 = vector.load %arg15[%c0_120, %c0_121] : memref<64x32xf32, #tpu.memory_space<vmem>>, vector<64x32xf32>
    %c0_122 = arith.constant 0 : index
    %c0_123 = arith.constant 0 : index
    %306 = vector.load %arg16[%c0_122, %c0_123] : memref<64x32xf32, #tpu.memory_space<vmem>>, vector<64x32xf32>
    %307 = tpu.concatenate %305, %306 in 1 : vector<64x32xf32>, vector<64x32xf32> -> vector<64x64xf32>
    %308 = arith.truncf %307 : vector<64x64xf32> to vector<64x64xbf16>
    %c0_124 = arith.constant 0 : index
    %c0_125 = arith.constant 0 : index
    %309 = vector.load %arg6[%c0_124, %c0_125] : memref<64x128xbf16, #tpu.memory_space<vmem>>, vector<64x128xbf16>
    %cst_126 = arith.constant dense<0.000000e+00> : vector<64x128xf32>
    %310 = tpu.matmul %308, %309, %cst_126 {dimension_numbers = #tpu.dot_dimension_numbers<[1], [0], [0], [1], [0, 0, 1, 1], [], []>} : vector<64x64xbf16>, vector<64x128xbf16>, vector<64x128xf32> -> vector<64x128xf32>
    %c0_127 = arith.constant 0 : index
    %c0_128 = arith.constant 0 : index
    %311 = vector.load %arg9[%c0_127, %c0_128] : memref<1x128xf32, #tpu.memory_space<vmem>>, vector<1x128xf32>
    %312 = vector.broadcast %311 : vector<1x128xf32> to vector<64x128xf32>
    %313 = arith.addf %310, %312 : vector<64x128xf32>
    %c0_129 = arith.constant 0 : index
    %c0_130 = arith.constant 0 : index
    %314 = vector.load %arg7[%c0_129, %c0_130] : memref<64x128xbf16, #tpu.memory_space<vmem>>, vector<64x128xbf16>
    %cst_131 = arith.constant dense<0.000000e+00> : vector<64x128xf32>
    %315 = tpu.matmul %308, %314, %cst_131 {dimension_numbers = #tpu.dot_dimension_numbers<[1], [0], [0], [1], [0, 0, 1, 1], [], []>} : vector<64x64xbf16>, vector<64x128xbf16>, vector<64x128xf32> -> vector<64x128xf32>
    %c0_132 = arith.constant 0 : index
    %c0_133 = arith.constant 0 : index
    %316 = vector.load %arg10[%c0_132, %c0_133] : memref<1x128xf32, #tpu.memory_space<vmem>>, vector<1x128xf32>
    %317 = vector.broadcast %316 : vector<1x128xf32> to vector<64x128xf32>
    %318 = arith.addf %315, %317 : vector<64x128xf32>
    %319 = vector.extract_strided_slice %313 {offsets = [0, 0], sizes = [8, 128], strides = [1, 1]} : vector<64x128xf32> to vector<8x128xf32>
    %c0_134 = arith.constant 0 : index
    %c0_135 = arith.constant 0 : index
    %c0_136 = arith.constant 0 : index
    %320 = vector.load %arg14[%c0_134, %c0_135, %c0_136] : memref<8x16x128xf32, #tpu.memory_space<vmem>>, vector<1x8x128xf32>
    %321 = vector.shape_cast %320 : vector<1x8x128xf32> to vector<8x128xf32>
    %322 = vector.shape_cast %319 : vector<8x128xf32> to vector<1x8x128xf32>
    tpu.vector_store %arg14[%c0_134, %c0_135, %c0_136], %322 {strides = array<i32>} : memref<8x16x128xf32, #tpu.memory_space<vmem>>, vector<1x8x128xf32>,
    %323 = vector.extract_strided_slice %318 {offsets = [56, 0], sizes = [8, 128], strides = [1, 1]} : vector<64x128xf32> to vector<8x128xf32>
    %c0_137 = arith.constant 0 : index
    %c8_138 = arith.constant 8 : index
    %c0_139 = arith.constant 0 : index
    %324 = vector.load %arg14[%c0_137, %c8_138, %c0_139] : memref<8x16x128xf32, #tpu.memory_space<vmem>>, vector<1x8x128xf32>
    %325 = vector.shape_cast %324 : vector<1x8x128xf32> to vector<8x128xf32>
    %326 = vector.shape_cast %323 : vector<8x128xf32> to vector<1x8x128xf32>
    tpu.vector_store %arg14[%c0_137, %c8_138, %c0_139], %326 {strides = array<i32>} : memref<8x16x128xf32, #tpu.memory_space<vmem>>, vector<1x8x128xf32>,
    %327 = vector.extract_strided_slice %313 {offsets = [8, 0], sizes = [8, 128], strides = [1, 1]} : vector<64x128xf32> to vector<8x128xf32>
    %c1_140 = arith.constant 1 : index
    %c0_141 = arith.constant 0 : index
    %c0_142 = arith.constant 0 : index
    %328 = vector.load %arg14[%c1_140, %c0_141, %c0_142] : memref<8x16x128xf32, #tpu.memory_space<vmem>>, vector<1x8x128xf32>
    %329 = vector.shape_cast %328 : vector<1x8x128xf32> to vector<8x128xf32>
    %330 = vector.shape_cast %327 : vector<8x128xf32> to vector<1x8x128xf32>
    tpu.vector_store %arg14[%c1_140, %c0_141, %c0_142], %330 {strides = array<i32>} : memref<8x16x128xf32, #tpu.memory_space<vmem>>, vector<1x8x128xf32>,
    %331 = vector.extract_strided_slice %318 {offsets = [48, 0], sizes = [8, 128], strides = [1, 1]} : vector<64x128xf32> to vector<8x128xf32>
    %c1_143 = arith.constant 1 : index
    %c8_144 = arith.constant 8 : index
    %c0_145 = arith.constant 0 : index
    %332 = vector.load %arg14[%c1_143, %c8_144, %c0_145] : memref<8x16x128xf32, #tpu.memory_space<vmem>>, vector<1x8x128xf32>
    %333 = vector.shape_cast %332 : vector<1x8x128xf32> to vector<8x128xf32>
    %334 = vector.shape_cast %331 : vector<8x128xf32> to vector<1x8x128xf32>
    tpu.vector_store %arg14[%c1_143, %c8_144, %c0_145], %334 {strides = array<i32>} : memref<8x16x128xf32, #tpu.memory_space<vmem>>, vector<1x8x128xf32>,
    %335 = vector.extract_strided_slice %313 {offsets = [16, 0], sizes = [8, 128], strides = [1, 1]} : vector<64x128xf32> to vector<8x128xf32>
    %c2_146 = arith.constant 2 : index
    %c0_147 = arith.constant 0 : index
    %c0_148 = arith.constant 0 : index
    %336 = vector.load %arg14[%c2_146, %c0_147, %c0_148] : memref<8x16x128xf32, #tpu.memory_space<vmem>>, vector<1x8x128xf32>
    %337 = vector.shape_cast %336 : vector<1x8x128xf32> to vector<8x128xf32>
    %338 = vector.shape_cast %335 : vector<8x128xf32> to vector<1x8x128xf32>
    tpu.vector_store %arg14[%c2_146, %c0_147, %c0_148], %338 {strides = array<i32>} : memref<8x16x128xf32, #tpu.memory_space<vmem>>, vector<1x8x128xf32>,
    %339 = vector.extract_strided_slice %318 {offsets = [40, 0], sizes = [8, 128], strides = [1, 1]} : vector<64x128xf32> to vector<8x128xf32>
    %c2_149 = arith.constant 2 : index
    %c8_150 = arith.constant 8 : index
    %c0_151 = arith.constant 0 : index
    %340 = vector.load %arg14[%c2_149, %c8_150, %c0_151] : memref<8x16x128xf32, #tpu.memory_space<vmem>>, vector<1x8x128xf32>
    %341 = vector.shape_cast %340 : vector<1x8x128xf32> to vector<8x128xf32>
    %342 = vector.shape_cast %339 : vector<8x128xf32> to vector<1x8x128xf32>
    tpu.vector_store %arg14[%c2_149, %c8_150, %c0_151], %342 {strides = array<i32>} : memref<8x16x128xf32, #tpu.memory_space<vmem>>, vector<1x8x128xf32>,
    %343 = vector.extract_strided_slice %313 {offsets = [24, 0], sizes = [8, 128], strides = [1, 1]} : vector<64x128xf32> to vector<8x128xf32>
    %c3_152 = arith.constant 3 : index
    %c0_153 = arith.constant 0 : index
    %c0_154 = arith.constant 0 : index
    %344 = vector.load %arg14[%c3_152, %c0_153, %c0_154] : memref<8x16x128xf32, #tpu.memory_space<vmem>>, vector<1x8x128xf32>
    %345 = vector.shape_cast %344 : vector<1x8x128xf32> to vector<8x128xf32>
    %346 = vector.shape_cast %343 : vector<8x128xf32> to vector<1x8x128xf32>
    tpu.vector_store %arg14[%c3_152, %c0_153, %c0_154], %346 {strides = array<i32>} : memref<8x16x128xf32, #tpu.memory_space<vmem>>, vector<1x8x128xf32>,
    %347 = vector.extract_strided_slice %318 {offsets = [32, 0], sizes = [8, 128], strides = [1, 1]} : vector<64x128xf32> to vector<8x128xf32>
    %c3_155 = arith.constant 3 : index
    %c8_156 = arith.constant 8 : index
    %c0_157 = arith.constant 0 : index
    %348 = vector.load %arg14[%c3_155, %c8_156, %c0_157] : memref<8x16x128xf32, #tpu.memory_space<vmem>>, vector<1x8x128xf32>
    %349 = vector.shape_cast %348 : vector<1x8x128xf32> to vector<8x128xf32>
    %350 = vector.shape_cast %347 : vector<8x128xf32> to vector<1x8x128xf32>
    tpu.vector_store %arg14[%c3_155, %c8_156, %c0_157], %350 {strides = array<i32>} : memref<8x16x128xf32, #tpu.memory_space<vmem>>, vector<1x8x128xf32>,
    %351 = vector.extract_strided_slice %313 {offsets = [32, 0], sizes = [8, 128], strides = [1, 1]} : vector<64x128xf32> to vector<8x128xf32>
    %c4_158 = arith.constant 4 : index
    %c0_159 = arith.constant 0 : index
    %c0_160 = arith.constant 0 : index
    %352 = vector.load %arg14[%c4_158, %c0_159, %c0_160] : memref<8x16x128xf32, #tpu.memory_space<vmem>>, vector<1x8x128xf32>
    %353 = vector.shape_cast %352 : vector<1x8x128xf32> to vector<8x128xf32>
    %354 = vector.shape_cast %351 : vector<8x128xf32> to vector<1x8x128xf32>
    tpu.vector_store %arg14[%c4_158, %c0_159, %c0_160], %354 {strides = array<i32>} : memref<8x16x128xf32, #tpu.memory_space<vmem>>, vector<1x8x128xf32>,
    %355 = vector.extract_strided_slice %318 {offsets = [24, 0], sizes = [8, 128], strides = [1, 1]} : vector<64x128xf32> to vector<8x128xf32>
    %c4_161 = arith.constant 4 : index
    %c8_162 = arith.constant 8 : index
    %c0_163 = arith.constant 0 : index
    %356 = vector.load %arg14[%c4_161, %c8_162, %c0_163] : memref<8x16x128xf32, #tpu.memory_space<vmem>>, vector<1x8x128xf32>
    %357 = vector.shape_cast %356 : vector<1x8x128xf32> to vector<8x128xf32>
    %358 = vector.shape_cast %355 : vector<8x128xf32> to vector<1x8x128xf32>
    tpu.vector_store %arg14[%c4_161, %c8_162, %c0_163], %358 {strides = array<i32>} : memref<8x16x128xf32, #tpu.memory_space<vmem>>, vector<1x8x128xf32>,
    %359 = vector.extract_strided_slice %313 {offsets = [40, 0], sizes = [8, 128], strides = [1, 1]} : vector<64x128xf32> to vector<8x128xf32>
    %c5_164 = arith.constant 5 : index
    %c0_165 = arith.constant 0 : index
    %c0_166 = arith.constant 0 : index
    %360 = vector.load %arg14[%c5_164, %c0_165, %c0_166] : memref<8x16x128xf32, #tpu.memory_space<vmem>>, vector<1x8x128xf32>
    %361 = vector.shape_cast %360 : vector<1x8x128xf32> to vector<8x128xf32>
    %362 = vector.shape_cast %359 : vector<8x128xf32> to vector<1x8x128xf32>
    tpu.vector_store %arg14[%c5_164, %c0_165, %c0_166], %362 {strides = array<i32>} : memref<8x16x128xf32, #tpu.memory_space<vmem>>, vector<1x8x128xf32>,
    %363 = vector.extract_strided_slice %318 {offsets = [16, 0], sizes = [8, 128], strides = [1, 1]} : vector<64x128xf32> to vector<8x128xf32>
    %c5_167 = arith.constant 5 : index
    %c8_168 = arith.constant 8 : index
    %c0_169 = arith.constant 0 : index
    %364 = vector.load %arg14[%c5_167, %c8_168, %c0_169] : memref<8x16x128xf32, #tpu.memory_space<vmem>>, vector<1x8x128xf32>
    %365 = vector.shape_cast %364 : vector<1x8x128xf32> to vector<8x128xf32>
    %366 = vector.shape_cast %363 : vector<8x128xf32> to vector<1x8x128xf32>
    tpu.vector_store %arg14[%c5_167, %c8_168, %c0_169], %366 {strides = array<i32>} : memref<8x16x128xf32, #tpu.memory_space<vmem>>, vector<1x8x128xf32>,
    %367 = vector.extract_strided_slice %313 {offsets = [48, 0], sizes = [8, 128], strides = [1, 1]} : vector<64x128xf32> to vector<8x128xf32>
    %c6_170 = arith.constant 6 : index
    %c0_171 = arith.constant 0 : index
    %c0_172 = arith.constant 0 : index
    %368 = vector.load %arg14[%c6_170, %c0_171, %c0_172] : memref<8x16x128xf32, #tpu.memory_space<vmem>>, vector<1x8x128xf32>
    %369 = vector.shape_cast %368 : vector<1x8x128xf32> to vector<8x128xf32>
    %370 = vector.shape_cast %367 : vector<8x128xf32> to vector<1x8x128xf32>
    tpu.vector_store %arg14[%c6_170, %c0_171, %c0_172], %370 {strides = array<i32>} : memref<8x16x128xf32, #tpu.memory_space<vmem>>, vector<1x8x128xf32>,
    %371 = vector.extract_strided_slice %318 {offsets = [8, 0], sizes = [8, 128], strides = [1, 1]} : vector<64x128xf32> to vector<8x128xf32>
    %c6_173 = arith.constant 6 : index
    %c8_174 = arith.constant 8 : index
    %c0_175 = arith.constant 0 : index
    %372 = vector.load %arg14[%c6_173, %c8_174, %c0_175] : memref<8x16x128xf32, #tpu.memory_space<vmem>>, vector<1x8x128xf32>
    %373 = vector.shape_cast %372 : vector<1x8x128xf32> to vector<8x128xf32>
    %374 = vector.shape_cast %371 : vector<8x128xf32> to vector<1x8x128xf32>
    tpu.vector_store %arg14[%c6_173, %c8_174, %c0_175], %374 {strides = array<i32>} : memref<8x16x128xf32, #tpu.memory_space<vmem>>, vector<1x8x128xf32>,
    %375 = vector.extract_strided_slice %313 {offsets = [56, 0], sizes = [8, 128], strides = [1, 1]} : vector<64x128xf32> to vector<8x128xf32>
    %c7_176 = arith.constant 7 : index
    %c0_177 = arith.constant 0 : index
    %c0_178 = arith.constant 0 : index
    %376 = vector.load %arg14[%c7_176, %c0_177, %c0_178] : memref<8x16x128xf32, #tpu.memory_space<vmem>>, vector<1x8x128xf32>
    %377 = vector.shape_cast %376 : vector<1x8x128xf32> to vector<8x128xf32>
    %378 = vector.shape_cast %375 : vector<8x128xf32> to vector<1x8x128xf32>
    tpu.vector_store %arg14[%c7_176, %c0_177, %c0_178], %378 {strides = array<i32>} : memref<8x16x128xf32, #tpu.memory_space<vmem>>, vector<1x8x128xf32>,
    %379 = vector.extract_strided_slice %318 {offsets = [0, 0], sizes = [8, 128], strides = [1, 1]} : vector<64x128xf32> to vector<8x128xf32>
    %c7_179 = arith.constant 7 : index
    %c8_180 = arith.constant 8 : index
    %c0_181 = arith.constant 0 : index
    %380 = vector.load %arg14[%c7_179, %c8_180, %c0_181] : memref<8x16x128xf32, #tpu.memory_space<vmem>>, vector<1x8x128xf32>
    %381 = vector.shape_cast %380 : vector<1x8x128xf32> to vector<8x128xf32>
    %382 = vector.shape_cast %379 : vector<8x128xf32> to vector<1x8x128xf32>
    tpu.vector_store %arg14[%c7_179, %c8_180, %c0_181], %382 {strides = array<i32>} : memref<8x16x128xf32, #tpu.memory_space<vmem>>, vector<1x8x128xf32>,
    %c0_182 = arith.constant 0 : index
    %c0_183 = arith.constant 0 : index
    %383 = vector.load %arg8[%c0_182, %c0_183] : memref<32x256xbf16, #tpu.memory_space<vmem>>, vector<32x256xbf16>
    %cst_184 = arith.constant 0.000000e+00 : f32
    %384 = vector.broadcast %cst_184 : f32 to vector<16x32xf32>
    %cst_185 = arith.constant 0.000000e+00 : f32
    %385 = vector.broadcast %cst_185 : f32 to vector<16x32xf32>
    %386 = arith.truncf %384 : vector<16x32xf32> to vector<16x32xbf16>
    %cst_186 = arith.constant dense<0.000000e+00> : vector<16x256xf32>
    %387 = tpu.matmul %386, %383, %cst_186 {dimension_numbers = #tpu.dot_dimension_numbers<[1], [0], [0], [1], [0, 0, 1, 1], [], []>} : vector<16x32xbf16>, vector<32x256xbf16>, vector<16x256xf32> -> vector<16x256xf32>
    %388 = vector.extract_strided_slice %387 {offsets = [0, 0], sizes = [16, 128], strides = [1, 1]} : vector<16x256xf32> to vector<16x128xf32>
    %389 = vector.extract_strided_slice %387 {offsets = [0, 128], sizes = [16, 128], strides = [1, 1]} : vector<16x256xf32> to vector<16x128xf32>
    %390 = arith.select %2, %388, %389 : vector<16x128xi1>, vector<16x128xf32>
    %c0_187 = arith.constant 0 : index
    %c0_188 = arith.constant 0 : index
    %c0_189 = arith.constant 0 : index
    %391 = vector.load %arg14[%c0_187, %c0_188, %c0_189] : memref<8x16x128xf32, #tpu.memory_space<vmem>>, vector<1x16x128xf32>
    %392 = vector.shape_cast %391 : vector<1x16x128xf32> to vector<16x128xf32>
    %393 = arith.addf %390, %392 : vector<16x128xf32>
    %394 = vector.extract_strided_slice %393 {offsets = [0, 0], sizes = [16, 96], strides = [1, 1]} : vector<16x128xf32> to vector<16x96xf32>
    %395 = arith.negf %394 : vector<16x96xf32>
    %396 = math.exp %395 : vector<16x96xf32>
    %cst_190 = arith.constant 1.000000e+00 : f32
    %397 = vector.broadcast %cst_190 : f32 to vector<16x96xf32>
    %398 = arith.addf %397, %396 : vector<16x96xf32>
    %399 = arith.divf %397, %398 : vector<16x96xf32>
    %400 = vector.extract_strided_slice %399 {offsets = [0, 0], sizes = [16, 32], strides = [1, 1]} : vector<16x96xf32> to vector<16x32xf32>
    %401 = vector.extract_strided_slice %399 {offsets = [0, 32], sizes = [16, 32], strides = [1, 1]} : vector<16x96xf32> to vector<16x32xf32>
    %402 = vector.extract_strided_slice %399 {offsets = [0, 64], sizes = [16, 32], strides = [1, 1]} : vector<16x96xf32> to vector<16x32xf32>
    %403 = vector.extract_strided_slice %393 {offsets = [0, 96], sizes = [16, 32], strides = [1, 1]} : vector<16x128xf32> to vector<16x32xf32>
    %404 = math.tanh %403 : vector<16x32xf32>
    %405 = arith.mulf %401, %385 : vector<16x32xf32>
    %406 = arith.mulf %400, %404 : vector<16x32xf32>
    %407 = arith.addf %405, %406 : vector<16x32xf32>
    %408 = math.tanh %407 : vector<16x32xf32>
    %409 = arith.mulf %402, %408 : vector<16x32xf32>
    %410 = arith.truncf %409 : vector<16x32xf32> to vector<16x32xbf16>
    %cst_191 = arith.constant dense<0.000000e+00> : vector<16x256xf32>
    %411 = tpu.matmul %410, %383, %cst_191 {dimension_numbers = #tpu.dot_dimension_numbers<[1], [0], [0], [1], [0, 0, 1, 1], [], []>} : vector<16x32xbf16>, vector<32x256xbf16>, vector<16x256xf32> -> vector<16x256xf32>
    %412 = vector.extract_strided_slice %411 {offsets = [0, 0], sizes = [16, 128], strides = [1, 1]} : vector<16x256xf32> to vector<16x128xf32>
    %413 = vector.extract_strided_slice %411 {offsets = [0, 128], sizes = [16, 128], strides = [1, 1]} : vector<16x256xf32> to vector<16x128xf32>
    %414 = arith.select %2, %412, %413 : vector<16x128xi1>, vector<16x128xf32>
    %c1_192 = arith.constant 1 : index
    %c0_193 = arith.constant 0 : index
    %c0_194 = arith.constant 0 : index
    %415 = vector.load %arg14[%c1_192, %c0_193, %c0_194] : memref<8x16x128xf32, #tpu.memory_space<vmem>>, vector<1x16x128xf32>
    %416 = vector.shape_cast %415 : vector<1x16x128xf32> to vector<16x128xf32>
    %417 = arith.addf %414, %416 : vector<16x128xf32>
    %418 = vector.extract_strided_slice %417 {offsets = [0, 0], sizes = [16, 96], strides = [1, 1]} : vector<16x128xf32> to vector<16x96xf32>
    %419 = arith.negf %418 : vector<16x96xf32>
    %420 = math.exp %419 : vector<16x96xf32>
    %cst_195 = arith.constant 1.000000e+00 : f32
    %421 = vector.broadcast %cst_195 : f32 to vector<16x96xf32>
    %422 = arith.addf %421, %420 : vector<16x96xf32>
    %423 = arith.divf %421, %422 : vector<16x96xf32>
    %424 = vector.extract_strided_slice %423 {offsets = [0, 0], sizes = [16, 32], strides = [1, 1]} : vector<16x96xf32> to vector<16x32xf32>
    %425 = vector.extract_strided_slice %423 {offsets = [0, 32], sizes = [16, 32], strides = [1, 1]} : vector<16x96xf32> to vector<16x32xf32>
    %426 = vector.extract_strided_slice %423 {offsets = [0, 64], sizes = [16, 32], strides = [1, 1]} : vector<16x96xf32> to vector<16x32xf32>
    %427 = vector.extract_strided_slice %417 {offsets = [0, 96], sizes = [16, 32], strides = [1, 1]} : vector<16x128xf32> to vector<16x32xf32>
    %428 = math.tanh %427 : vector<16x32xf32>
    %429 = arith.mulf %425, %407 : vector<16x32xf32>
    %430 = arith.mulf %424, %428 : vector<16x32xf32>
    %431 = arith.addf %429, %430 : vector<16x32xf32>
    %432 = math.tanh %431 : vector<16x32xf32>
    %433 = arith.mulf %426, %432 : vector<16x32xf32>
    %434 = arith.truncf %433 : vector<16x32xf32> to vector<16x32xbf16>
    %cst_196 = arith.constant dense<0.000000e+00> : vector<16x256xf32>
    %435 = tpu.matmul %434, %383, %cst_196 {dimension_numbers = #tpu.dot_dimension_numbers<[1], [0], [0], [1], [0, 0, 1, 1], [], []>} : vector<16x32xbf16>, vector<32x256xbf16>, vector<16x256xf32> -> vector<16x256xf32>
    %436 = vector.extract_strided_slice %435 {offsets = [0, 0], sizes = [16, 128], strides = [1, 1]} : vector<16x256xf32> to vector<16x128xf32>
    %437 = vector.extract_strided_slice %435 {offsets = [0, 128], sizes = [16, 128], strides = [1, 1]} : vector<16x256xf32> to vector<16x128xf32>
    %438 = arith.select %2, %436, %437 : vector<16x128xi1>, vector<16x128xf32>
    %c2_197 = arith.constant 2 : index
    %c0_198 = arith.constant 0 : index
    %c0_199 = arith.constant 0 : index
    %439 = vector.load %arg14[%c2_197, %c0_198, %c0_199] : memref<8x16x128xf32, #tpu.memory_space<vmem>>, vector<1x16x128xf32>
    %440 = vector.shape_cast %439 : vector<1x16x128xf32> to vector<16x128xf32>
    %441 = arith.addf %438, %440 : vector<16x128xf32>
    %442 = vector.extract_strided_slice %441 {offsets = [0, 0], sizes = [16, 96], strides = [1, 1]} : vector<16x128xf32> to vector<16x96xf32>
    %443 = arith.negf %442 : vector<16x96xf32>
    %444 = math.exp %443 : vector<16x96xf32>
    %cst_200 = arith.constant 1.000000e+00 : f32
    %445 = vector.broadcast %cst_200 : f32 to vector<16x96xf32>
    %446 = arith.addf %445, %444 : vector<16x96xf32>
    %447 = arith.divf %445, %446 : vector<16x96xf32>
    %448 = vector.extract_strided_slice %447 {offsets = [0, 0], sizes = [16, 32], strides = [1, 1]} : vector<16x96xf32> to vector<16x32xf32>
    %449 = vector.extract_strided_slice %447 {offsets = [0, 32], sizes = [16, 32], strides = [1, 1]} : vector<16x96xf32> to vector<16x32xf32>
    %450 = vector.extract_strided_slice %447 {offsets = [0, 64], sizes = [16, 32], strides = [1, 1]} : vector<16x96xf32> to vector<16x32xf32>
    %451 = vector.extract_strided_slice %441 {offsets = [0, 96], sizes = [16, 32], strides = [1, 1]} : vector<16x128xf32> to vector<16x32xf32>
    %452 = math.tanh %451 : vector<16x32xf32>
    %453 = arith.mulf %449, %431 : vector<16x32xf32>
    %454 = arith.mulf %448, %452 : vector<16x32xf32>
    %455 = arith.addf %453, %454 : vector<16x32xf32>
    %456 = math.tanh %455 : vector<16x32xf32>
    %457 = arith.mulf %450, %456 : vector<16x32xf32>
    %458 = arith.truncf %457 : vector<16x32xf32> to vector<16x32xbf16>
    %cst_201 = arith.constant dense<0.000000e+00> : vector<16x256xf32>
    %459 = tpu.matmul %458, %383, %cst_201 {dimension_numbers = #tpu.dot_dimension_numbers<[1], [0], [0], [1], [0, 0, 1, 1], [], []>} : vector<16x32xbf16>, vector<32x256xbf16>, vector<16x256xf32> -> vector<16x256xf32>
    %460 = vector.extract_strided_slice %459 {offsets = [0, 0], sizes = [16, 128], strides = [1, 1]} : vector<16x256xf32> to vector<16x128xf32>
    %461 = vector.extract_strided_slice %459 {offsets = [0, 128], sizes = [16, 128], strides = [1, 1]} : vector<16x256xf32> to vector<16x128xf32>
    %462 = arith.select %2, %460, %461 : vector<16x128xi1>, vector<16x128xf32>
    %c3_202 = arith.constant 3 : index
    %c0_203 = arith.constant 0 : index
    %c0_204 = arith.constant 0 : index
    %463 = vector.load %arg14[%c3_202, %c0_203, %c0_204] : memref<8x16x128xf32, #tpu.memory_space<vmem>>, vector<1x16x128xf32>
    %464 = vector.shape_cast %463 : vector<1x16x128xf32> to vector<16x128xf32>
    %465 = arith.addf %462, %464 : vector<16x128xf32>
    %466 = vector.extract_strided_slice %465 {offsets = [0, 0], sizes = [16, 96], strides = [1, 1]} : vector<16x128xf32> to vector<16x96xf32>
    %467 = arith.negf %466 : vector<16x96xf32>
    %468 = math.exp %467 : vector<16x96xf32>
    %cst_205 = arith.constant 1.000000e+00 : f32
    %469 = vector.broadcast %cst_205 : f32 to vector<16x96xf32>
    %470 = arith.addf %469, %468 : vector<16x96xf32>
    %471 = arith.divf %469, %470 : vector<16x96xf32>
    %472 = vector.extract_strided_slice %471 {offsets = [0, 0], sizes = [16, 32], strides = [1, 1]} : vector<16x96xf32> to vector<16x32xf32>
    %473 = vector.extract_strided_slice %471 {offsets = [0, 32], sizes = [16, 32], strides = [1, 1]} : vector<16x96xf32> to vector<16x32xf32>
    %474 = vector.extract_strided_slice %471 {offsets = [0, 64], sizes = [16, 32], strides = [1, 1]} : vector<16x96xf32> to vector<16x32xf32>
    %475 = vector.extract_strided_slice %465 {offsets = [0, 96], sizes = [16, 32], strides = [1, 1]} : vector<16x128xf32> to vector<16x32xf32>
    %476 = math.tanh %475 : vector<16x32xf32>
    %477 = arith.mulf %473, %455 : vector<16x32xf32>
    %478 = arith.mulf %472, %476 : vector<16x32xf32>
    %479 = arith.addf %477, %478 : vector<16x32xf32>
    %480 = math.tanh %479 : vector<16x32xf32>
    %481 = arith.mulf %474, %480 : vector<16x32xf32>
    %482 = arith.truncf %481 : vector<16x32xf32> to vector<16x32xbf16>
    %cst_206 = arith.constant dense<0.000000e+00> : vector<16x256xf32>
    %483 = tpu.matmul %482, %383, %cst_206 {dimension_numbers = #tpu.dot_dimension_numbers<[1], [0], [0], [1], [0, 0, 1, 1], [], []>} : vector<16x32xbf16>, vector<32x256xbf16>, vector<16x256xf32> -> vector<16x256xf32>
    %484 = vector.extract_strided_slice %483 {offsets = [0, 0], sizes = [16, 128], strides = [1, 1]} : vector<16x256xf32> to vector<16x128xf32>
    %485 = vector.extract_strided_slice %483 {offsets = [0, 128], sizes = [16, 128], strides = [1, 1]} : vector<16x256xf32> to vector<16x128xf32>
    %486 = arith.select %2, %484, %485 : vector<16x128xi1>, vector<16x128xf32>
    %c4_207 = arith.constant 4 : index
    %c0_208 = arith.constant 0 : index
    %c0_209 = arith.constant 0 : index
    %487 = vector.load %arg14[%c4_207, %c0_208, %c0_209] : memref<8x16x128xf32, #tpu.memory_space<vmem>>, vector<1x16x128xf32>
    %488 = vector.shape_cast %487 : vector<1x16x128xf32> to vector<16x128xf32>
    %489 = arith.addf %486, %488 : vector<16x128xf32>
    %490 = vector.extract_strided_slice %489 {offsets = [0, 0], sizes = [16, 96], strides = [1, 1]} : vector<16x128xf32> to vector<16x96xf32>
    %491 = arith.negf %490 : vector<16x96xf32>
    %492 = math.exp %491 : vector<16x96xf32>
    %cst_210 = arith.constant 1.000000e+00 : f32
    %493 = vector.broadcast %cst_210 : f32 to vector<16x96xf32>
    %494 = arith.addf %493, %492 : vector<16x96xf32>
    %495 = arith.divf %493, %494 : vector<16x96xf32>
    %496 = vector.extract_strided_slice %495 {offsets = [0, 0], sizes = [16, 32], strides = [1, 1]} : vector<16x96xf32> to vector<16x32xf32>
    %497 = vector.extract_strided_slice %495 {offsets = [0, 32], sizes = [16, 32], strides = [1, 1]} : vector<16x96xf32> to vector<16x32xf32>
    %498 = vector.extract_strided_slice %495 {offsets = [0, 64], sizes = [16, 32], strides = [1, 1]} : vector<16x96xf32> to vector<16x32xf32>
    %499 = vector.extract_strided_slice %489 {offsets = [0, 96], sizes = [16, 32], strides = [1, 1]} : vector<16x128xf32> to vector<16x32xf32>
    %500 = math.tanh %499 : vector<16x32xf32>
    %501 = arith.mulf %497, %479 : vector<16x32xf32>
    %502 = arith.mulf %496, %500 : vector<16x32xf32>
    %503 = arith.addf %501, %502 : vector<16x32xf32>
    %504 = math.tanh %503 : vector<16x32xf32>
    %505 = arith.mulf %498, %504 : vector<16x32xf32>
    %506 = arith.truncf %505 : vector<16x32xf32> to vector<16x32xbf16>
    %cst_211 = arith.constant dense<0.000000e+00> : vector<16x256xf32>
    %507 = tpu.matmul %506, %383, %cst_211 {dimension_numbers = #tpu.dot_dimension_numbers<[1], [0], [0], [1], [0, 0, 1, 1], [], []>} : vector<16x32xbf16>, vector<32x256xbf16>, vector<16x256xf32> -> vector<16x256xf32>
    %508 = vector.extract_strided_slice %507 {offsets = [0, 0], sizes = [16, 128], strides = [1, 1]} : vector<16x256xf32> to vector<16x128xf32>
    %509 = vector.extract_strided_slice %507 {offsets = [0, 128], sizes = [16, 128], strides = [1, 1]} : vector<16x256xf32> to vector<16x128xf32>
    %510 = arith.select %2, %508, %509 : vector<16x128xi1>, vector<16x128xf32>
    %c5_212 = arith.constant 5 : index
    %c0_213 = arith.constant 0 : index
    %c0_214 = arith.constant 0 : index
    %511 = vector.load %arg14[%c5_212, %c0_213, %c0_214] : memref<8x16x128xf32, #tpu.memory_space<vmem>>, vector<1x16x128xf32>
    %512 = vector.shape_cast %511 : vector<1x16x128xf32> to vector<16x128xf32>
    %513 = arith.addf %510, %512 : vector<16x128xf32>
    %514 = vector.extract_strided_slice %513 {offsets = [0, 0], sizes = [16, 96], strides = [1, 1]} : vector<16x128xf32> to vector<16x96xf32>
    %515 = arith.negf %514 : vector<16x96xf32>
    %516 = math.exp %515 : vector<16x96xf32>
    %cst_215 = arith.constant 1.000000e+00 : f32
    %517 = vector.broadcast %cst_215 : f32 to vector<16x96xf32>
    %518 = arith.addf %517, %516 : vector<16x96xf32>
    %519 = arith.divf %517, %518 : vector<16x96xf32>
    %520 = vector.extract_strided_slice %519 {offsets = [0, 0], sizes = [16, 32], strides = [1, 1]} : vector<16x96xf32> to vector<16x32xf32>
    %521 = vector.extract_strided_slice %519 {offsets = [0, 32], sizes = [16, 32], strides = [1, 1]} : vector<16x96xf32> to vector<16x32xf32>
    %522 = vector.extract_strided_slice %519 {offsets = [0, 64], sizes = [16, 32], strides = [1, 1]} : vector<16x96xf32> to vector<16x32xf32>
    %523 = vector.extract_strided_slice %513 {offsets = [0, 96], sizes = [16, 32], strides = [1, 1]} : vector<16x128xf32> to vector<16x32xf32>
    %524 = math.tanh %523 : vector<16x32xf32>
    %525 = arith.mulf %521, %503 : vector<16x32xf32>
    %526 = arith.mulf %520, %524 : vector<16x32xf32>
    %527 = arith.addf %525, %526 : vector<16x32xf32>
    %528 = math.tanh %527 : vector<16x32xf32>
    %529 = arith.mulf %522, %528 : vector<16x32xf32>
    %530 = arith.truncf %529 : vector<16x32xf32> to vector<16x32xbf16>
    %cst_216 = arith.constant dense<0.000000e+00> : vector<16x256xf32>
    %531 = tpu.matmul %530, %383, %cst_216 {dimension_numbers = #tpu.dot_dimension_numbers<[1], [0], [0], [1], [0, 0, 1, 1], [], []>} : vector<16x32xbf16>, vector<32x256xbf16>, vector<16x256xf32> -> vector<16x256xf32>
    %532 = vector.extract_strided_slice %531 {offsets = [0, 0], sizes = [16, 128], strides = [1, 1]} : vector<16x256xf32> to vector<16x128xf32>
    %533 = vector.extract_strided_slice %531 {offsets = [0, 128], sizes = [16, 128], strides = [1, 1]} : vector<16x256xf32> to vector<16x128xf32>
    %534 = arith.select %2, %532, %533 : vector<16x128xi1>, vector<16x128xf32>
    %c6_217 = arith.constant 6 : index
    %c0_218 = arith.constant 0 : index
    %c0_219 = arith.constant 0 : index
    %535 = vector.load %arg14[%c6_217, %c0_218, %c0_219] : memref<8x16x128xf32, #tpu.memory_space<vmem>>, vector<1x16x128xf32>
    %536 = vector.shape_cast %535 : vector<1x16x128xf32> to vector<16x128xf32>
    %537 = arith.addf %534, %536 : vector<16x128xf32>
    %538 = vector.extract_strided_slice %537 {offsets = [0, 0], sizes = [16, 96], strides = [1, 1]} : vector<16x128xf32> to vector<16x96xf32>
    %539 = arith.negf %538 : vector<16x96xf32>
    %540 = math.exp %539 : vector<16x96xf32>
    %cst_220 = arith.constant 1.000000e+00 : f32
    %541 = vector.broadcast %cst_220 : f32 to vector<16x96xf32>
    %542 = arith.addf %541, %540 : vector<16x96xf32>
    %543 = arith.divf %541, %542 : vector<16x96xf32>
    %544 = vector.extract_strided_slice %543 {offsets = [0, 0], sizes = [16, 32], strides = [1, 1]} : vector<16x96xf32> to vector<16x32xf32>
    %545 = vector.extract_strided_slice %543 {offsets = [0, 32], sizes = [16, 32], strides = [1, 1]} : vector<16x96xf32> to vector<16x32xf32>
    %546 = vector.extract_strided_slice %543 {offsets = [0, 64], sizes = [16, 32], strides = [1, 1]} : vector<16x96xf32> to vector<16x32xf32>
    %547 = vector.extract_strided_slice %537 {offsets = [0, 96], sizes = [16, 32], strides = [1, 1]} : vector<16x128xf32> to vector<16x32xf32>
    %548 = math.tanh %547 : vector<16x32xf32>
    %549 = arith.mulf %545, %527 : vector<16x32xf32>
    %550 = arith.mulf %544, %548 : vector<16x32xf32>
    %551 = arith.addf %549, %550 : vector<16x32xf32>
    %552 = math.tanh %551 : vector<16x32xf32>
    %553 = arith.mulf %546, %552 : vector<16x32xf32>
    %554 = arith.truncf %553 : vector<16x32xf32> to vector<16x32xbf16>
    %cst_221 = arith.constant dense<0.000000e+00> : vector<16x256xf32>
    %555 = tpu.matmul %554, %383, %cst_221 {dimension_numbers = #tpu.dot_dimension_numbers<[1], [0], [0], [1], [0, 0, 1, 1], [], []>} : vector<16x32xbf16>, vector<32x256xbf16>, vector<16x256xf32> -> vector<16x256xf32>
    %556 = vector.extract_strided_slice %555 {offsets = [0, 0], sizes = [16, 128], strides = [1, 1]} : vector<16x256xf32> to vector<16x128xf32>
    %557 = vector.extract_strided_slice %555 {offsets = [0, 128], sizes = [16, 128], strides = [1, 1]} : vector<16x256xf32> to vector<16x128xf32>
    %558 = arith.select %2, %556, %557 : vector<16x128xi1>, vector<16x128xf32>
    %c7_222 = arith.constant 7 : index
    %c0_223 = arith.constant 0 : index
    %c0_224 = arith.constant 0 : index
    %559 = vector.load %arg14[%c7_222, %c0_223, %c0_224] : memref<8x16x128xf32, #tpu.memory_space<vmem>>, vector<1x16x128xf32>
    %560 = vector.shape_cast %559 : vector<1x16x128xf32> to vector<16x128xf32>
    %561 = arith.addf %558, %560 : vector<16x128xf32>
    %562 = vector.extract_strided_slice %561 {offsets = [0, 0], sizes = [16, 96], strides = [1, 1]} : vector<16x128xf32> to vector<16x96xf32>
    %563 = arith.negf %562 : vector<16x96xf32>
    %564 = math.exp %563 : vector<16x96xf32>
    %cst_225 = arith.constant 1.000000e+00 : f32
    %565 = vector.broadcast %cst_225 : f32 to vector<16x96xf32>
    %566 = arith.addf %565, %564 : vector<16x96xf32>
    %567 = arith.divf %565, %566 : vector<16x96xf32>
    %568 = vector.extract_strided_slice %567 {offsets = [0, 0], sizes = [16, 32], strides = [1, 1]} : vector<16x96xf32> to vector<16x32xf32>
    %569 = vector.extract_strided_slice %567 {offsets = [0, 32], sizes = [16, 32], strides = [1, 1]} : vector<16x96xf32> to vector<16x32xf32>
    %570 = vector.extract_strided_slice %567 {offsets = [0, 64], sizes = [16, 32], strides = [1, 1]} : vector<16x96xf32> to vector<16x32xf32>
    %571 = vector.extract_strided_slice %561 {offsets = [0, 96], sizes = [16, 32], strides = [1, 1]} : vector<16x128xf32> to vector<16x32xf32>
    %572 = math.tanh %571 : vector<16x32xf32>
    %573 = arith.mulf %569, %551 : vector<16x32xf32>
    %574 = arith.mulf %568, %572 : vector<16x32xf32>
    %575 = arith.addf %573, %574 : vector<16x32xf32>
    %576 = math.tanh %575 : vector<16x32xf32>
    %577 = arith.mulf %570, %576 : vector<16x32xf32>
    %578 = vector.extract_strided_slice %577 {offsets = [0, 0], sizes = [8, 32], strides = [1, 1]} : vector<16x32xf32> to vector<8x32xf32>
    %579 = vector.extract_strided_slice %577 {offsets = [8, 0], sizes = [8, 32], strides = [1, 1]} : vector<16x32xf32> to vector<8x32xf32>
    %580 = arith.truncf %578 : vector<8x32xf32> to vector<8x32xbf16>
    %c0_226 = arith.constant 0 : index
    %c0_227 = arith.constant 0 : index
    %c0_228 = arith.constant 0 : index
    %581 = vector.load %arg11[%c0_226, %c0_227, %c0_228] : memref<2x32x128xbf16, #tpu.memory_space<vmem>>, vector<1x32x128xbf16>
    %582 = vector.shape_cast %581 : vector<1x32x128xbf16> to vector<32x128xbf16>
    %cst_229 = arith.constant dense<0.000000e+00> : vector<8x128xf32>
    %583 = tpu.matmul %580, %582, %cst_229 {dimension_numbers = #tpu.dot_dimension_numbers<[1], [0], [0], [1], [0, 0, 1, 1], [], []>} : vector<8x32xbf16>, vector<32x128xbf16>, vector<8x128xf32> -> vector<8x128xf32>
    %584 = arith.truncf %579 : vector<8x32xf32> to vector<8x32xbf16>
    %c1_230 = arith.constant 1 : index
    %c0_231 = arith.constant 0 : index
    %c0_232 = arith.constant 0 : index
    %585 = vector.load %arg11[%c1_230, %c0_231, %c0_232] : memref<2x32x128xbf16, #tpu.memory_space<vmem>>, vector<1x32x128xbf16>
    %586 = vector.shape_cast %585 : vector<1x32x128xbf16> to vector<32x128xbf16>
    %cst_233 = arith.constant dense<0.000000e+00> : vector<8x128xf32>
    %587 = tpu.matmul %584, %586, %cst_233 {dimension_numbers = #tpu.dot_dimension_numbers<[1], [0], [0], [1], [0, 0, 1, 1], [], []>} : vector<8x32xbf16>, vector<32x128xbf16>, vector<8x128xf32> -> vector<8x128xf32>
    %588 = arith.addf %583, %587 : vector<8x128xf32>
    %c0_234 = arith.constant 0 : index
    %c0_235 = arith.constant 0 : index
    %589 = vector.load %arg12[%c0_234, %c0_235] : memref<1x128xf32, #tpu.memory_space<vmem>>, vector<1x128xf32>
    %590 = vector.broadcast %589 : vector<1x128xf32> to vector<8x128xf32>
    %591 = arith.addf %588, %590 : vector<8x128xf32>
    %c0_236 = arith.constant 0 : index
    %c0_237 = arith.constant 0 : index
    %592 = vector.load %arg13[%c0_236, %c0_237] : memref<8x128xf32, #tpu.memory_space<vmem>>, vector<8x128xf32>
    tpu.vector_store %arg13[%c0_236, %c0_237], %591 {strides = array<i32>} : memref<8x128xf32, #tpu.memory_space<vmem>>, vector<8x128xf32>,
    return
  }
}

</mosaic_0001>

<bundles_post_ra>
// kernel: model_forward.1
= control target key start
LH: loop header
LB: loop body
LE: loop exit
PB: predicated region body
PF: predicated region fallthrough
CT: control target
= control target key end

     0   :  { %vm98_vm0 = vcmask 261120   ;;  %v2980_v17 = vmov 0   ;;  %s2982_s24 = smov 64   ;;  %s3728_s2 = inlined_call_operand.vmem [shape: bf16[32,128], index: 2, kind: input, shape index: {}]   ;;  %s3729_s3 = inlined_call_operand.vmem [shape: bf16[32,256], index: 3, kind: input, shape index: {}]   ;;  %s3730_s1 = inlined_call_operand.vmem [shape: bf16[32,128], index: 1, kind: input, shape index: {}]   ;;  %s3731_s0 = inlined_call_operand.vmem [shape: bf16[64,32], index: 0, kind: input, shape index: {}]   ;;  %s3732_s5 = inlined_call_operand.vmem [shape: f32[1,128], index: 5, kind: input, shape index: {}]   ;;  %s3733_s4 = inlined_call_operand.vmem [shape: f32[1,128], index: 4, kind: input, shape index: {}]   ;;  %s3734_s9 = inlined_call_operand.vmem [shape: f32[1,128], index: 9, kind: input, shape index: {}]   ;;  %s3735_s7 = inlined_call_operand.vmem [shape: bf16[64,128], index: 7, kind: input, shape index: {}]   ;;  %s3736_s6 = inlined_call_operand.vmem [shape: bf16[64,128], index: 6, kind: input, shape index: {}]   ;;  %s3737_s8 = inlined_call_operand.vmem [shape: bf16[32,256], index: 8, kind: input, shape index: {}]   ;;  %s3738_s10 = inlined_call_operand.vmem [shape: f32[1,128], index: 10, kind: input, shape index: {}]   ;;  %s3739_s11 = inlined_call_operand.vmem [shape: bf16[2,32,128], index: 11, kind: input, shape index: {}]   ;;  %s3740_s12 = inlined_call_operand.vmem [shape: f32[1,128], index: 12, kind: input, shape index: {}]   ;;  %s3741_s13 = inlined_call_operand.vmem [shape: f32[8,128], index: 13, kind: output, shape index: {}]  }
   0x1   :  { %v2672_v0 = vld [vmem:[%s3728_s2 + $0x8] sm:$0xff]  ;;  %v2521_v1 = vld [vmem:[%s3729_s3 + $0x10] sm:$0xf]  ;;  %v2676_v2 = vld [vmem:[%s3729_s3 + $0x14] sm:$0xf0] }
   0x2   :  { %v3062_v3 = vor.u32 %v2676_v2, %v2521_v1  ;;  %v2670_v4 = vld [vmem:[%s3730_s1 + $0x8] sm:$0xff]  ;;  %v2513_v5 = vld [vmem:[%s3729_s3] sm:$0xf]  ;;  %166 = vmatpush.bf16.msra.mxu1 %v2672_v0  ;;  %v2675_v10 = vld [vmem:[%s3729_s3 + $0x14] sm:$0xf] }
   0x3   :  { %v2671_v6 = vld [vmem:[%s3728_s2] sm:$0xff]  ;;  %v2674_v7 = vld [vmem:[%s3729_s3 + $0x4] sm:$0xf0]  ;;  %117 = vmatpush.bf16.msra.mxu0 %v2670_v4  ;;  %v2523_v11 = vld [vmem:[%s3729_s3 + $0x18] sm:$0xf0] }
   0x4   :  { %245 = vmatpush.bf16.msra.mxu2 %v3062_v3  ;;  %v3077_v8 = vor.u32 %v2674_v7, %v2513_v5  ;;  %v2669_v9 = vld [vmem:[%s3730_s1] sm:$0xff]  ;;  %v3088_v12 = vor.u32 %v2675_v10, %v2523_v11  ;;  %v2515_v15 = vld [vmem:[%s3729_s3 + $0x8] sm:$0xf0]  ;;  %v2667_v19 = vld [vmem:[%s3731_s0 + $0x10] sm:$0xff] }
   0x5   :  { %v2665_v13 = vld [vmem:[%s3731_s0] sm:$0xff]  ;;  %v2666_v18 = vld [vmem:[%s3731_s0 + $0x8] sm:$0xff]  ;;  %v2668_v20 = vld [vmem:[%s3731_s0 + $0x18] sm:$0xff]  ;;  %s2981_s0 = smov 32  }
   0x6   :  { %167 = vmatpush.bf16.msra.mxu1 %v2671_v6  ;;  %259 = vmatpush.bf16.msra.mxu3 %v3088_v12  ;;  %v2673_v14 = vld [vmem:[%s3729_s3 + $0x4] sm:$0xf]  ;;  %v2716_v21 = vld [vmem:[%s3732_s5] ss:$0 sm:$0xff] }
   0x7   :  { %118 = vmatpush.bf16.msra.mxu0 %v2669_v9  ;;  %v3101_v16 = vor.u32 %v2673_v14, %v2515_v15  ;;  %v3145_v23 = vld [vmem:[%s3733_s4] ss:$0 sm:$0xff] }
   0x8   :  { %246 = vmatpush.bf16.msra.mxu2 %v3077_v8 }
   0x9   :  { %2507 = vmatmul.msk.bf16.vlgmr.msra.gmra.mxu1 %vm98_vm0, %v2665_v13 }
   0xa   :  { %759 = vmatpush.bf16.msrb.mxu1 %v3088_v12  ;;  %2495 = vmatmul.msk.bf16.vlgmr.msra.gmra.mxu0 %vm98_vm0, %v2665_v13 }
   0xb   :  { %745 = vmatpush.bf16.msrb.mxu0 %v3062_v3  ;;  %247 = vmatmul.bf16.vlgmr.msra.gmra.mxu2 %v2980_v17 }
   0xc   :  { %370 = vmatpush.bf16.msrb.mxu2 %v3062_v3  ;;  %260 = vmatpush.bf16.msra.mxu3 %v3101_v16 }
   0xe   :  { %760 = vmatpush.bf16.msrb.mxu1 %v3101_v16 }
   0xf   :  { %261 = vmatmul.bf16.vlgmr.msra.gmra.mxu3 %v2980_v17  ;;  %746 = vmatpush.bf16.msrb.mxu0 %v3077_v8 }
  0x10   :  { %384 = vmatpush.bf16.msrb.mxu3 %v3088_v12  ;;  %371 = vmatpush.bf16.msrb.mxu2 %v3077_v8 }
  0x12   :  { %1009 = vmatpush.bf16.msra.mxu1 %v3088_v12 }
  0x13   :  { %995 = vmatpush.bf16.msra.mxu0 %v3062_v3 }
  0x14   :  { %495 = vmatpush.bf16.msra.mxu2 %v3062_v3  ;;  %385 = vmatpush.bf16.msrb.mxu3 %v3101_v16 }
  0x16   :  { %1010 = vmatpush.bf16.msra.mxu1 %v3101_v16 }
  0x17   :  { %996 = vmatpush.bf16.msra.mxu0 %v3077_v8 }
  0x18   :  { %509 = vmatpush.bf16.msra.mxu3 %v3088_v12  ;;  %496 = vmatpush.bf16.msra.mxu2 %v3077_v8 }
  0x19   :  { %2508 = vmatmul.msk.bf16.gmra.mxu1 %vm98_vm0, %v2666_v18 }
  0x1a   :  { %2496 = vmatmul.msk.bf16.gmra.mxu0 %vm98_vm0, %v2666_v18 }
  0x1c   :  { %510 = vmatpush.bf16.msra.mxu3 %v3101_v16 }
  0x29   :  { %2509 = vmatmul.msk.bf16.gmra.mxu1 %vm98_vm0, %v2667_v19 }
  0x2a   :  { %2497 = vmatmul.msk.bf16.gmra.mxu0 %vm98_vm0, %v2667_v19 }
  0x39   :  { %2510 = vmatmul.msk.bf16.gmra.mxu1 %vm98_vm0, %v2668_v20 }
  0x3a   :  { %2498 = vmatmul.msk.bf16.gmra.mxu0 %vm98_vm0, %v2668_v20 }
  0x86   :  { %v169_v22 = vpop.f32.mrf.mxu1 }
  0x87   :  { %v3147_v24 = vadd.f32 %v2716_v21, %v169_v22  ;;  %v120_v25 = vpop.f32.mrf.mxu0 }
  0x88   :  { %v121_v26 = vadd.f32 %v3145_v23, %v120_v25 }
  0x8e   :  { %v248_v27 = vpop.f32.mrf.mxu2  ;;  %v3150_v29 = vpop.f32.mrf.mxu1 }
  0x8f   :  { %v271_v28 = vadd.f32 %v248_v27, %v121_v26 }
  0x91   :  { %2721 = vtanh.f32 %v271_v28  ;;  %v2527_v48 = vmul.f32 -1.442695, %v271_v28 }
  0x92   :  { %v262_v30 = vpop.f32.mrf.mxu3 }
  0x96   :  { %v250_v31 = vpop.f32.mrf.mxu2  ;;  %v174_v33 = vpop.f32.mrf.mxu1 }
  0x97   :  { %v2722_v32 = vpop.eup %2721  ;;  %v3152_v34 = vadd.f32 %v2716_v21, %v174_v33 }
  0x98   :  { %317 = vrot.lane.b32.xlu0 %v2722_v32, %s2981_s0 }
  0x9a   :  { %v264_v45 = vpop.f32.mrf.mxu3 }
  0x9e   :  { %v176_v35 = vpop.f32.mrf.mxu1 }
  0x9f   :  { %v3155_v36 = vadd.f32 %v2716_v21, %v176_v35 }
  0xa6   :  { %v179_v37 = vpop.f32.mrf.mxu1 }
  0xa7   :  { %v3157_v38 = vadd.f32 %v2716_v21, %v179_v37 }
  0xae   :  { %v181_v39 = vpop.f32.mrf.mxu1 }
  0xaf   :  { %v3159_v40 = vadd.f32 %v2716_v21, %v181_v39  ;;  %v122_v39 = vpop.f32.mrf.mxu0 }
  0xb6   :  { %v184_v41 = vpop.f32.mrf.mxu1 }
  0xb7   :  { %v3161_v42 = vadd.f32 %v2716_v21, %v184_v41  ;;  %v123_v41 = vadd.f32 %v3145_v23, %v122_v39 }
  0xbe   :  { %v186_v43 = vpop.f32.mrf.mxu1 }
  0xbf   :  { %v187_v44 = vadd.f32 %v2716_v21, %v186_v43 }
  0xc1   :  { %v272_v46 = vadd.f32 %v264_v45, %v187_v44 }
  0xc3   :  { %2723 = vtanh.f32 %v272_v46  ;;  %v2528_v63 = vmul.f32 -1.442695, %v272_v46 }
  0xc4   :  { %2725 = vpow2.f32 %v2527_v48 }
  0xc9   :  { %v2724_v47 = vpop.eup %2723 }
  0xca   :  { %319 = vrot.lane.b32.xlu0 %v2724_v47, %s2981_s0  ;;  %v2726_v49 = vpop.eup %2725 }
  0xcb   :  { %v279_v50 = vadd.f32 1.0, %v2726_v49 }
  0xcd   :  { %2727 = vrcp.f32 %v279_v50  ;;  %vm286_vm1 = vweird.f32 %v279_v50  ;;  %v292_v55 = vand.u32 2147483648, %v279_v50  ;;  %v290_v57 = vand.u32 2147483647, %v279_v50 }
  0xce   :  { %2729 = vpow2.f32 %v2528_v63 }
  0xcf   :  { %v293_v58 = vor.u32 1.1754944e-38, %v292_v55  ;;  %vm291_vm4 = vcmp.eq.f32.partialorder %v290_v57, 8.507059e+37 }
  0xd3   :  { %v2728_v51 = vpop.eup %2727 }
  0xd4   :  { %v282_v52 = vmul.f32 %v2728_v51, %v279_v50  ;;  %vm287_vm2 = vweird.f32 %v2728_v51  ;;  %v2730_v0 = vpop.eup %2729 }
  0xd5   :  { %vm288_vm3 = vmor %vm286_vm1, %vm287_vm2  ;;  %v280_v1 = vadd.f32 1.0, %v2730_v0 }
  0xd6   :  { %v283_v53 = vsub.f32 1.0, %v282_v52 }
  0xd7   :  { %2731 = vrcp.f32 %v280_v1  ;;  %v307_v9 = vand.u32 2147483648, %v280_v1  ;;  %vm301_vm6 = vweird.f32 %v280_v1  ;;  %v305_v10 = vand.u32 2147483647, %v280_v1 }
  0xd8   :  { %v284_v54 = vmul.f32 %v2728_v51, %v283_v53 }
  0xd9   :  { %v308_v13 = vor.u32 1.1754944e-38, %v307_v9  ;;  %vm306_vm8 = vcmp.eq.f32.partialorder %v305_v10, 8.507059e+37 }
  0xda   :  { %v285_v56 = vadd.f32 %v2728_v51, %v284_v54 }
  0xdc   :  { %v289_v59 = vsel %vm288_vm3, %v2728_v51, %v285_v56 }
  0xdd   :  { %v294_v61 = vsel %vm291_vm4, %v293_v58, %v289_v59  ;;  %v2732_v2 = vpop.eup %2731 }
  0xde   :  { %v297_v4 = vmul.f32 %v2732_v2, %v280_v1  ;;  %vm302_vm5 = vweird.f32 %v2732_v2  ;;  %v313_v19 = vmul.f32 0.0, %v294_v61 }
  0xdf   :  { %vm303_vm7 = vmor %vm301_vm6, %vm302_vm5 }
  0xe0   :  { %v298_v5 = vsub.f32 1.0, %v297_v4 }
  0xe2   :  { %v299_v6 = vmul.f32 %v2732_v2, %v298_v5 }
  0xe4   :  { %v300_v7 = vadd.f32 %v2732_v2, %v299_v6 }
  0xe6   :  { %v304_v11 = vsel %vm303_vm7, %v2732_v2, %v300_v7 }
  0xe7   :  { %v309_v14 = vsel %vm306_vm8, %v308_v13, %v304_v11 }
  0xe8   :  { %v314_v25 = vmul.f32 0.0, %v309_v14 }
 0x10a   :  { %v318_v60 = vpop.permute.xlu0 %317 }
 0x10b   :  { %v323_v62 = vmul.f32 %v318_v60, %v294_v61 }
 0x10d   :  { %327 = vrot.lane.b32.xlu1 %v323_v62, %s2981_s0 }
 0x13c   :  { %v320_v15 = vpop.permute.xlu0 %319 }
 0x13d   :  { %v324_v18 = vmul.f32 %v320_v15, %v309_v14 }
 0x13f   :  { %329 = vrot.lane.b32.xlu1 %v324_v18, %s2981_s0 }
 0x17f   :  { %v328_v20 = vpop.permute.xlu1 %327 }
 0x180   :  { %v3166_v21 = vadd.f32 %v328_v20, %v313_v19 }
 0x182   :  { %2733 = vtanh.f32 %v3166_v21 }
 0x188   :  { %v2734_v22 = vpop.eup %2733 }
 0x189   :  { %339 = vrot.lane.b32.xlu2 %v2734_v22, %s2981_s0 }
 0x1b1   :  { %v330_v26 = vpop.permute.xlu1 %329 }
 0x1b2   :  { %v3170_v27 = vadd.f32 %v330_v26, %v314_v25 }
 0x1b4   :  { %2735 = vtanh.f32 %v3170_v27 }
 0x1ba   :  { %v2736_v28 = vpop.eup %2735 }
 0x1bb   :  { %341 = vrot.lane.b32.xlu2 %v2736_v28, %s2981_s0 }
 0x1e3   :  { %v340_v30 = vpop.permute.xlu2 %339 }
 0x1e4   :  { %v3174_v32 = vmul.f32 %v340_v30, %v294_v61 }
 0x215   :  { %v342_v31 = vpop.permute.xlu2 %341 }
 0x216   :  { %v3176_v33 = vmul.f32 %v342_v31, %v309_v14 }
 0x218   :  { %v357_v35 = vpack.c.bf16 %v3176_v33, %v3174_v32 }
 0x21a   :  { %359 = vrot.lane.b32.xlu0 %v357_v35, %s2982_s24 }
 0x28c   :  { %v360_v37 = vpop.permute.xlu0 %359 }
 0x28d   :  { %2529 = vmatmul.msk.bf16.vlgmr.msrb.gmra.mxu2 %vm98_vm0, %v360_v37  ;;  %2530 = vmatmul.msk.bf16.vlgmr.msrb.gmra.mxu3 %vm98_vm0, %v360_v37 }
 0x28e   :  { %634 = vmatpush.bf16.msrb.mxu3 %v3088_v12  ;;  %620 = vmatpush.bf16.msrb.mxu2 %v3062_v3 }
 0x292   :  { %635 = vmatpush.bf16.msrb.mxu3 %v3101_v16  ;;  %621 = vmatpush.bf16.msrb.mxu2 %v3077_v8 }
 0x310   :  { %v373_v43 = vpop.f32.mrf.mxu2  ;;  %v387_v44 = vpop.f32.mrf.mxu3 }
 0x311   :  { %v396_v45 = vadd.f32 %v373_v43, %v123_v41 }
 0x313   :  { %2737 = vtanh.f32 %v396_v45  ;;  %v2531_v54 = vmul.f32 -1.442695, %v396_v45  ;;  %v125_v45 = vpop.f32.mrf.mxu0 }
 0x318   :  { %v375_v46 = vpop.f32.mrf.mxu2  ;;  %v389_v47 = vpop.f32.mrf.mxu3 }
 0x319   :  { %v2738_v48 = vpop.eup %2737  ;;  %v397_v49 = vadd.f32 %v389_v47, %v3161_v42  ;;  %v126_v46 = vadd.f32 %v3145_v23, %v125_v45 }
 0x31a   :  { %442 = vrot.lane.b32.xlu1 %v2738_v48, %s2981_s0 }
 0x31b   :  { %2739 = vtanh.f32 %v397_v49  ;;  %v2532_v51 = vmul.f32 -1.442695, %v397_v49 }
 0x31d   :  { %2741 = vpow2.f32 %v2532_v51 }
 0x321   :  { %v2740_v50 = vpop.eup %2739 }
 0x322   :  { %444 = vrot.lane.b32.xlu2 %v2740_v50, %s2981_s0 }
 0x323   :  { %v2742_v52 = vpop.eup %2741 }
 0x324   :  { %v405_v53 = vadd.f32 1.0, %v2742_v52 }
 0x326   :  { %2743 = vrcp.f32 %v405_v53  ;;  %v432_v62 = vand.u32 2147483648, %v405_v53  ;;  %vm426_vm10 = vweird.f32 %v405_v53  ;;  %v430_v63 = vand.u32 2147483647, %v405_v53 }
 0x327   :  { %2745 = vpow2.f32 %v2531_v54 }
 0x328   :  { %v433_v2 = vor.u32 1.1754944e-38, %v432_v62  ;;  %vm431_vm12 = vcmp.eq.f32.partialorder %v430_v63, 8.507059e+37 }
 0x32c   :  { %v2744_v55 = vpop.eup %2743 }
 0x32d   :  { %v2746_v56 = vpop.eup %2745  ;;  %v422_v57 = vmul.f32 %v2744_v55, %v405_v53  ;;  %vm427_vm9 = vweird.f32 %v2744_v55 }
 0x32e   :  { %v404_v58 = vadd.f32 1.0, %v2746_v56  ;;  %vm428_vm11 = vmor %vm426_vm10, %vm427_vm9 }
 0x32f   :  { %v423_v59 = vsub.f32 1.0, %v422_v57 }
 0x330   :  { %2747 = vrcp.f32 %v404_v58  ;;  %v417_v11 = vand.u32 2147483648, %v404_v58  ;;  %vm411_vm14 = vweird.f32 %v404_v58  ;;  %v415_v13 = vand.u32 2147483647, %v404_v58 }
 0x331   :  { %v424_v42 = vmul.f32 %v2744_v55, %v423_v59 }
 0x332   :  { %v418_v15 = vor.u32 1.1754944e-38, %v417_v11  ;;  %vm416_vm1 = vcmp.eq.f32.partialorder %v415_v13, 8.507059e+37 }
 0x333   :  { %v425_v60 = vadd.f32 %v2744_v55, %v424_v42 }
 0x335   :  { %v429_v0 = vsel %vm428_vm11, %v2744_v55, %v425_v60 }
 0x336   :  { %v2748_v61 = vpop.eup %2747  ;;  %v434_v5 = vsel %vm431_vm12, %v433_v2, %v429_v0 }
 0x337   :  { %v407_v1 = vmul.f32 %v2748_v61, %v404_v58  ;;  %vm412_vm13 = vweird.f32 %v2748_v61  ;;  %v439_v22 = vmul.f32 %v434_v5, %v3170_v27 }
 0x338   :  { %vm413_vm15 = vmor %vm411_vm14, %vm412_vm13 }
 0x339   :  { %v408_v7 = vsub.f32 1.0, %v407_v1 }
 0x33b   :  { %v409_v9 = vmul.f32 %v2748_v61, %v408_v7 }
 0x33d   :  { %v410_v10 = vadd.f32 %v2748_v61, %v409_v9 }
 0x33f   :  { %v414_v14 = vsel %vm413_vm15, %v2748_v61, %v410_v10 }
 0x340   :  { %v419_v19 = vsel %vm416_vm1, %v418_v15, %v414_v14 }
 0x341   :  { %v438_v30 = vmul.f32 %v419_v19, %v3166_v21 }
 0x37c   :  { %v445_v4 = vpop.permute.xlu2 %444 }
 0x37d   :  { %v449_v6 = vmul.f32 %v445_v4, %v434_v5 }
 0x37f   :  { %454 = vrot.lane.b32.xlu1 %v449_v6, %s2981_s0 }
 0x38c   :  { %v443_v18 = vpop.permute.xlu1 %442 }
 0x38d   :  { %v448_v20 = vmul.f32 %v443_v18, %v419_v19 }
 0x38f   :  { %452 = vrot.lane.b32.xlu0 %v448_v20, %s2981_s0 }
 0x3f1   :  { %v455_v25 = vpop.permute.xlu1 %454 }
 0x3f2   :  { %v3194_v26 = vadd.f32 %v455_v25, %v439_v22 }
 0x3f4   :  { %2749 = vtanh.f32 %v3194_v26 }
 0x3fa   :  { %v2750_v28 = vpop.eup %2749 }
 0x3fb   :  { %466 = vrot.lane.b32.xlu0 %v2750_v28, %s2981_s0 }
 0x401   :  { %v453_v31 = vpop.permute.xlu0 %452 }
 0x402   :  { %v3199_v35 = vadd.f32 %v453_v31, %v438_v30 }
 0x404   :  { %2751 = vtanh.f32 %v3199_v35 }
 0x40a   :  { %v2752_v37 = vpop.eup %2751 }
 0x40b   :  { %464 = vrot.lane.b32.xlu2 %v2752_v37, %s2981_s0 }
 0x465   :  { %v465_v39 = vpop.permute.xlu2 %464 }
 0x466   :  { %v3203_v41 = vmul.f32 %v465_v39, %v419_v19 }
 0x46d   :  { %v467_v27 = vpop.permute.xlu0 %466 }
 0x46e   :  { %v3205_v43 = vmul.f32 %v467_v27, %v434_v5 }
 0x470   :  { %v482_v44 = vpack.c.bf16 %v3205_v43, %v3203_v41 }
 0x472   :  { %484 = vrot.lane.b32.xlu1 %v482_v44, %s2982_s24 }
 0x4e4   :  { %v485_v21 = vpop.permute.xlu1 %484 }
 0x4e5   :  { %2533 = vmatmul.msk.bf16.vlgmr.msra.gmra.mxu2 %vm98_vm0, %v485_v21  ;;  %2534 = vmatmul.msk.bf16.vlgmr.msra.gmra.mxu3 %vm98_vm0, %v485_v21 }
 0x4e6   :  { %884 = vmatpush.bf16.msra.mxu3 %v3088_v12  ;;  %870 = vmatpush.bf16.msra.mxu2 %v3062_v3 }
 0x4ea   :  { %885 = vmatpush.bf16.msra.mxu3 %v3101_v16  ;;  %871 = vmatpush.bf16.msra.mxu2 %v3077_v8 }
 0x568   :  { %v498_v47 = vpop.f32.mrf.mxu2  ;;  %v512_v48 = vpop.f32.mrf.mxu3 }
 0x569   :  { %v521_v49 = vadd.f32 %v498_v47, %v126_v46 }
 0x56b   :  { %2753 = vtanh.f32 %v521_v49  ;;  %v2535_v55 = vmul.f32 -1.442695, %v521_v49 }
 0x570   :  { %v500_v50 = vpop.f32.mrf.mxu2  ;;  %v514_v51 = vpop.f32.mrf.mxu3 }
 0x571   :  { %v2754_v52 = vpop.eup %2753  ;;  %v522_v53 = vadd.f32 %v514_v51, %v3159_v40  ;;  %v127_v50 = vpop.f32.mrf.mxu0 }
 0x572   :  { %567 = vrot.lane.b32.xlu2 %v2754_v52, %s2981_s0  ;;  %v128_v51 = vadd.f32 %v3145_v23, %v127_v50 }
 0x573   :  { %2755 = vtanh.f32 %v522_v53  ;;  %v2536_v60 = vmul.f32 -1.442695, %v522_v53 }
 0x574   :  { %2757 = vpow2.f32 %v2535_v55 }
 0x579   :  { %v2756_v54 = vpop.eup %2755 }
 0x57a   :  { %569 = vrot.lane.b32.xlu0 %v2756_v54, %s2981_s0  ;;  %v2758_v56 = vpop.eup %2757 }
 0x57b   :  { %v529_v57 = vadd.f32 1.0, %v2758_v56 }
 0x57d   :  { %2759 = vrcp.f32 %v529_v57  ;;  %v542_v40 = vand.u32 2147483648, %v529_v57  ;;  %vm536_vm3 = vweird.f32 %v529_v57  ;;  %v540_v63 = vand.u32 2147483647, %v529_v57 }
 0x57e   :  { %2761 = vpow2.f32 %v2536_v60 }
 0x57f   :  { %v543_v2 = vor.u32 1.1754944e-38, %v542_v40  ;;  %vm541_vm5 = vcmp.eq.f32.partialorder %v540_v63, 8.507059e+37 }
 0x583   :  { %v2760_v58 = vpop.eup %2759 }
 0x584   :  { %v532_v59 = vmul.f32 %v2760_v58, %v529_v57  ;;  %vm537_vm2 = vweird.f32 %v2760_v58  ;;  %v2762_v0 = vpop.eup %2761 }
 0x585   :  { %vm538_vm4 = vmor %vm536_vm3, %vm537_vm2  ;;  %v530_v4 = vadd.f32 1.0, %v2762_v0 }
 0x586   :  { %v533_v42 = vsub.f32 1.0, %v532_v59 }
 0x587   :  { %2763 = vrcp.f32 %v530_v4  ;;  %v557_v15 = vand.u32 2147483648, %v530_v4  ;;  %vm551_vm7 = vweird.f32 %v530_v4  ;;  %v555_v18 = vand.u32 2147483647, %v530_v4 }
 0x588   :  { %v534_v61 = vmul.f32 %v2760_v58, %v533_v42 }
 0x589   :  { %v558_v20 = vor.u32 1.1754944e-38, %v557_v15  ;;  %vm556_vm9 = vcmp.eq.f32.partialorder %v555_v18, 8.507059e+37 }
 0x58a   :  { %v535_v62 = vadd.f32 %v2760_v58, %v534_v61 }
 0x58c   :  { %v539_v1 = vsel %vm538_vm4, %v2760_v58, %v535_v62 }
 0x58d   :  { %v544_v6 = vsel %vm541_vm5, %v543_v2, %v539_v1  ;;  %v2764_v9 = vpop.eup %2763 }
 0x58e   :  { %v547_v10 = vmul.f32 %v2764_v9, %v530_v4  ;;  %vm552_vm6 = vweird.f32 %v2764_v9  ;;  %v563_v30 = vmul.f32 %v544_v6, %v3199_v35 }
 0x58f   :  { %vm553_vm8 = vmor %vm551_vm7, %vm552_vm6 }
 0x590   :  { %v548_v11 = vsub.f32 1.0, %v547_v10 }
 0x592   :  { %v549_v13 = vmul.f32 %v2764_v9, %v548_v11 }
 0x594   :  { %v550_v14 = vadd.f32 %v2764_v9, %v549_v13 }
 0x596   :  { %v554_v19 = vsel %vm553_vm8, %v2764_v9, %v550_v14 }
 0x597   :  { %v559_v25 = vsel %vm556_vm9, %v558_v20, %v554_v19 }
 0x598   :  { %v564_v39 = vmul.f32 %v559_v25, %v3194_v26 }
 0x5cc   :  { %v568_v5 = vpop.permute.xlu2 %567 }
 0x5cd   :  { %v573_v7 = vmul.f32 %v568_v5, %v544_v6 }
 0x5cf   :  { %577 = vrot.lane.b32.xlu1 %v573_v7, %s2981_s0 }
 0x5ec   :  { %v570_v22 = vpop.permute.xlu0 %569 }
 0x5ed   :  { %v574_v28 = vmul.f32 %v570_v22, %v559_v25 }
 0x5ef   :  { %579 = vrot.lane.b32.xlu2 %v574_v28, %s2981_s0 }
 0x641   :  { %v578_v31 = vpop.permute.xlu1 %577 }
 0x642   :  { %v3223_v37 = vadd.f32 %v578_v31, %v563_v30 }
 0x644   :  { %2765 = vtanh.f32 %v3223_v37 }
 0x649   :  { %v580_v27 = vpop.permute.xlu2 %579 }
 0x64a   :  { %v2766_v44 = vpop.eup %2765  ;;  %v3227_v21 = vadd.f32 %v580_v27, %v564_v39 }
 0x64b   :  { %589 = vrot.lane.b32.xlu0 %v2766_v44, %s2981_s0 }
 0x64c   :  { %2767 = vtanh.f32 %v3227_v21 }
 0x652   :  { %v2768_v45 = vpop.eup %2767 }
 0x653   :  { %591 = vrot.lane.b32.xlu1 %v2768_v45, %s2981_s0 }
 0x6bd   :  { %v590_v46 = vpop.permute.xlu0 %589 }
 0x6be   :  { %v3232_v47 = vmul.f32 %v590_v46, %v544_v6 }
 0x6c5   :  { %v592_v35 = vpop.permute.xlu1 %591 }
 0x6c6   :  { %v3234_v48 = vmul.f32 %v592_v35, %v559_v25 }
 0x6c8   :  { %v607_v26 = vpack.c.bf16 %v3234_v48, %v3232_v47 }
 0x6ca   :  { %609 = vrot.lane.b32.xlu2 %v607_v26, %s2982_s24 }
 0x724   :  { %v610_v49 = vpop.permute.xlu2 %609 }
 0x725   :  { %2537 = vmatmul.msk.bf16.vlgmr.msrb.gmra.mxu2 %vm98_vm0, %v610_v49  ;;  %2538 = vmatmul.msk.bf16.vlgmr.msrb.gmra.mxu3 %vm98_vm0, %v610_v49 }
 0x726   :  { %1134 = vmatpush.bf16.msrb.mxu3 %v3088_v12  ;;  %1120 = vmatpush.bf16.msrb.mxu2 %v3062_v3 }
 0x72a   :  { %1135 = vmatpush.bf16.msrb.mxu3 %v3101_v16  ;;  %1121 = vmatpush.bf16.msrb.mxu2 %v3077_v8 }
 0x7a8   :  { %v623_v52 = vpop.f32.mrf.mxu2  ;;  %v637_v53 = vpop.f32.mrf.mxu3 }
 0x7a9   :  { %v646_v54 = vadd.f32 %v623_v52, %v128_v51  ;;  %v130_v52 = vpop.f32.mrf.mxu0 }
 0x7ab   :  { %2769 = vtanh.f32 %v646_v54  ;;  %v2539_v12 = vmul.f32 -1.442695, %v646_v54 }
 0x7b0   :  { %v625_v55 = vpop.f32.mrf.mxu2  ;;  %v639_v56 = vpop.f32.mrf.mxu3 }
 0x7b1   :  { %v2770_v57 = vpop.eup %2769  ;;  %v647_v58 = vadd.f32 %v639_v56, %v3157_v38  ;;  %v3270_v53 = vpop.f32.mrf.mxu0  ;;  %v131_v56 = vadd.f32 %v3145_v23, %v130_v52 }
 0x7b2   :  { %692 = vrot.lane.b32.xlu0 %v2770_v57, %s2981_s0 }
 0x7b3   :  { %2771 = vtanh.f32 %v647_v58  ;;  %v2540_v8 = vmul.f32 -1.442695, %v647_v58 }
 0x7b4   :  { %2773 = vpow2.f32 %v2539_v12 }
 0x7b5   :  { %2775 = vpow2.f32 %v2540_v8 }
 0x7b9   :  { %v2772_v3 = vpop.eup %2771  ;;  %v3272_v54 = vpop.f32.mrf.mxu0 }
 0x7ba   :  { %694 = vrot.lane.b32.xlu1 %v2772_v3, %s2981_s0  ;;  %v2774_v16 = vpop.eup %2773 }
 0x7bb   :  { %v654_v59 = vadd.f32 1.0, %v2774_v16  ;;  %v2776_v42 = vpop.eup %2775 }
 0x7bc   :  { %v655_v60 = vadd.f32 1.0, %v2776_v42 }
 0x7bd   :  { %2777 = vrcp.f32 %v654_v59  ;;  %v667_v4 = vand.u32 2147483648, %v654_v59  ;;  %vm661_vm11 = vweird.f32 %v654_v59  ;;  %v665_v5 = vand.u32 2147483647, %v654_v59 }
 0x7be   :  { %2779 = vrcp.f32 %v655_v60  ;;  %v682_v15 = vand.u32 2147483648, %v655_v60  ;;  %vm676_vm15 = vweird.f32 %v655_v60  ;;  %v680_v18 = vand.u32 2147483647, %v655_v60 }
 0x7bf   :  { %v668_v9 = vor.u32 1.1754944e-38, %v667_v4  ;;  %vm666_vm13 = vcmp.eq.f32.partialorder %v665_v5, 8.507059e+37 }
 0x7c0   :  { %v683_v20 = vor.u32 1.1754944e-38, %v682_v15  ;;  %vm681_vm2 = vcmp.eq.f32.partialorder %v680_v18, 8.507059e+37 }
 0x7c1   :  { %v3274_v55 = vpop.f32.mrf.mxu0 }
 0x7c3   :  { %v2778_v61 = vpop.eup %2777 }
 0x7c4   :  { %v657_v62 = vmul.f32 %v2778_v61, %v654_v59  ;;  %v2780_v38 = vpop.eup %2779  ;;  %vm662_vm10 = vweird.f32 %v2778_v61 }
 0x7c5   :  { %v672_v0 = vmul.f32 %v2780_v38, %v655_v60  ;;  %vm663_vm12 = vmor %vm661_vm11, %vm662_vm10  ;;  %vm677_vm14 = vweird.f32 %v2780_v38 }
 0x7c6   :  { %v658_v40 = vsub.f32 1.0, %v657_v62  ;;  %vm678_vm1 = vmor %vm676_vm15, %vm677_vm14 }
 0x7c7   :  { %v673_v2 = vsub.f32 1.0, %v672_v0 }
 0x7c8   :  { %v659_v63 = vmul.f32 %v2778_v61, %v658_v40 }
 0x7c9   :  { %v674_v7 = vmul.f32 %v2780_v38, %v673_v2 }
 0x7ca   :  { %v660_v1 = vadd.f32 %v2778_v61, %v659_v63 }
 0x7cb   :  { %v675_v14 = vadd.f32 %v2780_v38, %v674_v7 }
 0x7cc   :  { %v664_v6 = vsel %vm663_vm12, %v2778_v61, %v660_v1 }
 0x7cd   :  { %v669_v11 = vsel %vm666_vm13, %v668_v9, %v664_v6  ;;  %v679_v19 = vsel %vm678_vm1, %v2780_v38, %v675_v14 }
 0x7ce   :  { %v684_v25 = vsel %vm681_vm2, %v683_v20, %v679_v19  ;;  %v688_v30 = vmul.f32 %v669_v11, %v3223_v37 }
 0x7cf   :  { %v689_v44 = vmul.f32 %v684_v25, %v3227_v21 }
 0x824   :  { %v693_v10 = vpop.permute.xlu0 %692 }
 0x825   :  { %v698_v13 = vmul.f32 %v693_v10, %v669_v11 }
 0x827   :  { %702 = vrot.lane.b32.xlu2 %v698_v13, %s2981_s0 }
 0x82c   :  { %v695_v22 = vpop.permute.xlu1 %694 }
 0x82d   :  { %v699_v28 = vmul.f32 %v695_v22, %v684_v25 }
 0x82f   :  { %704 = vrot.lane.b32.xlu0 %v699_v28, %s2981_s0 }
 0x881   :  { %v703_v31 = vpop.permute.xlu2 %702 }
 0x882   :  { %v3252_v39 = vadd.f32 %v703_v31, %v688_v30 }
 0x884   :  { %2781 = vtanh.f32 %v3252_v39 }
 0x88a   :  { %v2782_v27 = vpop.eup %2781 }
 0x88b   :  { %714 = vrot.lane.b32.xlu1 %v2782_v27, %s2981_s0 }
 0x8a1   :  { %v705_v45 = vpop.permute.xlu0 %704 }
 0x8a2   :  { %v3257_v46 = vadd.f32 %v705_v45, %v689_v44 }
 0x8a4   :  { %2783 = vtanh.f32 %v3257_v46 }
 0x8aa   :  { %v2784_v35 = vpop.eup %2783 }
 0x8ab   :  { %716 = vrot.lane.b32.xlu2 %v2784_v35, %s2981_s0 }
 0x8fd   :  { %v715_v26 = vpop.permute.xlu1 %714 }
 0x8fe   :  { %v3261_v49 = vmul.f32 %v715_v26, %v669_v11 }
 0x905   :  { %v717_v37 = vpop.permute.xlu2 %716 }
 0x906   :  { %v3263_v50 = vmul.f32 %v717_v37, %v684_v25 }
 0x908   :  { %v732_v51 = vpack.c.bf16 %v3263_v50, %v3261_v49 }
 0x90a   :  { %734 = vrot.lane.b32.xlu0 %v732_v51, %s2982_s24 }
 0x97c   :  { %v735_v21 = vpop.permute.xlu0 %734 }
 0x97d   :  { %2541 = vmatmul.msk.bf16.vlgmr.msrb.gmra.mxu0 %vm98_vm0, %v735_v21  ;;  %2542 = vmatmul.msk.bf16.vlgmr.msrb.gmra.mxu1 %vm98_vm0, %v735_v21 }
 0x9fa   :  { %v748_v57 = vpop.f32.mrf.mxu0  ;;  %v762_v58 = vpop.f32.mrf.mxu1 }
 0x9fb   :  { %v771_v3 = vadd.f32 %v748_v57, %v131_v56 }
 0x9fd   :  { %2785 = vtanh.f32 %v771_v3  ;;  %v2543_v40 = vmul.f32 -1.442695, %v771_v3 }
 0xa02   :  { %v750_v12 = vpop.f32.mrf.mxu0  ;;  %v764_v8 = vpop.f32.mrf.mxu1 }
 0xa03   :  { %v2786_v16 = vpop.eup %2785  ;;  %v772_v59 = vadd.f32 %v764_v8, %v3155_v36  ;;  %v133_v8 = vadd.f32 %v3145_v23, %v3270_v53 }
 0xa04   :  { %817 = vrot.lane.b32.xlu1 %v2786_v16, %s2981_s0 }
 0xa05   :  { %2787 = vtanh.f32 %v772_v59  ;;  %v2544_v60 = vmul.f32 -1.442695, %v772_v59 }
 0xa07   :  { %2789 = vpow2.f32 %v2544_v60 }
 0xa0b   :  { %v2788_v42 = vpop.eup %2787 }
 0xa0c   :  { %819 = vrot.lane.b32.xlu2 %v2788_v42, %s2981_s0 }
 0xa0d   :  { %v2790_v61 = vpop.eup %2789 }
 0xa0e   :  { %v780_v62 = vadd.f32 1.0, %v2790_v61 }
 0xa10   :  { %2791 = vrcp.f32 %v780_v62  ;;  %v807_v6 = vand.u32 2147483648, %v780_v62  ;;  %vm801_vm4 = vweird.f32 %v780_v62  ;;  %v805_v7 = vand.u32 2147483647, %v780_v62 }
 0xa11   :  { %2793 = vpow2.f32 %v2543_v40 }
 0xa12   :  { %v808_v11 = vor.u32 1.1754944e-38, %v807_v6  ;;  %vm806_vm6 = vcmp.eq.f32.partialorder %v805_v7, 8.507059e+37 }
 0xa16   :  { %v2792_v38 = vpop.eup %2791 }
 0xa17   :  { %v2794_v63 = vpop.eup %2793  ;;  %v797_v0 = vmul.f32 %v2792_v38, %v780_v62  ;;  %vm802_vm3 = vweird.f32 %v2792_v38 }
 0xa18   :  { %v779_v1 = vadd.f32 1.0, %v2794_v63  ;;  %vm803_vm5 = vmor %vm801_vm4, %vm802_vm3 }
 0xa19   :  { %v798_v2 = vsub.f32 1.0, %v797_v0 }
 0xa1a   :  { %2795 = vrcp.f32 %v779_v1  ;;  %v792_v22 = vand.u32 2147483648, %v779_v1  ;;  %vm786_vm8 = vweird.f32 %v779_v1  ;;  %v790_v25 = vand.u32 2147483647, %v779_v1 }
 0xa1b   :  { %v799_v36 = vmul.f32 %v2792_v38, %v798_v2 }
 0xa1c   :  { %v793_v30 = vor.u32 1.1754944e-38, %v792_v22  ;;  %vm791_vm10 = vcmp.eq.f32.partialorder %v790_v25, 8.507059e+37 }
 0xa1d   :  { %v800_v4 = vadd.f32 %v2792_v38, %v799_v36 }
 0xa1f   :  { %v804_v9 = vsel %vm803_vm5, %v2792_v38, %v800_v4 }
 0xa20   :  { %v2796_v5 = vpop.eup %2795  ;;  %v809_v14 = vsel %vm806_vm6, %v808_v11, %v804_v9 }
 0xa21   :  { %v782_v10 = vmul.f32 %v2796_v5, %v779_v1  ;;  %vm787_vm7 = vweird.f32 %v2796_v5  ;;  %v814_v45 = vmul.f32 %v809_v14, %v3257_v46 }
 0xa22   :  { %vm788_vm9 = vmor %vm786_vm8, %vm787_vm7 }
 0xa23   :  { %v783_v18 = vsub.f32 1.0, %v782_v10 }
 0xa25   :  { %v784_v19 = vmul.f32 %v2796_v5, %v783_v18 }
 0xa27   :  { %v785_v20 = vadd.f32 %v2796_v5, %v784_v19 }
 0xa29   :  { %v789_v28 = vsel %vm788_vm9, %v2796_v5, %v785_v20 }
 0xa2a   :  { %v794_v27 = vsel %vm791_vm10, %v793_v30, %v789_v28 }
 0xa2b   :  { %v813_v51 = vmul.f32 %v794_v27, %v3252_v39 }
 0xa66   :  { %v820_v13 = vpop.permute.xlu2 %819 }
 0xa67   :  { %v824_v15 = vmul.f32 %v820_v13, %v809_v14 }
 0xa69   :  { %829 = vrot.lane.b32.xlu1 %v824_v15, %s2981_s0 }
 0xa76   :  { %v818_v31 = vpop.permute.xlu1 %817 }
 0xa77   :  { %v823_v44 = vmul.f32 %v818_v31, %v794_v27 }
 0xa79   :  { %827 = vrot.lane.b32.xlu0 %v823_v44, %s2981_s0 }
 0xadb   :  { %v830_v35 = vpop.permute.xlu1 %829 }
 0xadc   :  { %v3283_v26 = vadd.f32 %v830_v35, %v814_v45 }
 0xade   :  { %2797 = vtanh.f32 %v3283_v26 }
 0xae4   :  { %v2798_v37 = vpop.eup %2797 }
 0xae5   :  { %841 = vrot.lane.b32.xlu0 %v2798_v37, %s2981_s0 }
 0xaeb   :  { %v828_v21 = vpop.permute.xlu0 %827 }
 0xaec   :  { %v3288_v52 = vadd.f32 %v828_v21, %v813_v51 }
 0xaee   :  { %2799 = vtanh.f32 %v3288_v52 }
 0xaf4   :  { %v2800_v56 = vpop.eup %2799 }
 0xaf5   :  { %839 = vrot.lane.b32.xlu2 %v2800_v56, %s2981_s0 }
 0xb4f   :  { %v840_v57 = vpop.permute.xlu2 %839 }
 0xb50   :  { %v3292_v58 = vmul.f32 %v840_v57, %v794_v27 }
 0xb57   :  { %v842_v46 = vpop.permute.xlu0 %841 }
 0xb58   :  { %v3294_v3 = vmul.f32 %v842_v46, %v809_v14 }
 0xb5a   :  { %v857_v12 = vpack.c.bf16 %v3294_v3, %v3292_v58 }
 0xb5c   :  { %859 = vrot.lane.b32.xlu1 %v857_v12, %s2982_s24 }
 0xbce   :  { %v860_v39 = vpop.permute.xlu1 %859 }
 0xbcf   :  { %2545 = vmatmul.msk.bf16.vlgmr.msra.gmra.mxu2 %vm98_vm0, %v860_v39  ;;  %2546 = vmatmul.msk.bf16.vlgmr.msra.gmra.mxu3 %vm98_vm0, %v860_v39 }
 0xc52   :  { %v873_v16 = vpop.f32.mrf.mxu2  ;;  %v887_v59 = vpop.f32.mrf.mxu3 }
 0xc53   :  { %v896_v42 = vadd.f32 %v873_v16, %v133_v8 }
 0xc55   :  { %2801 = vtanh.f32 %v896_v42  ;;  %v2547_v63 = vmul.f32 -1.442695, %v896_v42 }
 0xc5a   :  { %v875_v60 = vpop.f32.mrf.mxu2  ;;  %v889_v61 = vpop.f32.mrf.mxu3 }
 0xc5b   :  { %v2802_v62 = vpop.eup %2801  ;;  %v897_v40 = vadd.f32 %v889_v61, %v3152_v34  ;;  %v136_v61 = vadd.f32 %v3145_v23, %v3272_v54 }
 0xc5c   :  { %942 = vrot.lane.b32.xlu2 %v2802_v62, %s2981_s0 }
 0xc5d   :  { %2803 = vtanh.f32 %v897_v40  ;;  %v2548_v4 = vmul.f32 -1.442695, %v897_v40 }
 0xc5e   :  { %2805 = vpow2.f32 %v2547_v63  ;;  %v2977_v63 = vld [vmem:[%s3732_s5] ss:$0 sm:$0xff] }
 0xc63   :  { %v2804_v38 = vpop.eup %2803 }
 0xc64   :  { %944 = vrot.lane.b32.xlu0 %v2804_v38, %s2981_s0  ;;  %v2806_v0 = vpop.eup %2805 }
 0xc65   :  { %v904_v1 = vadd.f32 1.0, %v2806_v0  ;;  %v172_v0 = vadd.f32 %v2977_v63, %v3150_v29 }
 0xc67   :  { %2807 = vrcp.f32 %v904_v1  ;;  %v917_v34 = vand.u32 2147483648, %v904_v1  ;;  %vm911_vm12 = vweird.f32 %v904_v1  ;;  %v915_v7 = vand.u32 2147483647, %v904_v1 }
 0xc68   :  { %2809 = vpow2.f32 %v2548_v4 }
 0xc69   :  { %v918_v11 = vor.u32 1.1754944e-38, %v917_v34  ;;  %vm916_vm14 = vcmp.eq.f32.partialorder %v915_v7, 8.507059e+37 }
 0xc6d   :  { %v2808_v53 = vpop.eup %2807 }
 0xc6e   :  { %v907_v2 = vmul.f32 %v2808_v53, %v904_v1  ;;  %vm912_vm11 = vweird.f32 %v2808_v53  ;;  %v2810_v9 = vpop.eup %2809 }
 0xc6f   :  { %vm913_vm13 = vmor %vm911_vm12, %vm912_vm11  ;;  %v905_v13 = vadd.f32 1.0, %v2810_v9 }
 0xc70   :  { %v908_v36 = vsub.f32 1.0, %v907_v2 }
 0xc71   :  { %2811 = vrcp.f32 %v905_v13  ;;  %v932_v30 = vand.u32 2147483648, %v905_v13  ;;  %vm926_vm1 = vweird.f32 %v905_v13  ;;  %v930_v31 = vand.u32 2147483647, %v905_v13 }
 0xc72   :  { %v909_v5 = vmul.f32 %v2808_v53, %v908_v36 }
 0xc73   :  { %v933_v44 = vor.u32 1.1754944e-38, %v932_v30  ;;  %vm931_vm3 = vcmp.eq.f32.partialorder %v930_v31, 8.507059e+37 }
 0xc74   :  { %v910_v6 = vadd.f32 %v2808_v53, %v909_v5 }
 0xc76   :  { %v914_v10 = vsel %vm913_vm13, %v2808_v53, %v910_v6 }
 0xc77   :  { %v919_v15 = vsel %vm916_vm14, %v918_v11, %v914_v10  ;;  %v2812_v19 = vpop.eup %2811 }
 0xc78   :  { %v922_v20 = vmul.f32 %v2812_v19, %v905_v13  ;;  %vm927_vm15 = vweird.f32 %v2812_v19  ;;  %v938_v51 = vmul.f32 %v919_v15, %v3288_v52 }
 0xc79   :  { %vm928_vm2 = vmor %vm926_vm1, %vm927_vm15 }
 0xc7a   :  { %v923_v22 = vsub.f32 1.0, %v922_v20 }
 0xc7c   :  { %v924_v25 = vmul.f32 %v2812_v19, %v923_v22 }
 0xc7e   :  { %v925_v28 = vadd.f32 %v2812_v19, %v924_v25 }
 0xc80   :  { %v929_v27 = vsel %vm928_vm2, %v2812_v19, %v925_v28 }
 0xc81   :  { %v934_v35 = vsel %vm931_vm3, %v933_v44, %v929_v27 }
 0xc82   :  { %v939_v57 = vmul.f32 %v934_v35, %v3283_v26 }
 0xcb6   :  { %v943_v14 = vpop.permute.xlu2 %942 }
 0xcb7   :  { %v948_v18 = vmul.f32 %v943_v14, %v919_v15 }
 0xcb9   :  { %952 = vrot.lane.b32.xlu1 %v948_v18, %s2981_s0 }
 0xcd6   :  { %v945_v45 = vpop.permute.xlu0 %944 }
 0xcd7   :  { %v949_v37 = vmul.f32 %v945_v45, %v934_v35 }
 0xcd9   :  { %954 = vrot.lane.b32.xlu2 %v949_v37, %s2981_s0 }
 0xd2b   :  { %v953_v21 = vpop.permute.xlu1 %952 }
 0xd2c   :  { %v3309_v56 = vadd.f32 %v953_v21, %v938_v51 }
 0xd2e   :  { %2813 = vtanh.f32 %v3309_v56 }
 0xd33   :  { %v955_v46 = vpop.permute.xlu2 %954 }
 0xd34   :  { %v2814_v12 = vpop.eup %2813  ;;  %v3313_v39 = vadd.f32 %v955_v46, %v939_v57 }
 0xd35   :  { %964 = vrot.lane.b32.xlu0 %v2814_v12, %s2981_s0 }
 0xd36   :  { %2815 = vtanh.f32 %v3313_v39 }
 0xd3c   :  { %v2816_v8 = vpop.eup %2815 }
 0xd3d   :  { %966 = vrot.lane.b32.xlu1 %v2816_v8, %s2981_s0 }
 0xda7   :  { %v965_v16 = vpop.permute.xlu0 %964 }
 0xda8   :  { %v3318_v59 = vmul.f32 %v965_v16, %v919_v15 }
 0xdaf   :  { %v967_v52 = vpop.permute.xlu1 %966 }
 0xdb0   :  { %v3320_v42 = vmul.f32 %v967_v52, %v934_v35 }
 0xdb2   :  { %v982_v26 = vpack.c.bf16 %v3320_v42, %v3318_v59 }
 0xdb4   :  { %984 = vrot.lane.b32.xlu2 %v982_v26, %s2982_s24 }
 0xe0e   :  { %v985_v60 = vpop.permute.xlu2 %984 }
 0xe0f   :  { %2549 = vmatmul.msk.bf16.vlgmr.msra.gmra.mxu0 %vm98_vm0, %v985_v60  ;;  %2550 = vmatmul.msk.bf16.vlgmr.msra.gmra.mxu1 %vm98_vm0, %v985_v60 }
 0xe8c   :  { %v998_v62 = vpop.f32.mrf.mxu0  ;;  %v1012_v40 = vpop.f32.mrf.mxu1 }
 0xe8d   :  { %v1021_v38 = vadd.f32 %v998_v62, %v136_v61 }
 0xe8f   :  { %2817 = vtanh.f32 %v1021_v38  ;;  %v2551_v23 = vmul.f32 -1.442695, %v1021_v38 }
 0xe94   :  { %v1000_v1 = vpop.f32.mrf.mxu0  ;;  %v1014_v53 = vpop.f32.mrf.mxu1 }
 0xe95   :  { %v2818_v2 = vpop.eup %2817  ;;  %v1022_v36 = vadd.f32 %v1014_v53, %v172_v0 }
 0xe96   :  { %1067 = vrot.lane.b32.xlu0 %v2818_v2, %s2981_s0 }
 0xe97   :  { %2819 = vtanh.f32 %v1022_v36  ;;  %v2552_v54 = vmul.f32 -1.442695, %v1022_v36 }
 0xe98   :  { %2821 = vpow2.f32 %v2551_v23 }
 0xe99   :  { %2823 = vpow2.f32 %v2552_v54 }
 0xe9d   :  { %v2820_v4 = vpop.eup %2819 }
 0xe9e   :  { %1069 = vrot.lane.b32.xlu1 %v2820_v4, %s2981_s0  ;;  %v2822_v5 = vpop.eup %2821 }
 0xe9f   :  { %v1029_v6 = vadd.f32 1.0, %v2822_v5  ;;  %v2824_v34 = vpop.eup %2823 }
 0xea0   :  { %v1030_v7 = vadd.f32 1.0, %v2824_v34 }
 0xea1   :  { %2825 = vrcp.f32 %v1029_v6  ;;  %v1042_v19 = vand.u32 2147483648, %v1029_v6  ;;  %vm1036_vm5 = vweird.f32 %v1029_v6  ;;  %v1040_v20 = vand.u32 2147483647, %v1029_v6 }
 0xea2   :  { %2827 = vrcp.f32 %v1030_v7  ;;  %v1057_v45 = vand.u32 2147483648, %v1030_v7  ;;  %vm1051_vm9 = vweird.f32 %v1030_v7  ;;  %v1055_v35 = vand.u32 2147483647, %v1030_v7 }
 0xea3   :  { %v1043_v28 = vor.u32 1.1754944e-38, %v1042_v19  ;;  %vm1041_vm7 = vcmp.eq.f32.partialorder %v1040_v20, 8.507059e+37 }
 0xea4   :  { %v1058_v51 = vor.u32 1.1754944e-38, %v1057_v45  ;;  %vm1056_vm11 = vcmp.eq.f32.partialorder %v1055_v35, 8.507059e+37 }
 0xea7   :  { %v2826_v29 = vpop.eup %2825 }
 0xea8   :  { %v1032_v9 = vmul.f32 %v2826_v29, %v1029_v6  ;;  %v2828_v11 = vpop.eup %2827  ;;  %vm1037_vm4 = vweird.f32 %v2826_v29 }
 0xea9   :  { %v1047_v14 = vmul.f32 %v2828_v11, %v1030_v7  ;;  %vm1038_vm6 = vmor %vm1036_vm5, %vm1037_vm4  ;;  %vm1052_vm8 = vweird.f32 %v2828_v11  ;;  %vm1328_vm5 = vcmask 523264  }
 0xeaa   :  { %v1033_v10 = vsub.f32 1.0, %v1032_v9  ;;  %vm1053_vm10 = vmor %vm1051_vm9, %vm1052_vm8 }
 0xeab   :  { %v1048_v18 = vsub.f32 1.0, %v1047_v14 }
 0xeac   :  { %v1034_v13 = vmul.f32 %v2826_v29, %v1033_v10 }
 0xead   :  { %v1049_v25 = vmul.f32 %v2828_v11, %v1048_v18 }
 0xeae   :  { %v1035_v15 = vadd.f32 %v2826_v29, %v1034_v13 }
 0xeaf   :  { %v1050_v44 = vadd.f32 %v2828_v11, %v1049_v25 }
 0xeb0   :  { %v1039_v22 = vsel %vm1038_vm6, %v2826_v29, %v1035_v15 }
 0xeb1   :  { %v1044_v31 = vsel %vm1041_vm7, %v1043_v28, %v1039_v22  ;;  %v1054_v37 = vsel %vm1053_vm10, %v2828_v11, %v1050_v44 }
 0xeb2   :  { %v1059_v57 = vsel %vm1056_vm11, %v1058_v51, %v1054_v37  ;;  %v1063_v12 = vmul.f32 %v1044_v31, %v3309_v56 }
 0xeb3   :  { %v1064_v26 = vmul.f32 %v1059_v57, %v3313_v39  ;;  %v2978_v39 = vld [vmem:[%s3733_s4] ss:$0 sm:$0xff] }
 0xeb4   :  { %v138_v53 = vadd.f32 %v2978_v39, %v3274_v55 }
 0xf08   :  { %v1068_v30 = vpop.permute.xlu0 %1067 }
 0xf09   :  { %v1073_v27 = vmul.f32 %v1068_v30, %v1044_v31 }
 0xf0b   :  { %1077 = vrot.lane.b32.xlu2 %v1073_v27, %s2981_s0 }
 0xf10   :  { %v1070_v21 = vpop.permute.xlu1 %1069 }
 0xf11   :  { %v1074_v46 = vmul.f32 %v1070_v21, %v1059_v57 }
 0xf13   :  { %1079 = vrot.lane.b32.xlu0 %v1074_v46, %s2981_s0 }
 0xf65   :  { %v1078_v8 = vpop.permute.xlu2 %1077 }
 0xf66   :  { %v3338_v16 = vadd.f32 %v1078_v8, %v1063_v12 }
 0xf68   :  { %2829 = vtanh.f32 %v3338_v16 }
 0xf6e   :  { %v2830_v52 = vpop.eup %2829 }
 0xf6f   :  { %1089 = vrot.lane.b32.xlu1 %v2830_v52, %s2981_s0 }
 0xf85   :  { %v1080_v60 = vpop.permute.xlu0 %1079 }
 0xf86   :  { %v3343_v61 = vadd.f32 %v1080_v60, %v1064_v26 }
 0xf88   :  { %2831 = vtanh.f32 %v3343_v61 }
 0xf8e   :  { %v2832_v62 = vpop.eup %2831 }
 0xf8f   :  { %1091 = vrot.lane.b32.xlu2 %v2832_v62, %s2981_s0 }
 0xfe1   :  { %v1090_v40 = vpop.permute.xlu1 %1089 }
 0xfe2   :  { %v3347_v38 = vmul.f32 %v1090_v40, %v1044_v31 }
 0xfe9   :  { %v1092_v56 = vpop.permute.xlu2 %1091 }
 0xfea   :  { %v1096_v63 = vmul.f32 %v1092_v56, %v1059_v57 }
 0xfec   :  { %v1107_v0 = vpack.c.bf16 %v1096_v63, %v3347_v38 }
 0xfee   :  { %1109 = vrot.lane.b32.xlu0 %v1107_v0, %s2982_s24 }
0x1060   :  { %v1110_v1 = vpop.permute.xlu0 %1109 }
0x1061   :  { %2553 = vmatmul.msk.bf16.vlgmr.msrb.gmra.mxu2 %vm98_vm0, %v1110_v1  ;;  %2554 = vmatmul.msk.bf16.vlgmr.msrb.gmra.mxu3 %vm98_vm0, %v1110_v1 }
0x10e4   :  { %v1123_v2 = vpop.f32.mrf.mxu2  ;;  %v1137_v36 = vpop.f32.mrf.mxu3 }
0x10e5   :  { %v1146_v4 = vadd.f32 %v1123_v2, %v138_v53 }
0x10e7   :  { %2833 = vtanh.f32 %v1146_v4  ;;  %v2555_v7 = vmul.f32 -1.442695, %v1146_v4 }
0x10ec   :  { %v1125_v23 = vpop.f32.mrf.mxu2  ;;  %v1139_v54 = vpop.f32.mrf.mxu3 }
0x10ed   :  { %v2834_v5 = vpop.eup %2833  ;;  %v1147_v6 = vadd.f32 %v1139_v54, %v3147_v24 }
0x10ee   :  { %1192 = vrot.lane.b32.xlu0 %v2834_v5, %s2981_s0 }
0x10ef   :  { %2835 = vtanh.f32 %v1147_v6  ;;  %v2556_v55 = vmul.f32 -1.442695, %v1147_v6 }
0x10f1   :  { %2837 = vpow2.f32 %v2556_v55 }
0x10f2   :  { %2839 = vpow2.f32 %v2555_v7 }
0x10f5   :  { %v2836_v34 = vpop.eup %2835 }
0x10f6   :  { %1194 = vrot.lane.b32.xlu1 %v2836_v34, %s2981_s0  ;;  %1103 = vrot.lane.b32.xlu0 %v1096_v63, %s2982_s24 }
0x10f7   :  { %v2838_v29 = vpop.eup %2837 }
0x10f8   :  { %v1155_v24 = vadd.f32 1.0, %v2838_v29  ;;  %v2840_v9 = vpop.eup %2839 }
0x10f9   :  { %v1154_v10 = vadd.f32 1.0, %v2840_v9 }
0x10fa   :  { %2841 = vrcp.f32 %v1155_v24  ;;  %vm1176_vm13 = vweird.f32 %v1155_v24  ;;  %v1180_v25 = vand.u32 2147483647, %v1155_v24 }
0x10fb   :  { %2843 = vrcp.f32 %v1154_v10  ;;  %v1167_v51 = vand.u32 2147483648, %v1154_v10  ;;  %vm1161_vm2 = vweird.f32 %v1154_v10  ;;  %v1165_v21 = vand.u32 2147483647, %v1154_v10 }
0x10fc   :  { %vm1181_vm15 = vcmp.eq.f32.partialorder %v1180_v25, 8.507059e+37  ;;  %v2681_v25 = vld [vmem:[%s3735_s7] sm:$0xff] }
0x10fd   :  { %v1168_v46 = vor.u32 1.1754944e-38, %v1167_v51  ;;  %vm1166_vm4 = vcmp.eq.f32.partialorder %v1165_v21, 8.507059e+37 }
0x10fe   :  { %978 = vrot.lane.b32.xlu0 %v3320_v42, %s2982_s24 }
0x1100   :  { %v2842_v11 = vpop.eup %2841 }
0x1101   :  { %v1172_v13 = vmul.f32 %v2842_v11, %v1155_v24  ;;  %v2844_v15 = vpop.eup %2843  ;;  %vm1177_vm12 = vweird.f32 %v2842_v11 }
0x1102   :  { %v1157_v18 = vmul.f32 %v2844_v15, %v1154_v10  ;;  %vm1178_vm14 = vmor %vm1176_vm13, %vm1177_vm12  ;;  %vm1162_vm1 = vweird.f32 %v2844_v15 }
0x1103   :  { %v1173_v14 = vsub.f32 1.0, %v1172_v13  ;;  %vm1163_vm3 = vmor %vm1161_vm2, %vm1162_vm1  ;;  %v2688_v13 = vld [vmem:[%s3737_s8 + $0x14] sm:$0xf0] }
0x1104   :  { %v1158_v20 = vsub.f32 1.0, %v1157_v18 }
0x1105   :  { %v1174_v19 = vmul.f32 %v2842_v11, %v1173_v14  ;;  %v2683_v14 = vld [vmem:[%s3735_s7 + $0x10] sm:$0xff] }
0x1106   :  { %348 = vrot.lane.b32.xlu0 %v3174_v32, %s2982_s24  ;;  %v1182_v32 = vand.u32 2147483648, %v1155_v24  ;;  %v1159_v28 = vmul.f32 %v2844_v15, %v1158_v20 }
0x1107   :  { %v1175_v22 = vadd.f32 %v2842_v11, %v1174_v19  ;;  %v2599_v19 = vld [vmem:[%s3737_s8] sm:$0xf] }
0x1108   :  { %v1183_v31 = vor.u32 1.1754944e-38, %v1182_v32  ;;  %v1160_v35 = vadd.f32 %v2844_v15, %v1159_v28  ;;  %v2678_v32 = vld [vmem:[%s3736_s6 + $0x8] sm:$0xff]  ;;  %v2677_v28 = vld [vmem:[%s3736_s6] sm:$0xff] }
0x1109   :  { %v1179_v30 = vsel %vm1178_vm14, %v2842_v11, %v1175_v22  ;;  %v2680_v11 = vld [vmem:[%s3736_s6 + $0x18] sm:$0xff]  ;;  %v2682_v22 = vld [vmem:[%s3735_s7 + $0x8] sm:$0xff] }
0x110a   :  { %v1184_v44 = vsel %vm1181_vm15, %v1183_v31, %v1179_v30  ;;  %v1164_v57 = vsel %vm1163_vm3, %v2844_v15, %v1160_v35  ;;  %1345 = vmatpush.bf16.msrb.mxu0 %v2680_v11  ;;  %v2679_v15 = vld [vmem:[%s3736_s6 + $0x10] sm:$0xff]  ;;  %v2609_v31 = vld [vmem:[%s3737_s8 + $0x18] sm:$0xf0] }
0x110b   :  { %v1169_v12 = vsel %vm1166_vm4, %v1168_v46, %v1164_v57  ;;  %v1189_v60 = vmul.f32 %v1184_v44, %v3343_v61  ;;  %v2687_v30 = vld [vmem:[%s3737_s8 + $0x14] sm:$0xf] }
0x110c   :  { %v1188_v56 = vmul.f32 %v1169_v12, %v3338_v16 }
0x110e   :  { %1346 = vmatpush.bf16.msrb.mxu0 %v2679_v15 }
0x1112   :  { %1347 = vmatpush.bf16.msrb.mxu0 %v2678_v32 }
0x1116   :  { %1348 = vmatpush.bf16.msrb.mxu0 %v2677_v28 }
0x1160   :  { %v1193_v42 = vpop.permute.xlu0 %1192 }
0x1161   :  { %v1198_v52 = vmul.f32 %v1193_v42, %v1169_v12  ;;  %v2686_v42 = vld [vmem:[%s3737_s8 + $0x4] sm:$0xf0] }
0x1162   :  { %v3439_v20 = vor.u32 %v2686_v42, %v2599_v19 }
0x1168   :  { %v1195_v27 = vpop.permute.xlu1 %1194  ;;  %v1104_v45 = vpop.permute.xlu0 %1103 }
0x1169   :  { %v1199_v37 = vmul.f32 %v1195_v27, %v1184_v44  ;;  %1106 = vst.msk [vmem:[#allocation4 + $0x8] sm:$0xff] %vm98_vm0, %v1104_v45  ;;  %v3467_v27 = vor.u32 %v2687_v30, %v2609_v31 }
0x116b   :  { %1204 = vrot.lane.b32.xlu2 %v1199_v37, %s2981_s0  ;;  %1495 = vmatpush.bf16.msra.mxu3 %v3467_v27 }
0x1170   :  { %v979_v8 = vpop.permute.xlu0 %978  ;;  %v1241_v6 = vld [vmem:[#allocation4 + $0x8] sm:$0xff] }
0x1171   :  { %981 = vst.msk [vmem:[#allocation4 + $0x10] sm:$0xff] %vm98_vm0, %v979_v8  ;;  %v2601_v8 = vld [vmem:[%s3737_s8 + $0x8] sm:$0xf0] }
0x1173   :  { %1202 = vrot.lane.b32.xlu2 %v1198_v52, %s2981_s0 }
0x1178   :  { %v349_v26 = vpop.permute.xlu0 %348  ;;  %v1242_v16 = vld [vmem:[#allocation4 + $0x10] sm:$0xff] }
0x1179   :  { %351 = vst.msk [vmem:[#allocation3] sm:$0xff] %vm98_vm0, %v349_v26 }
0x117b   :  { %853 = vrot.lane.b32.xlu2 %v3294_v3, %s2982_s24 }
0x1180   :  { %v1232_v37 = vld [vmem:[#allocation3] sm:$0xff] }
0x1183   :  { %728 = vrot.lane.b32.xlu2 %v3263_v50, %s2982_s24 }
0x11c5   :  { %v1205_v62 = vpop.permute.xlu2 %1204 }
0x11c6   :  { %v1209_v40 = vadd.f32 %v1205_v62, %v1189_v60 }
0x11c8   :  { %2845 = vtanh.f32 %v1209_v40 }
0x11cd   :  { %v1203_v63 = vpop.permute.xlu2 %1202 }
0x11ce   :  { %v2846_v0 = vpop.eup %2845  ;;  %v1208_v1 = vadd.f32 %v1203_v63, %v1188_v56 }
0x11cf   :  { %1216 = vrot.lane.b32.xlu1 %v2846_v0, %s2981_s0 }
0x11d0   :  { %2847 = vtanh.f32 %v1208_v1 }
0x11d5   :  { %v854_v39 = vpop.permute.xlu2 %853 }
0x11d6   :  { %v2848_v53 = vpop.eup %2847  ;;  %856 = vst.msk [vmem:[#allocation4 + $0x18] sm:$0xff] %vm98_vm0, %v854_v39 }
0x11d7   :  { %1214 = vrot.lane.b32.xlu2 %v2848_v53, %s2981_s0 }
0x11dd   :  { %v729_v50 = vpop.permute.xlu2 %728  ;;  %v1243_v3 = vld [vmem:[#allocation4 + $0x18] sm:$0xff] }
0x11de   :  { %731 = vst.msk [vmem:[#allocation4 + $0x20] sm:$0xff] %vm98_vm0, %v729_v50  ;;  %v2701_v61 = vpack.i.bf16 %v1243_v3, %v1242_v16 }
0x11df   :  { %478 = vrot.lane.b32.xlu2 %v3205_v43, %s2982_s24 }
0x11e5   :  { %v1244_v34 = vld [vmem:[#allocation4 + $0x20] sm:$0xff] }
0x11e7   :  { %2702 = vrot.lane.b32.xlu2 %v2701_v61, %s2981_s0 }
0x1231   :  { %v1215_v2 = vpop.permute.xlu2 %1214 }
0x1232   :  { %v1220_v43 = vmul.f32 %v1215_v2, %v1169_v12  ;;  %v2685_v12 = vld [vmem:[%s3737_s8 + $0x4] sm:$0xf] }
0x1233   :  { %v3479_v52 = vor.u32 %v2685_v12, %v2601_v8 }
0x1235   :  { %1496 = vmatpush.bf16.msra.mxu3 %v3479_v52 }
0x1238   :  { %1497 = vmatmul.bf16.vlgmr.msra.gmra.mxu3 %v2980_v17 }
0x1239   :  { %v479_v36 = vpop.permute.xlu2 %478  ;;  %1610 = vmatpush.bf16.msrb.mxu3 %v3467_v27 }
0x123a   :  { %481 = vst.msk [vmem:[#allocation4 + $0x30] sm:$0xff] %vm98_vm0, %v479_v36 }
0x123d   :  { %1611 = vmatpush.bf16.msrb.mxu3 %v3479_v52 }
0x1241   :  { %v1217_v4 = vpop.permute.xlu1 %1216  ;;  %v1246_v29 = vld [vmem:[#allocation4 + $0x30] sm:$0xff]  ;;  %v2703_v60 = vpop.permute.xlu2 %2702  ;;  %1725 = vmatpush.bf16.msra.mxu3 %v3467_v27 }
0x1242   :  { %v1221_v23 = vmul.f32 %v1217_v4, %v1184_v44  ;;  %v2704_v62 = vunpack.i.l.bf16 %v2703_v60  ;;  %v2705_v0 = vunpack.i.h.bf16 %v2703_v60 }
0x1244   :  { %1228 = vrot.lane.b32.xlu1 %v1221_v23, %s2982_s24 }
0x1245   :  { %1726 = vmatpush.bf16.msra.mxu3 %v3479_v52 }
0x124c   :  { %603 = vrot.lane.b32.xlu1 %v3234_v48, %s2982_s24 }
0x1254   :  { %473 = vrot.lane.b32.xlu1 %v3203_v41, %s2982_s24 }
0x125c   :  { %353 = vrot.lane.b32.xlu1 %v3176_v33, %s2982_s24 }
0x1264   :  { %723 = vrot.lane.b32.xlu1 %v3261_v49, %s2982_s24 }
0x126c   :  { %973 = vrot.lane.b32.xlu1 %v3318_v59, %s2982_s24 }
0x1274   :  { %1223 = vrot.lane.b32.xlu1 %v1220_v43, %s2982_s24 }
0x12b6   :  { %v1229_v54 = vpop.permute.xlu1 %1228 }
0x12b7   :  { %1231 = vst.msk [vmem:[#allocation4] sm:$0xff] %vm98_vm0, %v1229_v54 }
0x12be   :  { %v604_v5 = vpop.permute.xlu1 %603  ;;  %v1240_v48 = vld [vmem:[#allocation4] sm:$0xff] }
0x12bf   :  { %606 = vst.msk [vmem:[#allocation4 + $0x28] sm:$0xff] %vm98_vm0, %v604_v5  ;;  %v2696_v41 = vpack.i.bf16 %v1241_v6, %v1240_v48 }
0x12c1   :  { %2697 = vrot.lane.b32.xlu0 %v2696_v41, %s2981_s0 }
0x12c6   :  { %v474_v33 = vpop.permute.xlu1 %473  ;;  %v1245_v49 = vld [vmem:[#allocation4 + $0x28] sm:$0xff] }
0x12c7   :  { %476 = vst.msk [vmem:[#allocation3 + $0x8] sm:$0xff] %vm98_vm0, %v474_v33  ;;  %v2706_v59 = vpack.i.bf16 %v1245_v49, %v1244_v34 }
0x12c9   :  { %598 = vrot.lane.b32.xlu0 %v3232_v47, %s2982_s24  ;;  %2707 = vrot.lane.b32.xlu2 %v2706_v59, %s2981_s0 }
0x12ce   :  { %v354_v55 = vpop.permute.xlu1 %353  ;;  %v1233_v51 = vld [vmem:[#allocation3 + $0x8] sm:$0xff] }
0x12cf   :  { %356 = vst.msk [vmem:[#allocation4 + $0x38] sm:$0xff] %vm98_vm0, %v354_v55  ;;  %v3512_v55 = vld [vmem:[%s3734_s9] ss:$0 sm:$0xff] }
0x12d1   :  { %848 = vrot.lane.b32.xlu0 %v3292_v58, %s2982_s24  ;;  %v2684_v58 = vld [vmem:[%s3735_s7 + $0x18] sm:$0xff] }
0x12d2   :  { %1410 = vmatpush.bf16.msrb.mxu1 %v2684_v58 }
0x12d6   :  { %v724_v7 = vpop.permute.xlu1 %723  ;;  %v1247_v24 = vld [vmem:[#allocation4 + $0x38] sm:$0xff]  ;;  %1411 = vmatpush.bf16.msrb.mxu1 %v2683_v14 }
0x12d7   :  { %726 = vst.msk [vmem:[#allocation3 + $0x18] sm:$0xff] %vm98_vm0, %v724_v7  ;;  %v2711_v9 = vpack.i.bf16 %v1247_v24, %v1246_v29  ;;  %v2719_v7 = vld [vmem:[%s3738_s10] ss:$0 sm:$0xff] }
0x12d9   :  { %1098 = vrot.lane.b32.xlu0 %v3347_v38, %s2982_s24  ;;  %2712 = vrot.lane.b32.xlu2 %v2711_v9, %s2981_s0  ;;  %v2607_v38 = vld [vmem:[%s3737_s8 + $0x10] sm:$0xf] }
0x12da   :  { %v3430_v18 = vor.u32 %v2688_v13, %v2607_v38  ;;  %1412 = vmatpush.bf16.msrb.mxu1 %v2682_v22  ;;  %v1498_v13 = vpop.f32.mrf.mxu3 }
0x12dc   :  { %1481 = vmatpush.bf16.msra.mxu2 %v3430_v18  ;;  %1941 = vmatpush.bf16.msra.mxu0 %v3430_v18 }
0x12de   :  { %v974_v47 = vpop.permute.xlu1 %973  ;;  %1413 = vmatpush.bf16.msrb.mxu1 %v2681_v25  ;;  %v1235_v63 = vld [vmem:[#allocation3 + $0x18] sm:$0xff] }
0x12df   :  { %976 = vst.msk [vmem:[#allocation3 + $0x28] sm:$0xff] %vm98_vm0, %v974_v47 }
0x12e0   :  { %1482 = vmatpush.bf16.msra.mxu2 %v3439_v20  ;;  %1942 = vmatpush.bf16.msra.mxu0 %v3439_v20 }
0x12e2   :  { %1955 = vmatpush.bf16.msra.mxu1 %v3467_v27 }
0x12e3   :  { %1483 = vmatmul.bf16.vlgmr.msra.gmra.mxu2 %v2980_v17  ;;  %v1283_v17 = vsel %vm98_vm0, %v1235_v63, %v2705_v0 }
0x12e4   :  { %1596 = vmatpush.bf16.msrb.mxu2 %v3430_v18 }
0x12e6   :  { %v1224_v10 = vpop.permute.xlu1 %1223  ;;  %1956 = vmatpush.bf16.msra.mxu1 %v3479_v52  ;;  %v1237_v36 = vld [vmem:[#allocation3 + $0x28] sm:$0xff] }
0x12e7   :  { %1226 = vst.msk [vmem:[#allocation3 + $0x38] sm:$0xff] %vm98_vm0, %v1224_v10 }
0x12e8   :  { %1597 = vmatpush.bf16.msrb.mxu2 %v3439_v20 }
0x12ec   :  { %1711 = vmatpush.bf16.msra.mxu2 %v3430_v18 }
0x12ee   :  { %v1239_v41 = vld [vmem:[#allocation3 + $0x38] sm:$0xff] }
0x12f0   :  { %1712 = vmatpush.bf16.msra.mxu2 %v3439_v20 }
0x1323   :  { %v2708_v50 = vpop.permute.xlu2 %2707 }
0x1324   :  { %v2710_v16 = vunpack.i.h.bf16 %v2708_v50  ;;  %v2709_v61 = vunpack.i.l.bf16 %v2708_v50 }
0x1326   :  { %v1285_v4 = vsel %vm98_vm0, %v1237_v36, %v2710_v16 }
0x1333   :  { %v2698_v44 = vpop.permute.xlu0 %2697  ;;  %v2713_v43 = vpop.permute.xlu2 %2712 }
0x1334   :  { %v2700_v45 = vunpack.i.h.bf16 %v2698_v44  ;;  %v2699_v35 = vunpack.i.l.bf16 %v2698_v44  ;;  %v2715_v5 = vunpack.i.h.bf16 %v2713_v43  ;;  %v2714_v48 = vunpack.i.l.bf16 %v2713_v43 }
0x1336   :  { %v1281_v21 = vsel %vm98_vm0, %v1233_v51, %v2700_v45  ;;  %v1280_v57 = vsel %vm98_vm0, %v1232_v37, %v2699_v35  ;;  %v1287_v33 = vsel %vm98_vm0, %v1239_v41, %v2715_v5 }
0x1337   :  { %v1288_v46 = vpack.c.bf16 %v1281_v21, %v1280_v57 }
0x1339   :  { %2573 = vmatmul.msk.bf16.vlgmr.msrb.gmra.mxu0 %vm1328_vm5, %v1288_v46  ;;  %2593 = vmatmul.msk.bf16.vlgmr.msrb.gmra.mxu1 %vm1328_vm5, %v1288_v46 }
0x133a   :  { %2185 = vmatpush.bf16.msrb.mxu1 %v3467_v27  ;;  %2171 = vmatpush.bf16.msrb.mxu0 %v3430_v18 }
0x133b   :  { %v599_v26 = vpop.permute.xlu0 %598 }
0x133c   :  { %601 = vst.msk [vmem:[#allocation3 + $0x10] sm:$0xff] %vm98_vm0, %v599_v26  ;;  %v1500_v26 = vpop.f32.mrf.mxu3 }
0x133e   :  { %2186 = vmatpush.bf16.msrb.mxu1 %v3479_v52  ;;  %2172 = vmatpush.bf16.msrb.mxu0 %v3439_v20 }
0x1343   :  { %v849_v40 = vpop.permute.xlu0 %848  ;;  %v1234_v56 = vld [vmem:[#allocation3 + $0x10] sm:$0xff] }
0x1344   :  { %851 = vst.msk [vmem:[#allocation3 + $0x20] sm:$0xff] %vm98_vm0, %v849_v40  ;;  %v1282_v1 = vsel %vm98_vm0, %v1234_v56, %v2704_v62 }
0x1345   :  { %v1289_v39 = vpack.c.bf16 %v1283_v17, %v1282_v1 }
0x1349   :  { %2574 = vmatmul.msk.bf16.gmra.mxu0 %vm1328_vm5, %v1289_v39  ;;  %2594 = vmatmul.msk.bf16.gmra.mxu1 %vm1328_vm5, %v1289_v39 }
0x134b   :  { %v1099_v53 = vpop.permute.xlu0 %1098  ;;  %v1236_v3 = vld [vmem:[#allocation3 + $0x20] sm:$0xff] }
0x134c   :  { %1101 = vst.msk [vmem:[#allocation3 + $0x30] sm:$0xff] %vm98_vm0, %v1099_v53  ;;  %v1284_v2 = vsel %vm98_vm0, %v1236_v3, %v2709_v61 }
0x134d   :  { %v1290_v23 = vpack.c.bf16 %v1285_v4, %v1284_v2 }
0x1353   :  { %v1238_v54 = vld [vmem:[#allocation3 + $0x30] sm:$0xff] }
0x1354   :  { %v1286_v6 = vsel %vm98_vm0, %v1238_v54, %v2714_v48 }
0x1355   :  { %v1291_v34 = vpack.c.bf16 %v1287_v33, %v1286_v6 }
0x1359   :  { %2575 = vmatmul.msk.bf16.gmra.mxu0 %vm1328_vm5, %v1290_v23  ;;  %2595 = vmatmul.msk.bf16.gmra.mxu1 %vm1328_vm5, %v1290_v23 }
0x1366   :  { %v1484_v49 = vpop.f32.mrf.mxu2 }
0x1369   :  { %2576 = vmatmul.msk.bf16.gmra.mxu0 %vm1328_vm5, %v1291_v34  ;;  %2596 = vmatmul.msk.bf16.gmra.mxu1 %vm1328_vm5, %v1291_v34 }
0x136e   :  { %v1486_v59 = vpop.f32.mrf.mxu2 }
0x13b6   :  { %v1350_v29 = vpop.f32.mrf.mxu0  ;;  %v1415_v24 = vpop.f32.mrf.mxu1 }
0x13b7   :  { %v1351_v9 = vadd.f32 %v3512_v55, %v1350_v29  ;;  %v3518_v47 = vadd.f32 %v2719_v7, %v1415_v24 }
0x13b9   :  { %v1507_v10 = vadd.f32 %v1484_v49, %v1351_v9 }
0x13bb   :  { %2849 = vtanh.f32 %v1507_v10  ;;  %v2613_v40 = vmul.f32 -1.442695, %v1507_v10 }
0x13be   :  { %v3520_v58 = vpop.f32.mrf.mxu0  ;;  %v1417_v11 = vpop.f32.mrf.mxu1 }
0x13bf   :  { %v3522_v38 = vadd.f32 %v2719_v7, %v1417_v11 }
0x13c1   :  { %v2850_v14 = vpop.eup %2849 }
0x13c2   :  { %1553 = vrot.lane.b32.xlu0 %v2850_v14, %s2981_s0 }
0x13c6   :  { %v3525_v15 = vpop.f32.mrf.mxu0  ;;  %v1420_v19 = vpop.f32.mrf.mxu1 }
0x13c7   :  { %v3527_v42 = vadd.f32 %v2719_v7, %v1420_v19 }
0x13ce   :  { %v3529_v22 = vpop.f32.mrf.mxu0  ;;  %v1422_v32 = vpop.f32.mrf.mxu1 }
0x13cf   :  { %v3531_v25 = vadd.f32 %v2719_v7, %v1422_v32 }
0x13d6   :  { %v3533_v28 = vpop.f32.mrf.mxu0  ;;  %v1425_v30 = vpop.f32.mrf.mxu1 }
0x13d7   :  { %v3535_v31 = vadd.f32 %v2719_v7, %v1425_v30 }
0x13de   :  { %v1362_v44 = vpop.f32.mrf.mxu0  ;;  %v1427_v45 = vpop.f32.mrf.mxu1 }
0x13df   :  { %v3538_v35 = vadd.f32 %v3512_v55, %v1362_v44  ;;  %v3540_v37 = vadd.f32 %v2719_v7, %v1427_v45 }
0x13e6   :  { %v1365_v51 = vpop.f32.mrf.mxu0  ;;  %v1430_v21 = vpop.f32.mrf.mxu1 }
0x13e7   :  { %v3543_v57 = vadd.f32 %v3512_v55, %v1365_v51  ;;  %v3545_v46 = vadd.f32 %v2719_v7, %v1430_v21 }
0x13ee   :  { %v1432_v12 = vpop.f32.mrf.mxu1 }
0x13ef   :  { %v1433_v8 = vadd.f32 %v2719_v7, %v1432_v12 }
0x13f1   :  { %v1508_v60 = vadd.f32 %v1500_v26, %v1433_v8 }
0x13f3   :  { %2851 = vtanh.f32 %v1508_v60  ;;  %v2614_v23 = vmul.f32 -1.442695, %v1508_v60  ;;  %v1353_v60 = vadd.f32 %v3512_v55, %v3520_v58 }
0x13f4   :  { %2853 = vpow2.f32 %v2613_v40 }
0x13f9   :  { %v2852_v62 = vpop.eup %2851 }
0x13fa   :  { %1555 = vrot.lane.b32.xlu1 %v2852_v62, %s2981_s0  ;;  %v2854_v56 = vpop.eup %2853 }
0x13fb   :  { %v1515_v63 = vadd.f32 1.0, %v2854_v56 }
0x13fd   :  { %2855 = vrcp.f32 %v1515_v63  ;;  %v1528_v50 = vand.u32 2147483648, %v1515_v63  ;;  %vm1522_vm7 = vweird.f32 %v1515_v63  ;;  %v1526_v3 = vand.u32 2147483647, %v1515_v63 }
0x13fe   :  { %2857 = vpow2.f32 %v2614_v23 }
0x13ff   :  { %v1529_v61 = vor.u32 1.1754944e-38, %v1528_v50  ;;  %vm1527_vm9 = vcmp.eq.f32.partialorder %v1526_v3, 8.507059e+37 }
0x1403   :  { %v2856_v0 = vpop.eup %2855 }
0x1404   :  { %v1518_v1 = vmul.f32 %v2856_v0, %v1515_v63  ;;  %vm1523_vm6 = vweird.f32 %v2856_v0  ;;  %v2858_v43 = vpop.eup %2857 }
0x1405   :  { %vm1524_vm8 = vmor %vm1522_vm7, %vm1523_vm6  ;;  %v1516_v54 = vadd.f32 1.0, %v2858_v43 }
0x1406   :  { %v1519_v17 = vsub.f32 1.0, %v1518_v1 }
0x1407   :  { %2859 = vrcp.f32 %v1516_v54  ;;  %v1543_v34 = vand.u32 2147483648, %v1516_v54  ;;  %vm1537_vm11 = vweird.f32 %v1516_v54  ;;  %v1541_v49 = vand.u32 2147483647, %v1516_v54 }
0x1408   :  { %v1520_v39 = vmul.f32 %v2856_v0, %v1519_v17 }
0x1409   :  { %v1544_v7 = vor.u32 1.1754944e-38, %v1543_v34  ;;  %vm1542_vm13 = vcmp.eq.f32.partialorder %v1541_v49, 8.507059e+37 }
0x140a   :  { %v1521_v53 = vadd.f32 %v2856_v0, %v1520_v39 }
0x140c   :  { %v1525_v16 = vsel %vm1524_vm8, %v2856_v0, %v1521_v53 }
0x140d   :  { %v1530_v36 = vsel %vm1527_vm9, %v1529_v61, %v1525_v16  ;;  %v2860_v5 = vpop.eup %2859 }
0x140e   :  { %v1533_v48 = vmul.f32 %v2860_v5, %v1516_v54  ;;  %vm1538_vm10 = vweird.f32 %v2860_v5  ;;  %v1549_v10 = vmul.f32 0.0, %v1530_v36 }
0x140f   :  { %vm1539_vm12 = vmor %vm1537_vm11, %vm1538_vm10 }
0x1410   :  { %v1534_v6 = vsub.f32 1.0, %v1533_v48 }
0x1412   :  { %v1535_v41 = vmul.f32 %v2860_v5, %v1534_v6 }
0x1414   :  { %v1536_v33 = vadd.f32 %v2860_v5, %v1535_v41 }
0x1416   :  { %v1540_v59 = vsel %vm1539_vm12, %v2860_v5, %v1536_v33 }
0x1417   :  { %v1545_v24 = vsel %vm1542_vm13, %v1544_v7, %v1540_v59 }
0x1418   :  { %v1550_v19 = vmul.f32 0.0, %v1545_v24 }
0x1434   :  { %v1554_v2 = vpop.permute.xlu0 %1553 }
0x1435   :  { %v1559_v4 = vmul.f32 %v1554_v2, %v1530_v36 }
0x1437   :  { %1563 = vrot.lane.b32.xlu2 %v1559_v4, %s2981_s0 }
0x146c   :  { %v1556_v29 = vpop.permute.xlu1 %1555 }
0x146d   :  { %v1560_v9 = vmul.f32 %v1556_v29, %v1545_v24 }
0x146f   :  { %1565 = vrot.lane.b32.xlu0 %v1560_v9, %s2981_s0 }
0x1491   :  { %v1564_v11 = vpop.permute.xlu2 %1563 }
0x1492   :  { %v3550_v13 = vadd.f32 %v1564_v11, %v1549_v10 }
0x1494   :  { %2861 = vtanh.f32 %v3550_v13 }
0x149a   :  { %v2862_v14 = vpop.eup %2861 }
0x149b   :  { %1575 = vrot.lane.b32.xlu1 %v2862_v14, %s2981_s0 }
0x14e1   :  { %v1566_v32 = vpop.permute.xlu0 %1565 }
0x14e2   :  { %v3554_v30 = vadd.f32 %v1566_v32, %v1550_v19 }
0x14e4   :  { %2863 = vtanh.f32 %v3554_v30 }
0x14ea   :  { %v2864_v44 = vpop.eup %2863 }
0x14eb   :  { %1577 = vrot.lane.b32.xlu2 %v2864_v44, %s2981_s0 }
0x150d   :  { %v1576_v45 = vpop.permute.xlu1 %1575 }
0x150e   :  { %v1581_v21 = vmul.f32 %v1576_v45, %v1530_v36 }
0x1545   :  { %v1578_v51 = vpop.permute.xlu2 %1577 }
0x1546   :  { %v1582_v12 = vmul.f32 %v1578_v51, %v1545_v24 }
0x1548   :  { %v1583_v8 = vpack.c.bf16 %v1582_v12, %v1581_v21 }
0x154a   :  { %1585 = vrot.lane.b32.xlu0 %v1583_v8, %s2982_s24 }
0x15bc   :  { %v1586_v26 = vpop.permute.xlu0 %1585 }
0x15bd   :  { %2615 = vmatmul.msk.bf16.vlgmr.msrb.gmra.mxu2 %vm98_vm0, %v1586_v26  ;;  %2616 = vmatmul.msk.bf16.vlgmr.msrb.gmra.mxu3 %vm98_vm0, %v1586_v26 }
0x15be   :  { %1840 = vmatpush.bf16.msrb.mxu3 %v3467_v27  ;;  %1826 = vmatpush.bf16.msrb.mxu2 %v3430_v18 }
0x15c2   :  { %1841 = vmatpush.bf16.msrb.mxu3 %v3479_v52  ;;  %1827 = vmatpush.bf16.msrb.mxu2 %v3439_v20 }
0x1640   :  { %v1599_v62 = vpop.f32.mrf.mxu2  ;;  %v1613_v40 = vpop.f32.mrf.mxu3 }
0x1641   :  { %v1622_v56 = vadd.f32 %v1599_v62, %v1353_v60 }
0x1643   :  { %2865 = vtanh.f32 %v1622_v56  ;;  %v2617_v58 = vmul.f32 -1.442695, %v1622_v56 }
0x1648   :  { %v1601_v63 = vpop.f32.mrf.mxu2  ;;  %v1615_v0 = vpop.f32.mrf.mxu3 }
0x1649   :  { %v2866_v1 = vpop.eup %2865  ;;  %v1623_v17 = vadd.f32 %v1615_v0, %v3545_v46 }
0x164a   :  { %1668 = vrot.lane.b32.xlu1 %v2866_v1, %s2981_s0 }
0x164b   :  { %2867 = vtanh.f32 %v1623_v17  ;;  %v2618_v53 = vmul.f32 -1.442695, %v1623_v17 }
0x164d   :  { %2869 = vpow2.f32 %v2618_v53 }
0x1651   :  { %v2868_v39 = vpop.eup %2867 }
0x1652   :  { %1670 = vrot.lane.b32.xlu2 %v2868_v39, %s2981_s0 }
0x1653   :  { %v2870_v50 = vpop.eup %2869 }
0x1654   :  { %v1631_v3 = vadd.f32 1.0, %v2870_v50 }
0x1656   :  { %2871 = vrcp.f32 %v1631_v3  ;;  %v1658_v54 = vand.u32 2147483648, %v1631_v3  ;;  %vm1652_vm15 = vweird.f32 %v1631_v3  ;;  %v1656_v5 = vand.u32 2147483647, %v1631_v3 }
0x1657   :  { %2873 = vpow2.f32 %v2617_v58 }
0x1658   :  { %v1659_v41 = vor.u32 1.1754944e-38, %v1658_v54  ;;  %vm1657_vm2 = vcmp.eq.f32.partialorder %v1656_v5, 8.507059e+37 }
0x165c   :  { %v2872_v16 = vpop.eup %2871 }
0x165d   :  { %v2874_v61 = vpop.eup %2873  ;;  %v1648_v2 = vmul.f32 %v2872_v16, %v1631_v3  ;;  %vm1653_vm14 = vweird.f32 %v2872_v16 }
0x165e   :  { %v1630_v36 = vadd.f32 1.0, %v2874_v61  ;;  %vm1654_vm1 = vmor %vm1652_vm15, %vm1653_vm14 }
0x165f   :  { %v1649_v4 = vsub.f32 1.0, %v1648_v2 }
0x1660   :  { %2875 = vrcp.f32 %v1630_v36  ;;  %v1643_v24 = vand.u32 2147483648, %v1630_v36  ;;  %vm1637_vm4 = vweird.f32 %v1630_v36  ;;  %v1641_v9 = vand.u32 2147483647, %v1630_v36 }
0x1661   :  { %v1650_v46 = vmul.f32 %v2872_v16, %v1649_v4 }
0x1662   :  { %v1644_v11 = vor.u32 1.1754944e-38, %v1643_v24  ;;  %vm1642_vm6 = vcmp.eq.f32.partialorder %v1641_v9, 8.507059e+37 }
0x1663   :  { %v1651_v23 = vadd.f32 %v2872_v16, %v1650_v46 }
0x1665   :  { %v1655_v48 = vsel %vm1654_vm1, %v2872_v16, %v1651_v23 }
0x1666   :  { %v2876_v43 = vpop.eup %2875  ;;  %v1660_v34 = vsel %vm1657_vm2, %v1659_v41, %v1655_v48 }
0x1667   :  { %v1633_v6 = vmul.f32 %v2876_v43, %v1630_v36  ;;  %vm1638_vm3 = vweird.f32 %v2876_v43  ;;  %v1665_v44 = vmul.f32 %v1660_v34, %v3554_v30 }
0x1668   :  { %vm1639_vm5 = vmor %vm1637_vm4, %vm1638_vm3 }
0x1669   :  { %v1634_v59 = vsub.f32 1.0, %v1633_v6 }
0x166b   :  { %v1635_v7 = vmul.f32 %v2876_v43, %v1634_v59 }
0x166d   :  { %v1636_v29 = vadd.f32 %v2876_v43, %v1635_v7 }
0x166f   :  { %v1640_v10 = vsel %vm1639_vm5, %v2876_v43, %v1636_v29 }
0x1670   :  { %v1645_v19 = vsel %vm1642_vm6, %v1644_v11, %v1640_v10 }
0x1671   :  { %v1664_v12 = vmul.f32 %v1645_v19, %v3550_v13  ;;  %v1356_v13 = vadd.f32 %v3512_v55, %v3525_v15 }
0x16ac   :  { %v1671_v33 = vpop.permute.xlu2 %1670 }
0x16ad   :  { %v1675_v49 = vmul.f32 %v1671_v33, %v1660_v34 }
0x16af   :  { %1680 = vrot.lane.b32.xlu1 %v1675_v49, %s2981_s0 }
0x16bc   :  { %v1669_v14 = vpop.permute.xlu1 %1668 }
0x16bd   :  { %v1674_v32 = vmul.f32 %v1669_v14, %v1645_v19 }
0x16bf   :  { %1678 = vrot.lane.b32.xlu0 %v1674_v32, %s2981_s0 }
0x1721   :  { %v1681_v45 = vpop.permute.xlu1 %1680 }
0x1722   :  { %v3573_v51 = vadd.f32 %v1681_v45, %v1665_v44 }
0x1724   :  { %2877 = vtanh.f32 %v3573_v51 }
0x172a   :  { %v2878_v21 = vpop.eup %2877 }
0x172b   :  { %1692 = vrot.lane.b32.xlu0 %v2878_v21, %s2981_s0 }
0x1731   :  { %v1679_v8 = vpop.permute.xlu0 %1678 }
0x1732   :  { %v3578_v26 = vadd.f32 %v1679_v8, %v1664_v12 }
0x1734   :  { %2879 = vtanh.f32 %v3578_v26 }
0x173a   :  { %v2880_v60 = vpop.eup %2879 }
0x173b   :  { %1690 = vrot.lane.b32.xlu2 %v2880_v60, %s2981_s0 }
0x1795   :  { %v1691_v62 = vpop.permute.xlu2 %1690 }
0x1796   :  { %v1696_v40 = vmul.f32 %v1691_v62, %v1645_v19 }
0x179d   :  { %v1693_v30 = vpop.permute.xlu0 %1692 }
0x179e   :  { %v1697_v56 = vmul.f32 %v1693_v30, %v1660_v34 }
0x17a0   :  { %v1698_v63 = vpack.c.bf16 %v1697_v56, %v1696_v40 }
0x17a2   :  { %1700 = vrot.lane.b32.xlu1 %v1698_v63, %s2982_s24 }
0x1814   :  { %v1701_v0 = vpop.permute.xlu1 %1700 }
0x1815   :  { %2619 = vmatmul.msk.bf16.vlgmr.msra.gmra.mxu2 %vm98_vm0, %v1701_v0  ;;  %2620 = vmatmul.msk.bf16.vlgmr.msra.gmra.mxu3 %vm98_vm0, %v1701_v0 }
0x1816   :  { %2070 = vmatpush.bf16.msra.mxu3 %v3467_v27  ;;  %2056 = vmatpush.bf16.msra.mxu2 %v3430_v18 }
0x181a   :  { %2071 = vmatpush.bf16.msra.mxu3 %v3479_v52  ;;  %2057 = vmatpush.bf16.msra.mxu2 %v3439_v20 }
0x1898   :  { %v1714_v1 = vpop.f32.mrf.mxu2  ;;  %v1728_v17 = vpop.f32.mrf.mxu3 }
0x1899   :  { %v1737_v39 = vadd.f32 %v1714_v1, %v1356_v13 }
0x189b   :  { %2881 = vtanh.f32 %v1737_v39  ;;  %v2621_v61 = vmul.f32 -1.442695, %v1737_v39 }
0x18a0   :  { %v1716_v53 = vpop.f32.mrf.mxu2  ;;  %v1730_v50 = vpop.f32.mrf.mxu3 }
0x18a1   :  { %v2882_v3 = vpop.eup %2881  ;;  %v1738_v58 = vadd.f32 %v1730_v50, %v3540_v37 }
0x18a2   :  { %1783 = vrot.lane.b32.xlu2 %v2882_v3, %s2981_s0 }
0x18a3   :  { %2883 = vtanh.f32 %v1738_v58  ;;  %v2622_v23 = vmul.f32 -1.442695, %v1738_v58 }
0x18a4   :  { %2885 = vpow2.f32 %v2621_v61 }
0x18a9   :  { %v2884_v16 = vpop.eup %2883 }
0x18aa   :  { %1785 = vrot.lane.b32.xlu0 %v2884_v16, %s2981_s0  ;;  %v2886_v2 = vpop.eup %2885 }
0x18ab   :  { %v1745_v36 = vadd.f32 1.0, %v2886_v2 }
0x18ad   :  { %2887 = vrcp.f32 %v1745_v36  ;;  %v1758_v37 = vand.u32 2147483648, %v1745_v36  ;;  %vm1752_vm8 = vweird.f32 %v1745_v36  ;;  %v1756_v5 = vand.u32 2147483647, %v1745_v36 }
0x18ae   :  { %2889 = vpow2.f32 %v2622_v23 }
0x18af   :  { %v1759_v41 = vor.u32 1.1754944e-38, %v1758_v37  ;;  %vm1757_vm10 = vcmp.eq.f32.partialorder %v1756_v5, 8.507059e+37 }
0x18b3   :  { %v2888_v15 = vpop.eup %2887 }
0x18b4   :  { %v1748_v4 = vmul.f32 %v2888_v15, %v1745_v36  ;;  %vm1753_vm7 = vweird.f32 %v2888_v15  ;;  %v2890_v48 = vpop.eup %2889 }
0x18b5   :  { %vm1754_vm9 = vmor %vm1752_vm8, %vm1753_vm7  ;;  %v1746_v33 = vadd.f32 1.0, %v2890_v48 }
0x18b6   :  { %v1749_v46 = vsub.f32 1.0, %v1748_v4 }
0x18b7   :  { %2891 = vrcp.f32 %v1746_v33  ;;  %v1773_v11 = vand.u32 2147483648, %v1746_v33  ;;  %vm1767_vm12 = vweird.f32 %v1746_v33  ;;  %v1771_v14 = vand.u32 2147483647, %v1746_v33 }
0x18b8   :  { %v1750_v43 = vmul.f32 %v2888_v15, %v1749_v46 }
0x18b9   :  { %v1774_v32 = vor.u32 1.1754944e-38, %v1773_v11  ;;  %vm1772_vm14 = vcmp.eq.f32.partialorder %v1771_v14, 8.507059e+37 }
0x18ba   :  { %v1751_v54 = vadd.f32 %v2888_v15, %v1750_v43 }
0x18bc   :  { %v1755_v6 = vsel %vm1754_vm9, %v2888_v15, %v1751_v54 }
0x18bd   :  { %v1760_v49 = vsel %vm1757_vm10, %v1759_v41, %v1755_v6  ;;  %v2892_v7 = vpop.eup %2891 }
0x18be   :  { %v1763_v29 = vmul.f32 %v2892_v7, %v1746_v33  ;;  %vm1768_vm11 = vweird.f32 %v2892_v7  ;;  %v1779_v12 = vmul.f32 %v1760_v49, %v3578_v26 }
0x18bf   :  { %vm1769_vm13 = vmor %vm1767_vm12, %vm1768_vm11 }
0x18c0   :  { %v1764_v24 = vsub.f32 1.0, %v1763_v29 }
0x18c2   :  { %v1765_v9 = vmul.f32 %v2892_v7, %v1764_v24 }
0x18c4   :  { %v1766_v10 = vadd.f32 %v2892_v7, %v1765_v9 }
0x18c6   :  { %v1770_v19 = vsel %vm1769_vm13, %v2892_v7, %v1766_v10 }
0x18c7   :  { %v1775_v45 = vsel %vm1772_vm14, %v1774_v32, %v1770_v19 }
0x18c8   :  { %v1780_v62 = vmul.f32 %v1775_v45, %v3573_v51  ;;  %v1358_v51 = vadd.f32 %v3512_v55, %v3529_v22 }
0x18fc   :  { %v1784_v34 = vpop.permute.xlu2 %1783 }
0x18fd   :  { %v1789_v59 = vmul.f32 %v1784_v34, %v1760_v49 }
0x18ff   :  { %1793 = vrot.lane.b32.xlu1 %v1789_v59, %s2981_s0 }
0x191c   :  { %v1786_v44 = vpop.permute.xlu0 %1785 }
0x191d   :  { %v1790_v21 = vmul.f32 %v1786_v44, %v1775_v45 }
0x191f   :  { %1795 = vrot.lane.b32.xlu2 %v1790_v21, %s2981_s0 }
0x1971   :  { %v1794_v8 = vpop.permute.xlu1 %1793 }
0x1972   :  { %v3597_v60 = vadd.f32 %v1794_v8, %v1779_v12 }
0x1974   :  { %2893 = vtanh.f32 %v3597_v60 }
0x1979   :  { %v1796_v30 = vpop.permute.xlu2 %1795 }
0x197a   :  { %v2894_v40 = vpop.eup %2893  ;;  %v3601_v56 = vadd.f32 %v1796_v30, %v1780_v62 }
0x197b   :  { %1805 = vrot.lane.b32.xlu0 %v2894_v40, %s2981_s0 }
0x197c   :  { %2895 = vtanh.f32 %v3601_v56 }
0x1982   :  { %v2896_v63 = vpop.eup %2895 }
0x1983   :  { %1807 = vrot.lane.b32.xlu1 %v2896_v63, %s2981_s0 }
0x19ed   :  { %v1806_v0 = vpop.permute.xlu0 %1805 }
0x19ee   :  { %v1811_v13 = vmul.f32 %v1806_v0, %v1760_v49 }
0x19f5   :  { %v1808_v26 = vpop.permute.xlu1 %1807 }
0x19f6   :  { %v1812_v1 = vmul.f32 %v1808_v26, %v1775_v45 }
0x19f8   :  { %v1813_v17 = vpack.c.bf16 %v1812_v1, %v1811_v13 }
0x19fa   :  { %1815 = vrot.lane.b32.xlu2 %v1813_v17, %s2982_s24  ;;  %v1361_v17 = vadd.f32 %v3512_v55, %v3533_v28 }
0x1a54   :  { %v1816_v39 = vpop.permute.xlu2 %1815 }
0x1a55   :  { %2623 = vmatmul.msk.bf16.vlgmr.msrb.gmra.mxu2 %vm98_vm0, %v1816_v39  ;;  %2624 = vmatmul.msk.bf16.vlgmr.msrb.gmra.mxu3 %vm98_vm0, %v1816_v39 }
0x1a56   :  { %2300 = vmatpush.bf16.msrb.mxu3 %v3467_v27  ;;  %2286 = vmatpush.bf16.msrb.mxu2 %v3430_v18 }
0x1a5a   :  { %2301 = vmatpush.bf16.msrb.mxu3 %v3479_v52  ;;  %2287 = vmatpush.bf16.msrb.mxu2 %v3439_v20 }
0x1ad8   :  { %v1829_v53 = vpop.f32.mrf.mxu2  ;;  %v1843_v50 = vpop.f32.mrf.mxu3 }
0x1ad9   :  { %v1852_v3 = vadd.f32 %v1829_v53, %v1358_v51 }
0x1adb   :  { %2897 = vtanh.f32 %v1852_v3  ;;  %v2625_v27 = vmul.f32 -1.442695, %v1852_v3 }
0x1ae0   :  { %v1831_v58 = vpop.f32.mrf.mxu2  ;;  %v1845_v16 = vpop.f32.mrf.mxu3 }
0x1ae1   :  { %v2898_v61 = vpop.eup %2897  ;;  %v1853_v2 = vadd.f32 %v1845_v16, %v3535_v31 }
0x1ae2   :  { %1898 = vrot.lane.b32.xlu0 %v2898_v61, %s2981_s0 }
0x1ae3   :  { %2899 = vtanh.f32 %v1853_v2  ;;  %v2626_v20 = vmul.f32 -1.442695, %v1853_v2 }
0x1ae4   :  { %2901 = vpow2.f32 %v2625_v27 }
0x1ae5   :  { %2903 = vpow2.f32 %v2626_v20 }
0x1ae9   :  { %v2900_v18 = vpop.eup %2899 }
0x1aea   :  { %1900 = vrot.lane.b32.xlu1 %v2900_v18, %s2981_s0  ;;  %v2902_v52 = vpop.eup %2901 }
0x1aeb   :  { %v1860_v22 = vadd.f32 1.0, %v2902_v52  ;;  %v2904_v36 = vpop.eup %2903 }
0x1aec   :  { %v1861_v15 = vadd.f32 1.0, %v2904_v36 }
0x1aed   :  { %2905 = vrcp.f32 %v1860_v22  ;;  %v1873_v48 = vand.u32 2147483648, %v1860_v22  ;;  %vm1867_vm1 = vweird.f32 %v1860_v22  ;;  %v1871_v6 = vand.u32 2147483647, %v1860_v22 }
0x1aee   :  { %2907 = vrcp.f32 %v1861_v15  ;;  %v1888_v24 = vand.u32 2147483648, %v1861_v15  ;;  %vm1882_vm5 = vweird.f32 %v1861_v15  ;;  %v1886_v9 = vand.u32 2147483647, %v1861_v15 }
0x1aef   :  { %v1874_v34 = vor.u32 1.1754944e-38, %v1873_v48  ;;  %vm1872_vm3 = vcmp.eq.f32.partialorder %v1871_v6, 8.507059e+37 }
0x1af0   :  { %v1889_v11 = vor.u32 1.1754944e-38, %v1888_v24  ;;  %vm1887_vm7 = vcmp.eq.f32.partialorder %v1886_v9, 8.507059e+37 }
0x1af3   :  { %v2906_v4 = vpop.eup %2905 }
0x1af4   :  { %v1863_v46 = vmul.f32 %v2906_v4, %v1860_v22  ;;  %v2908_v31 = vpop.eup %2907  ;;  %vm1868_vm15 = vweird.f32 %v2906_v4 }
0x1af5   :  { %v1878_v54 = vmul.f32 %v2908_v31, %v1861_v15  ;;  %vm1869_vm2 = vmor %vm1867_vm1, %vm1868_vm15  ;;  %vm1883_vm4 = vweird.f32 %v2908_v31 }
0x1af6   :  { %v1864_v23 = vsub.f32 1.0, %v1863_v46  ;;  %vm1884_vm6 = vmor %vm1882_vm5, %vm1883_vm4 }
0x1af7   :  { %v1879_v5 = vsub.f32 1.0, %v1878_v54 }
0x1af8   :  { %v1865_v43 = vmul.f32 %v2906_v4, %v1864_v23 }
0x1af9   :  { %v1880_v33 = vmul.f32 %v2908_v31, %v1879_v5 }
0x1afa   :  { %v1866_v37 = vadd.f32 %v2906_v4, %v1865_v43 }
0x1afb   :  { %v1881_v29 = vadd.f32 %v2908_v31, %v1880_v33 }
0x1afc   :  { %v1870_v41 = vsel %vm1869_vm2, %v2906_v4, %v1866_v37 }
0x1afd   :  { %v1875_v59 = vsel %vm1872_vm3, %v1874_v34, %v1870_v41  ;;  %v1885_v10 = vsel %vm1884_vm6, %v2908_v31, %v1881_v29 }
0x1afe   :  { %v1890_v19 = vsel %vm1887_vm7, %v1889_v11, %v1885_v10  ;;  %v1894_v44 = vmul.f32 %v1875_v59, %v3597_v60 }
0x1aff   :  { %v1895_v8 = vmul.f32 %v1890_v19, %v3601_v56  ;;  %v3633_v56 = vpop.f32.mrf.mxu0 }
0x1b54   :  { %v1899_v49 = vpop.permute.xlu0 %1898 }
0x1b55   :  { %v1904_v7 = vmul.f32 %v1899_v49, %v1875_v59 }
0x1b57   :  { %1908 = vrot.lane.b32.xlu2 %v1904_v7, %s2981_s0 }
0x1b5c   :  { %v1901_v14 = vpop.permute.xlu1 %1900 }
0x1b5d   :  { %v1905_v32 = vmul.f32 %v1901_v14, %v1890_v19 }
0x1b5f   :  { %1910 = vrot.lane.b32.xlu0 %v1905_v32, %s2981_s0 }
0x1bb1   :  { %v1909_v45 = vpop.permute.xlu2 %1908 }
0x1bb2   :  { %v3621_v21 = vadd.f32 %v1909_v45, %v1894_v44 }
0x1bb4   :  { %2909 = vtanh.f32 %v3621_v21 }
0x1bba   :  { %v2910_v12 = vpop.eup %2909 }
0x1bbb   :  { %1920 = vrot.lane.b32.xlu1 %v2910_v12, %s2981_s0 }
0x1bd1   :  { %v1911_v62 = vpop.permute.xlu0 %1910 }
0x1bd2   :  { %v3626_v30 = vadd.f32 %v1911_v62, %v1895_v8 }
0x1bd4   :  { %2911 = vtanh.f32 %v3626_v30 }
0x1bda   :  { %v2912_v40 = vpop.eup %2911 }
0x1bdb   :  { %1922 = vrot.lane.b32.xlu2 %v2912_v40, %s2981_s0 }
0x1c2d   :  { %v1921_v63 = vpop.permute.xlu1 %1920 }
0x1c2e   :  { %v1926_v0 = vmul.f32 %v1921_v63, %v1875_v59 }
0x1c35   :  { %v1923_v60 = vpop.permute.xlu2 %1922 }
0x1c36   :  { %v1927_v26 = vmul.f32 %v1923_v60, %v1890_v19 }
0x1c38   :  { %v1928_v13 = vpack.c.bf16 %v1927_v26, %v1926_v0 }
0x1c3a   :  { %1930 = vrot.lane.b32.xlu0 %v1928_v13, %s2982_s24 }
0x1cac   :  { %v1931_v1 = vpop.permute.xlu0 %1930 }
0x1cad   :  { %2627 = vmatmul.msk.bf16.vlgmr.msra.gmra.mxu0 %vm98_vm0, %v1931_v1  ;;  %2628 = vmatmul.msk.bf16.vlgmr.msra.gmra.mxu1 %vm98_vm0, %v1931_v1 }
0x1d2a   :  { %v1944_v39 = vpop.f32.mrf.mxu0  ;;  %v1958_v51 = vpop.f32.mrf.mxu1 }
0x1d2b   :  { %v1967_v53 = vadd.f32 %v1944_v39, %v1361_v17 }
0x1d2d   :  { %2913 = vtanh.f32 %v1967_v53  ;;  %v2629_v55 = vmul.f32 -1.442695, %v1967_v53 }
0x1d32   :  { %v1946_v50 = vpop.f32.mrf.mxu0  ;;  %v1960_v3 = vpop.f32.mrf.mxu1 }
0x1d33   :  { %v2914_v58 = vpop.eup %2913  ;;  %v1968_v16 = vadd.f32 %v1960_v3, %v3531_v25 }
0x1d34   :  { %2013 = vrot.lane.b32.xlu1 %v2914_v58, %s2981_s0 }
0x1d35   :  { %2915 = vtanh.f32 %v1968_v16  ;;  %v2630_v2 = vmul.f32 -1.442695, %v1968_v16 }
0x1d37   :  { %2917 = vpow2.f32 %v2630_v2 }
0x1d3b   :  { %v2916_v61 = vpop.eup %2915 }
0x1d3c   :  { %2015 = vrot.lane.b32.xlu2 %v2916_v61, %s2981_s0 }
0x1d3d   :  { %v2918_v18 = vpop.eup %2917 }
0x1d3e   :  { %v1976_v27 = vadd.f32 1.0, %v2918_v18 }
0x1d40   :  { %2919 = vrcp.f32 %v1976_v27  ;;  %v2003_v46 = vand.u32 2147483648, %v1976_v27  ;;  %vm1997_vm9 = vweird.f32 %v1976_v27  ;;  %v2001_v23 = vand.u32 2147483647, %v1976_v27 }
0x1d41   :  { %2921 = vpow2.f32 %v2629_v55 }
0x1d42   :  { %v2004_v54 = vor.u32 1.1754944e-38, %v2003_v46  ;;  %vm2002_vm11 = vcmp.eq.f32.partialorder %v2001_v23, 8.507059e+37 }
0x1d46   :  { %v2920_v28 = vpop.eup %2919 }
0x1d47   :  { %v2922_v20 = vpop.eup %2921  ;;  %v1993_v52 = vmul.f32 %v2920_v28, %v1976_v27  ;;  %vm1998_vm8 = vweird.f32 %v2920_v28 }
0x1d48   :  { %v1975_v22 = vadd.f32 1.0, %v2922_v20  ;;  %vm1999_vm10 = vmor %vm1997_vm9, %vm1998_vm8 }
0x1d49   :  { %v1994_v36 = vsub.f32 1.0, %v1993_v52 }
0x1d4a   :  { %2923 = vrcp.f32 %v1975_v22  ;;  %v1988_v34 = vand.u32 2147483648, %v1975_v22  ;;  %vm1982_vm13 = vweird.f32 %v1975_v22  ;;  %v1986_v49 = vand.u32 2147483647, %v1975_v22 }
0x1d4b   :  { %v1995_v25 = vmul.f32 %v2920_v28, %v1994_v36 }
0x1d4c   :  { %v1989_v7 = vor.u32 1.1754944e-38, %v1988_v34  ;;  %vm1987_vm15 = vcmp.eq.f32.partialorder %v1986_v49, 8.507059e+37 }
0x1d4d   :  { %v1996_v15 = vadd.f32 %v2920_v28, %v1995_v25 }
0x1d4f   :  { %v2000_v31 = vsel %vm1999_vm10, %v2920_v28, %v1996_v15 }
0x1d50   :  { %v2924_v4 = vpop.eup %2923  ;;  %v2005_v5 = vsel %vm2002_vm11, %v2004_v54, %v2000_v31 }
0x1d51   :  { %v1978_v43 = vmul.f32 %v2924_v4, %v1975_v22  ;;  %vm1983_vm12 = vweird.f32 %v2924_v4  ;;  %v2010_v10 = vmul.f32 %v2005_v5, %v3626_v30 }
0x1d52   :  { %vm1984_vm14 = vmor %vm1982_vm13, %vm1983_vm12 }
0x1d53   :  { %v1979_v6 = vsub.f32 1.0, %v1978_v43 }
0x1d55   :  { %v1980_v41 = vmul.f32 %v2924_v4, %v1979_v6 }
0x1d57   :  { %v1981_v33 = vadd.f32 %v2924_v4, %v1980_v41 }
0x1d59   :  { %v1985_v59 = vsel %vm1984_vm14, %v2924_v4, %v1981_v33 }
0x1d5a   :  { %v1990_v24 = vsel %vm1987_vm15, %v1989_v7, %v1985_v59 }
0x1d5b   :  { %v2009_v32 = vmul.f32 %v1990_v24, %v3621_v21 }
0x1d96   :  { %v2016_v37 = vpop.permute.xlu2 %2015 }
0x1d97   :  { %v2020_v48 = vmul.f32 %v2016_v37, %v2005_v5 }
0x1d99   :  { %2025 = vrot.lane.b32.xlu1 %v2020_v48, %s2981_s0 }
0x1da6   :  { %v2014_v29 = vpop.permute.xlu1 %2013 }
0x1da7   :  { %v2019_v9 = vmul.f32 %v2014_v29, %v1990_v24 }
0x1da9   :  { %2023 = vrot.lane.b32.xlu0 %v2019_v9, %s2981_s0 }
0x1e0b   :  { %v2026_v11 = vpop.permute.xlu1 %2025 }
0x1e0c   :  { %v3643_v14 = vadd.f32 %v2026_v11, %v2010_v10 }
0x1e0e   :  { %2925 = vtanh.f32 %v3643_v14 }
0x1e14   :  { %v2926_v19 = vpop.eup %2925 }
0x1e15   :  { %2037 = vrot.lane.b32.xlu0 %v2926_v19, %s2981_s0 }
0x1e1b   :  { %v2024_v44 = vpop.permute.xlu0 %2023 }
0x1e1c   :  { %v3648_v45 = vadd.f32 %v2024_v44, %v2009_v32 }
0x1e1e   :  { %2927 = vtanh.f32 %v3648_v45 }
0x1e24   :  { %v2928_v12 = vpop.eup %2927 }
0x1e25   :  { %2035 = vrot.lane.b32.xlu2 %v2928_v12, %s2981_s0 }
0x1e7f   :  { %v2036_v8 = vpop.permute.xlu2 %2035 }
0x1e80   :  { %v2041_v30 = vmul.f32 %v2036_v8, %v1990_v24 }
0x1e87   :  { %v2038_v62 = vpop.permute.xlu0 %2037 }
0x1e88   :  { %v2042_v40 = vmul.f32 %v2038_v62, %v2005_v5 }
0x1e8a   :  { %v2043_v63 = vpack.c.bf16 %v2042_v40, %v2041_v30 }
0x1e8c   :  { %2045 = vrot.lane.b32.xlu1 %v2043_v63, %s2982_s24 }
0x1efe   :  { %v2046_v60 = vpop.permute.xlu1 %2045 }
0x1eff   :  { %2631 = vmatmul.msk.bf16.vlgmr.msra.gmra.mxu2 %vm98_vm0, %v2046_v60  ;;  %2632 = vmatmul.msk.bf16.vlgmr.msra.gmra.mxu3 %vm98_vm0, %v2046_v60 }
0x1f82   :  { %v2059_v21 = vpop.f32.mrf.mxu2  ;;  %v2073_v0 = vpop.f32.mrf.mxu3 }
0x1f83   :  { %v2082_v26 = vadd.f32 %v2059_v21, %v3538_v35 }
0x1f85   :  { %2929 = vtanh.f32 %v2082_v26  ;;  %v2633_v53 = vmul.f32 -1.442695, %v2082_v26 }
0x1f8a   :  { %v2061_v13 = vpop.f32.mrf.mxu2  ;;  %v2075_v1 = vpop.f32.mrf.mxu3 }
0x1f8b   :  { %v2930_v17 = vpop.eup %2929  ;;  %v2083_v39 = vadd.f32 %v2075_v1, %v3527_v42 }
0x1f8c   :  { %2128 = vrot.lane.b32.xlu2 %v2930_v17, %s2981_s0 }
0x1f8d   :  { %2931 = vtanh.f32 %v2083_v39  ;;  %v2634_v61 = vmul.f32 -1.442695, %v2083_v39 }
0x1f8e   :  { %2933 = vpow2.f32 %v2633_v53 }
0x1f93   :  { %v2932_v51 = vpop.eup %2931 }
0x1f94   :  { %2130 = vrot.lane.b32.xlu0 %v2932_v51, %s2981_s0  ;;  %v2934_v50 = vpop.eup %2933 }
0x1f95   :  { %v2090_v3 = vadd.f32 1.0, %v2934_v50 }
0x1f97   :  { %2935 = vrcp.f32 %v2090_v3  ;;  %v2103_v42 = vand.u32 2147483648, %v2090_v3  ;;  %vm2097_vm2 = vweird.f32 %v2090_v3  ;;  %v2101_v27 = vand.u32 2147483647, %v2090_v3 }
0x1f98   :  { %2937 = vpow2.f32 %v2634_v61 }
0x1f99   :  { %v2104_v20 = vor.u32 1.1754944e-38, %v2103_v42  ;;  %vm2102_vm4 = vcmp.eq.f32.partialorder %v2101_v27, 8.507059e+37 }
0x1f9d   :  { %v2936_v58 = vpop.eup %2935 }
0x1f9e   :  { %v2093_v16 = vmul.f32 %v2936_v58, %v2090_v3  ;;  %vm2098_vm1 = vweird.f32 %v2936_v58  ;;  %v2938_v55 = vpop.eup %2937 }
0x1f9f   :  { %vm2099_vm3 = vmor %vm2097_vm2, %vm2098_vm1  ;;  %v2091_v52 = vadd.f32 1.0, %v2938_v55 }
0x1fa0   :  { %v2094_v35 = vsub.f32 1.0, %v2093_v16 }
0x1fa1   :  { %2939 = vrcp.f32 %v2091_v52  ;;  %v2118_v43 = vand.u32 2147483648, %v2091_v52  ;;  %vm2112_vm6 = vweird.f32 %v2091_v52  ;;  %v2116_v54 = vand.u32 2147483647, %v2091_v52 }
0x1fa2   :  { %v2095_v2 = vmul.f32 %v2936_v58, %v2094_v35 }
0x1fa3   :  { %v2119_v5 = vor.u32 1.1754944e-38, %v2118_v43  ;;  %vm2117_vm8 = vcmp.eq.f32.partialorder %v2116_v54, 8.507059e+37 }
0x1fa4   :  { %v2096_v18 = vadd.f32 %v2936_v58, %v2095_v2 }
0x1fa6   :  { %v2100_v28 = vsel %vm2099_vm3, %v2936_v58, %v2096_v18 }
0x1fa7   :  { %v2105_v36 = vsel %vm2102_vm4, %v2104_v20, %v2100_v28  ;;  %v2940_v15 = vpop.eup %2939 }
0x1fa8   :  { %v2108_v4 = vmul.f32 %v2940_v15, %v2091_v52  ;;  %vm2113_vm5 = vweird.f32 %v2940_v15  ;;  %v2124_v33 = vmul.f32 %v2105_v36, %v3648_v45 }
0x1fa9   :  { %vm2114_vm7 = vmor %vm2112_vm6, %vm2113_vm5 }
0x1faa   :  { %v2109_v46 = vsub.f32 1.0, %v2108_v4 }
0x1fac   :  { %v2110_v23 = vmul.f32 %v2940_v15, %v2109_v46 }
0x1fae   :  { %v2111_v31 = vadd.f32 %v2940_v15, %v2110_v23 }
0x1fb0   :  { %v2115_v37 = vsel %vm2114_vm7, %v2940_v15, %v2111_v31 }
0x1fb1   :  { %v2120_v6 = vsel %vm2117_vm8, %v2119_v5, %v2115_v37 }
0x1fb2   :  { %v2125_v59 = vmul.f32 %v2120_v6, %v3643_v14 }
0x1fe6   :  { %v2129_v22 = vpop.permute.xlu2 %2128 }
0x1fe7   :  { %v2134_v25 = vmul.f32 %v2129_v22, %v2105_v36 }
0x1fe9   :  { %2138 = vrot.lane.b32.xlu1 %v2134_v25, %s2981_s0 }
0x2006   :  { %v2131_v48 = vpop.permute.xlu0 %2130 }
0x2007   :  { %v2135_v41 = vmul.f32 %v2131_v48, %v2120_v6 }
0x2009   :  { %2140 = vrot.lane.b32.xlu2 %v2135_v41, %s2981_s0 }
0x205b   :  { %v2139_v34 = vpop.permute.xlu1 %2138 }
0x205c   :  { %v3662_v49 = vadd.f32 %v2139_v34, %v2124_v33 }
0x205e   :  { %2941 = vtanh.f32 %v3662_v49 }
0x2063   :  { %v2141_v7 = vpop.permute.xlu2 %2140 }
0x2064   :  { %v2942_v29 = vpop.eup %2941  ;;  %v3666_v24 = vadd.f32 %v2141_v7, %v2125_v59  ;;  %v2979_v7 = vld [vmem:[%s3734_s9] ss:$0 sm:$0xff] }
0x2065   :  { %2150 = vrot.lane.b32.xlu0 %v2942_v29, %s2981_s0  ;;  %v1368_v29 = vadd.f32 %v2979_v7, %v3633_v56 }
0x2066   :  { %2943 = vtanh.f32 %v3666_v24 }
0x206c   :  { %v2944_v9 = vpop.eup %2943 }
0x206d   :  { %2152 = vrot.lane.b32.xlu1 %v2944_v9, %s2981_s0 }
0x20d7   :  { %v2151_v10 = vpop.permute.xlu0 %2150 }
0x20d8   :  { %v2156_v19 = vmul.f32 %v2151_v10, %v2105_v36 }
0x20df   :  { %v2153_v11 = vpop.permute.xlu1 %2152 }
0x20e0   :  { %v2157_v32 = vmul.f32 %v2153_v11, %v2120_v6 }
0x20e2   :  { %v2158_v44 = vpack.c.bf16 %v2157_v32, %v2156_v19 }
0x20e4   :  { %2160 = vrot.lane.b32.xlu2 %v2158_v44, %s2982_s24 }
0x213e   :  { %v2161_v45 = vpop.permute.xlu2 %2160 }
0x213f   :  { %2635 = vmatmul.msk.bf16.vlgmr.msrb.gmra.mxu0 %vm98_vm0, %v2161_v45  ;;  %2636 = vmatmul.msk.bf16.vlgmr.msrb.gmra.mxu1 %vm98_vm0, %v2161_v45 }
0x21bc   :  { %v2174_v14 = vpop.f32.mrf.mxu0  ;;  %v2188_v12 = vpop.f32.mrf.mxu1 }
0x21bd   :  { %v2197_v8 = vadd.f32 %v2174_v14, %v3543_v57 }
0x21bf   :  { %2945 = vtanh.f32 %v2197_v8  ;;  %v2637_v21 = vmul.f32 -1.442695, %v2197_v8 }
0x21c4   :  { %v2176_v62 = vpop.f32.mrf.mxu0  ;;  %v2190_v30 = vpop.f32.mrf.mxu1 }
0x21c5   :  { %v2946_v40 = vpop.eup %2945  ;;  %v2198_v63 = vadd.f32 %v2190_v30, %v3522_v38 }
0x21c6   :  { %2243 = vrot.lane.b32.xlu0 %v2946_v40, %s2981_s0 }
0x21c7   :  { %2947 = vtanh.f32 %v2198_v63  ;;  %v2638_v0 = vmul.f32 -1.442695, %v2198_v63 }
0x21c8   :  { %2949 = vpow2.f32 %v2637_v21 }
0x21c9   :  { %2951 = vpow2.f32 %v2638_v0 }
0x21cd   :  { %v2948_v60 = vpop.eup %2947 }
0x21ce   :  { %2245 = vrot.lane.b32.xlu1 %v2948_v60, %s2981_s0  ;;  %v2950_v26 = vpop.eup %2949 }
0x21cf   :  { %v2205_v13 = vadd.f32 1.0, %v2950_v26  ;;  %v2952_v57 = vpop.eup %2951 }
0x21d0   :  { %v2206_v1 = vadd.f32 1.0, %v2952_v57 }
0x21d1   :  { %2953 = vrcp.f32 %v2205_v13  ;;  %v2218_v16 = vand.u32 2147483648, %v2205_v13  ;;  %vm2212_vm10 = vweird.f32 %v2205_v13  ;;  %v2216_v35 = vand.u32 2147483647, %v2205_v13 }
0x21d2   :  { %2955 = vrcp.f32 %v2206_v1  ;;  %v2233_v20 = vand.u32 2147483648, %v2206_v1  ;;  %vm2227_vm14 = vweird.f32 %v2206_v1  ;;  %v2231_v52 = vand.u32 2147483647, %v2206_v1 }
0x21d3   :  { %v2219_v18 = vor.u32 1.1754944e-38, %v2218_v16  ;;  %vm2217_vm12 = vcmp.eq.f32.partialorder %v2216_v35, 8.507059e+37 }
0x21d4   :  { %v2234_v36 = vor.u32 1.1754944e-38, %v2233_v20  ;;  %vm2232_vm1 = vcmp.eq.f32.partialorder %v2231_v52, 8.507059e+37 }
0x21d7   :  { %v2954_v17 = vpop.eup %2953 }
0x21d8   :  { %v2208_v39 = vmul.f32 %v2954_v17, %v2205_v13  ;;  %v2956_v38 = vpop.eup %2955  ;;  %vm2213_vm9 = vweird.f32 %v2954_v17 }
0x21d9   :  { %v2223_v50 = vmul.f32 %v2956_v38, %v2206_v1  ;;  %vm2214_vm11 = vmor %vm2212_vm10, %vm2213_vm9  ;;  %vm2228_vm13 = vweird.f32 %v2956_v38 }
0x21da   :  { %v2209_v51 = vsub.f32 1.0, %v2208_v39  ;;  %vm2229_vm15 = vmor %vm2227_vm14, %vm2228_vm13 }
0x21db   :  { %v2224_v58 = vsub.f32 1.0, %v2223_v50 }
0x21dc   :  { %v2210_v53 = vmul.f32 %v2954_v17, %v2209_v51 }
0x21dd   :  { %v2225_v2 = vmul.f32 %v2956_v38, %v2224_v58 }
0x21de   :  { %v2211_v3 = vadd.f32 %v2954_v17, %v2210_v53 }
0x21df   :  { %v2226_v28 = vadd.f32 %v2956_v38, %v2225_v2 }
0x21e0   :  { %v2215_v61 = vsel %vm2214_vm11, %v2954_v17, %v2211_v3 }
0x21e1   :  { %v2220_v27 = vsel %vm2217_vm12, %v2219_v18, %v2215_v61  ;;  %v2230_v22 = vsel %vm2229_vm15, %v2956_v38, %v2226_v28 }
0x21e2   :  { %v2235_v15 = vsel %vm2232_vm1, %v2234_v36, %v2230_v22  ;;  %v2239_v46 = vmul.f32 %v2220_v27, %v3662_v49 }
0x21e3   :  { %v2240_v54 = vmul.f32 %v2235_v15, %v3666_v24 }
0x2238   :  { %v2244_v42 = vpop.permute.xlu0 %2243 }
0x2239   :  { %v2249_v55 = vmul.f32 %v2244_v42, %v2220_v27 }
0x223b   :  { %2253 = vrot.lane.b32.xlu2 %v2249_v55, %s2981_s0 }
0x2240   :  { %v2246_v25 = vpop.permute.xlu1 %2245 }
0x2241   :  { %v2250_v4 = vmul.f32 %v2246_v25, %v2235_v15 }
0x2243   :  { %2255 = vrot.lane.b32.xlu0 %v2250_v4, %s2981_s0  ;;  %v2689_v4 = vld [vmem:[%s3739_s11] sm:$0xff] }
0x2295   :  { %v2254_v23 = vpop.permute.xlu2 %2253 }
0x2296   :  { %v3681_v31 = vadd.f32 %v2254_v23, %v2239_v46 }
0x2298   :  { %2957 = vtanh.f32 %v3681_v31 }
0x229e   :  { %v2958_v43 = vpop.eup %2957 }
0x229f   :  { %2265 = vrot.lane.b32.xlu1 %v2958_v43, %s2981_s0 }
0x22b5   :  { %v2256_v37 = vpop.permute.xlu0 %2255 }
0x22b6   :  { %v3686_v5 = vadd.f32 %v2256_v37, %v2240_v54 }
0x22b8   :  { %2959 = vtanh.f32 %v3686_v5 }
0x22be   :  { %v2960_v48 = vpop.eup %2959 }
0x22bf   :  { %2267 = vrot.lane.b32.xlu2 %v2960_v48, %s2981_s0  ;;  %v2691_v48 = vld [vmem:[%s3739_s11 + $0x10] sm:$0xff] }
0x2311   :  { %v2266_v6 = vpop.permute.xlu1 %2265 }
0x2312   :  { %v2271_v33 = vmul.f32 %v2266_v6, %v2220_v27 }
0x2319   :  { %v2268_v41 = vpop.permute.xlu2 %2267 }
0x231a   :  { %v2272_v34 = vmul.f32 %v2268_v41, %v2235_v15  ;;  %v2690_v15 = vld [vmem:[%s3739_s11 + $0x8] sm:$0xff] }
0x231b   :  { %2454 = vmatpush.bf16.msra.mxu1 %v2690_v15 }
0x231c   :  { %v2273_v49 = vpack.c.bf16 %v2272_v34, %v2271_v33 }
0x231e   :  { %2275 = vrot.lane.b32.xlu0 %v2273_v49, %s2982_s24  ;;  %v2720_v49 = vld [vmem:[%s3740_s12] ss:$0 sm:$0xff] }
0x231f   :  { %2455 = vmatpush.bf16.msra.mxu1 %v2689_v4 }
0x2390   :  { %v2276_v59 = vpop.permute.xlu0 %2275 }
0x2391   :  { %2639 = vmatmul.msk.bf16.vlgmr.msrb.gmra.mxu2 %vm98_vm0, %v2276_v59  ;;  %2640 = vmatmul.msk.bf16.vlgmr.msrb.gmra.mxu3 %vm98_vm0, %v2276_v59 }
0x2414   :  { %v2289_v24 = vpop.f32.mrf.mxu2  ;;  %v2303_v9 = vpop.f32.mrf.mxu3 }
0x2415   :  { %v2312_v10 = vadd.f32 %v2289_v24, %v1368_v29 }
0x2417   :  { %2961 = vtanh.f32 %v2312_v10  ;;  %v2641_v56 = vmul.f32 -1.442695, %v2312_v10 }
0x241c   :  { %v2291_v11 = vpop.f32.mrf.mxu2  ;;  %v2305_v19 = vpop.f32.mrf.mxu3 }
0x241d   :  { %v2962_v32 = vpop.eup %2961  ;;  %v2313_v44 = vadd.f32 %v2305_v19, %v3518_v47 }
0x241e   :  { %2358 = vrot.lane.b32.xlu1 %v2962_v32, %s2981_s0 }
0x241f   :  { %2963 = vtanh.f32 %v2313_v44  ;;  %v2642_v14 = vmul.f32 -1.442695, %v2313_v44 }
0x2421   :  { %2965 = vpow2.f32 %v2642_v14 }
0x2425   :  { %v2964_v45 = vpop.eup %2963 }
0x2426   :  { %2360 = vrot.lane.b32.xlu2 %v2964_v45, %s2981_s0 }
0x2427   :  { %v2966_v12 = vpop.eup %2965 }
0x2428   :  { %v2321_v8 = vadd.f32 1.0, %v2966_v12 }
0x242a   :  { %2967 = vrcp.f32 %v2321_v8  ;;  %v2348_v26 = vand.u32 2147483648, %v2321_v8  ;;  %vm2342_vm3 = vweird.f32 %v2321_v8  ;;  %v2346_v13 = vand.u32 2147483647, %v2321_v8 }
0x242b   :  { %2969 = vpow2.f32 %v2641_v56 }
0x242c   :  { %v2349_v17 = vor.u32 1.1754944e-38, %v2348_v26  ;;  %vm2347_vm5 = vcmp.eq.f32.partialorder %v2346_v13, 8.507059e+37 }
0x2430   :  { %v2968_v62 = vpop.eup %2967 }
0x2431   :  { %v2970_v30 = vpop.eup %2969  ;;  %v2338_v40 = vmul.f32 %v2968_v62, %v2321_v8  ;;  %vm2343_vm2 = vweird.f32 %v2968_v62 }
0x2432   :  { %v2320_v63 = vadd.f32 1.0, %v2970_v30  ;;  %vm2344_vm4 = vmor %vm2342_vm3, %vm2343_vm2 }
0x2433   :  { %v2339_v60 = vsub.f32 1.0, %v2338_v40 }
0x2434   :  { %2971 = vrcp.f32 %v2320_v63  ;;  %v2333_v58 = vand.u32 2147483648, %v2320_v63  ;;  %vm2327_vm7 = vweird.f32 %v2320_v63  ;;  %v2331_v16 = vand.u32 2147483647, %v2320_v63 }
0x2435   :  { %v2340_v47 = vmul.f32 %v2968_v62, %v2339_v60 }
0x2436   :  { %v2334_v61 = vor.u32 1.1754944e-38, %v2333_v58  ;;  %vm2332_vm9 = vcmp.eq.f32.partialorder %v2331_v16, 8.507059e+37 }
0x2437   :  { %v2341_v21 = vadd.f32 %v2968_v62, %v2340_v47 }
0x2439   :  { %v2345_v57 = vsel %vm2344_vm4, %v2968_v62, %v2341_v21 }
0x243a   :  { %v2972_v0 = vpop.eup %2971  ;;  %v2350_v51 = vsel %vm2347_vm5, %v2349_v17, %v2345_v57 }
0x243b   :  { %v2323_v1 = vmul.f32 %v2972_v0, %v2320_v63  ;;  %vm2328_vm6 = vweird.f32 %v2972_v0  ;;  %v2355_v27 = vmul.f32 %v2350_v51, %v3686_v5  ;;  %v2692_v5 = vld [vmem:[%s3739_s11 + $0x18] sm:$0xff] }
0x243c   :  { %vm2329_vm8 = vmor %vm2327_vm7, %vm2328_vm6  ;;  %2423 = vmatpush.bf16.msra.mxu0 %v2692_v5 }
0x243d   :  { %v2324_v53 = vsub.f32 1.0, %v2323_v1 }
0x243f   :  { %v2325_v50 = vmul.f32 %v2972_v0, %v2324_v53 }
0x2440   :  { %2424 = vmatpush.bf16.msra.mxu0 %v2691_v48 }
0x2441   :  { %v2326_v3 = vadd.f32 %v2972_v0, %v2325_v50 }
0x2443   :  { %v2330_v35 = vsel %vm2329_vm8, %v2972_v0, %v2326_v3 }
0x2444   :  { %v2335_v18 = vsel %vm2332_vm9, %v2334_v61, %v2330_v35 }
0x2445   :  { %v2354_v52 = vmul.f32 %v2335_v18, %v3681_v31 }
0x2480   :  { %v2361_v39 = vpop.permute.xlu2 %2360 }
0x2481   :  { %v2365_v38 = vmul.f32 %v2361_v39, %v2350_v51 }
0x2483   :  { %2370 = vrot.lane.b32.xlu1 %v2365_v38, %s2981_s0 }
0x2490   :  { %v2359_v2 = vpop.permute.xlu1 %2358 }
0x2491   :  { %v2364_v42 = vmul.f32 %v2359_v2, %v2335_v18 }
0x2493   :  { %2368 = vrot.lane.b32.xlu0 %v2364_v42, %s2981_s0 }
0x24f5   :  { %v2371_v55 = vpop.permute.xlu1 %2370 }
0x24f6   :  { %v2375_v28 = vadd.f32 %v2371_v55, %v2355_v27 }
0x24f8   :  { %2973 = vtanh.f32 %v2375_v28 }
0x24fe   :  { %v2974_v20 = vpop.eup %2973 }
0x24ff   :  { %2382 = vrot.lane.b32.xlu0 %v2974_v20, %s2981_s0 }
0x2505   :  { %v2369_v22 = vpop.permute.xlu0 %2368 }
0x2506   :  { %v2374_v36 = vadd.f32 %v2369_v22, %v2354_v52 }
0x2508   :  { %2975 = vtanh.f32 %v2374_v36 }
0x250e   :  { %v2976_v25 = vpop.eup %2975 }
0x250f   :  { %2380 = vrot.lane.b32.xlu2 %v2976_v25, %s2981_s0 }
0x2569   :  { %v2381_v46 = vpop.permute.xlu2 %2380 }
0x256a   :  { %v2386_v23 = vmul.f32 %v2381_v46, %v2335_v18 }
0x256c   :  { %v2388_v43 = vpack.c.bf16 %v2386_v23, %v2386_v23 }
0x256e   :  { %2431 = vrot.lane.b32.xlu2 %v2388_v43, %s2982_s24 }
0x2571   :  { %v2383_v31 = vpop.permute.xlu0 %2382 }
0x2572   :  { %v2387_v54 = vmul.f32 %v2383_v31, %v2350_v51 }
0x2574   :  { %v2393_v37 = vpack.c.bf16 %v2387_v54, %v2387_v54 }
0x2576   :  { %2400 = vrot.lane.b32.xlu1 %v2393_v37, %s2982_s24 }
0x25c8   :  { %v2432_v6 = vpop.permute.xlu2 %2431 }
0x25c9   :  { %2664 = vmatmul.msk.bf16.vlgmr.msra.gmra.mxu1 %vm98_vm0, %v2432_v6 }
0x25e8   :  { %v2401_v41 = vpop.permute.xlu1 %2400 }
0x25e9   :  { %2655 = vmatmul.msk.bf16.vlgmr.msra.gmra.mxu0 %vm98_vm0, %v2401_v41 }
0x2646   :  { %v2457_v33 = vpop.f32.mrf.mxu1 }
0x264e   :  { %v2459_v34 = vpop.f32.mrf.mxu1 }
0x2666   :  { %v2426_v59 = vpop.f32.mrf.mxu0 }
0x2667   :  { %v2458_v7 = vadd.f32 %v2457_v33, %v2426_v59 }
0x2669   :  { %v2465_v29 = vadd.f32 %v2720_v49, %v2458_v7 }
0x266b   :  { %2466 = vst [vmem:[%s3741_s13] sm:$0xff] %v2465_v29 }
0x266e   :  { %v2428_v24 = vpop.f32.mrf.mxu0 }

</bundles_post_ra>
